<compile_context>
chip_gen: v7x
topology: tpu7x:2x2x1
jax: 0.10.0
libtpu: 0.0.40
codegen_flags: <defaults>
</compile_context>

<pallas_src>
import jax
import jax.numpy as jnp
import numpy as np
from jax import lax
from jax.experimental import pallas as pl
from jax.experimental.pallas import tpu as pltpu


# =============================================================================
# Fused kernel: 2 bidirectional LSTM layers + sum-over-time + Linear + LogSoftmax
# =============================================================================
def _fused_bilstm_classifier_kernel(
    x_ref,       # (T, bt, F)   f32   input, time-major
    w0ih_ref,    # (F, 8H)      bf16  layer-0 input->gate weights (fwd/bwd interleaved per gate)
    w0rec_ref,   # (2H, 8H)     bf16  layer-0 recurrent weights, block-diagonal over directions
    b0_ref,      # (1, 8H)      f32   layer-0 bias (b_ih + b_hh), interleaved
    w1ih_ref,    # (2H, 8H)     bf16  layer-1 input->gate weights
    w1rec_ref,   # (2H, 8H)     bf16
    b1_ref,      # (1, 8H)      f32
    lw_ref,      # (C, 2H)      f32   classifier weight
    lb_ref,      # (1, C)       f32
    o_ref,       # (bt, C)      f32   log-softmax output
    xg0_scr,     # (T, bt, 8H)  f32   layer-0 gate pre-activations (input part)
    xg1_scr,     # (T, bt, 8H)  f32   layer-1 gate pre-activations (input part)
    h0_scr,      # (T, bt, 2H)  f32   layer-0 hidden states, step-aligned packing
):
    T, bt, F = x_ref.shape
    H2 = w0rec_ref.shape[0]            # 2H: packed [fwd | bwd] hidden width (128)
    H = H2 // 2
    G = 4 * H2                         # 8H: packed gate width (512)
    C = o_ref.shape[1]
    f32, bf16 = jnp.float32, jnp.bfloat16

    # Lane masks kept at sublane-1 (tiny) so no large broadcast value stays live.
    # fmask8: True on forward-direction lanes of the interleaved 8H gate layout.
    fmask8 = lax.broadcasted_iota(jnp.int32, (1, G), 1) % H2 < H
    # fmask2: True on the forward half of the packed (2H) hidden layout.
    fmask2 = lax.broadcasted_iota(jnp.int32, (1, H2), 1) < H

    def cell(xg, h, c, w_rec_ref):
        """One fused fwd+bwd LSTM step on interleave-packed gates/state."""
        gates = xg + jnp.dot(h.astype(bf16), w_rec_ref[...],
                             preferred_element_type=f32)
        i_g = jax.nn.sigmoid(gates[:, 0:H2])            # [i_f | i_b]  128 lanes
        f_g = jax.nn.sigmoid(gates[:, H2:2 * H2])       # [f_f | f_b]
        g_g = jnp.tanh(gates[:, 2 * H2:3 * H2])         # [g_f | g_b]
        o_g = jax.nn.sigmoid(gates[:, 3 * H2:4 * H2])   # [o_f | o_b]
        c_new = f_g * c + i_g * g_g
        h_new = o_g * jnp.tanh(c_new)
        return h_new, c_new

    # ---- Layer 0: input->gate projection (off the recurrence critical path) ----
    for t in range(T):
        xg0_scr[t] = (jnp.dot(x_ref[t].astype(bf16), w0ih_ref[...],
                              preferred_element_type=f32) + b0_ref[...])

    # ---- Layer 0: bidirectional recurrence -------------------------------------
    # h packs [h_fwd | h_bwd]; at step s the fwd half consumes time s and the bwd
    # half consumes time T-1-s, so row s of h0_scr holds [h_fwd(s) | h_bwd(T-1-s)]
    # -> one lane-dense 128-wide in-loop store per step.
    # TODO(synk): T is unrolled (static & small here); for long sequences switch to
    #             lax.fori_loop(..., unroll=k).
    h = jnp.zeros((bt, H2), f32)
    c = jnp.zeros((bt, H2), f32)
    for s in range(T):
        xg = jnp.where(fmask8, xg0_scr[s], xg0_scr[T - 1 - s])
        h, c = cell(xg, h, c, w0rec_ref)
        h0_scr[s] = h

    # ---- Layer 1: input->gate projection ----------------------------------------
    # Layer-1 input at time t is y(t) = [h_fwd(t) | h_bwd(t)], reassembled from the
    # step-aligned store with a cheap lane select (off the critical path).
    for t in range(T):
        y_t = jnp.where(fmask2, h0_scr[t], h0_scr[T - 1 - t])
        xg1_scr[t] = (jnp.dot(y_t.astype(bf16), w1ih_ref[...],
                              preferred_element_type=f32) + b1_ref[...])

    # ---- Layer 1: recurrence + running sum over time ----------------------------
    # Only the time-sum of the final layer's outputs is needed, and a sum is
    # order-independent, so no per-step stores at all for this layer.
    h = jnp.zeros((bt, H2), f32)
    c = jnp.zeros((bt, H2), f32)
    acc = jnp.zeros((bt, H2), f32)
    for s in range(T):
        xg = jnp.where(fmask8, xg1_scr[s], xg1_scr[T - 1 - s])
        h, c = cell(xg, h, c, w1rec_ref)
        acc = acc + h

    # ---- Head: Linear (C is tiny -> VPU broadcast-mul + lane reduce) + LogSoftmax
    lw = lw_ref[...]                      # (C, 2H), columns ordered [fwd | bwd]
    lb = lb_ref[...]                      # (1, C)
    cols = []
    for ci in range(C):
        logit = jnp.sum(acc * lw[ci:ci + 1, :], axis=1, keepdims=True)
        cols.append(logit + lb[:, ci:ci + 1])           # (bt, 1)
    m = cols[0]
    for ci in range(1, C):
        m = jnp.maximum(m, cols[ci])
    denom = jnp.zeros_like(m)
    for ci in range(C):
        denom = denom + jnp.exp(cols[ci] - m)
    lse = jnp.log(denom) + m
    for ci in range(C):
        o_ref[:, ci:ci + 1] = cols[ci] - lse


# =============================================================================
# Weight packing (PyTorch layout -> kernel layout)
# =============================================================================
def _pack_ih(w_f, w_b, H, dtype):
    """(4H, D) fwd/bwd weight_ih -> (D, 8H), fwd/bwd interleaved per gate [i,f,g,o]."""
    cols = []
    for k in range(4):
        cols.append(w_f[k * H:(k + 1) * H, :].T)
        cols.append(w_b[k * H:(k + 1) * H, :].T)
    return jnp.concatenate(cols, axis=1).astype(dtype)


def _pack_rec(w_f, w_b, H, dtype):
    """(4H, H) fwd/bwd weight_hh -> block-diagonal (2H, 8H): rows 0:H drive the
    forward gate columns, rows H:2H drive the backward gate columns."""
    z = jnp.zeros((H, H), jnp.float32)
    cols = []
    for k in range(4):
        cols.append(jnp.concatenate([w_f[k * H:(k + 1) * H, :].T, z], axis=0))
        cols.append(jnp.concatenate([z, w_b[k * H:(k + 1) * H, :].T], axis=0))
    return jnp.concatenate(cols, axis=1).astype(dtype)


def _pack_bias(bih_f, bhh_f, bih_b, bhh_b, H):
    bf, bb = bih_f + bhh_f, bih_b + bhh_b
    segs = []
    for k in range(4):
        segs.append(bf[k * H:(k + 1) * H])
        segs.append(bb[k * H:(k + 1) * H])
    return jnp.concatenate(segs).reshape(1, 8 * H).astype(jnp.float32)


def init_params(key, input_size, hidden_size, num_classes=2,
                matmul_dtype=jnp.bfloat16):
    """PyTorch-style U(-1/sqrt(H), 1/sqrt(H)) init for the 2-layer bi-LSTM + Linear.
    Returns (packed params for the kernel, raw params for the pure-JAX reference)."""
    H = hidden_size
    stdv = 1.0 / float(H) ** 0.5
    packed_layers, raw_layers = [], []
    for layer in range(2):                       # fused kernel is specialized to 2 layers
        d_in = input_size if layer == 0 else 2 * H
        key, *ks = jax.random.split(key, 9)
        w_ih_f = jax.random.uniform(ks[0], (4 * H, d_in), jnp.float32, -stdv, stdv)
        w_hh_f = jax.random.uniform(ks[1], (4 * H, H), jnp.float32, -stdv, stdv)
        b_ih_f = jax.random.uniform(ks[2], (4 * H,), jnp.float32, -stdv, stdv)
        b_hh_f = jax.random.uniform(ks[3], (4 * H,), jnp.float32, -stdv, stdv)
        w_ih_b = jax.random.uniform(ks[4], (4 * H, d_in), jnp.float32, -stdv, stdv)
        w_hh_b = jax.random.uniform(ks[5], (4 * H, H), jnp.float32, -stdv, stdv)
        b_ih_b = jax.random.uniform(ks[6], (4 * H,), jnp.float32, -stdv, stdv)
        b_hh_b = jax.random.uniform(ks[7], (4 * H,), jnp.float32, -stdv, stdv)
        packed_layers.append((
            _pack_ih(w_ih_f, w_ih_b, H, matmul_dtype),
            _pack_rec(w_hh_f, w_hh_b, H, matmul_dtype),
            _pack_bias(b_ih_f, b_hh_f, b_ih_b, b_hh_b, H),
        ))
        raw_layers.append((w_ih_f, w_hh_f, b_ih_f, b_hh_f,
                           w_ih_b, w_hh_b, b_ih_b, b_hh_b))
    key, k1, k2 = jax.random.split(key, 3)
    lin_std = 1.0 / float(2 * H) ** 0.5
    lin_w = jax.random.uniform(k1, (num_classes, 2 * H), jnp.float32, -lin_std, lin_std)
    lin_b = jax.random.uniform(k2, (num_classes,), jnp.float32, -lin_std, lin_std)
    kernel_params = {"layers": packed_layers,
                     "linear_w": lin_w,                            # (C, 2H)
                     "linear_b": lin_b.reshape(1, num_classes)}    # (1, C)
    raw_params = {"lstm": raw_layers, "lin_w": lin_w, "lin_b": lin_b}
    return kernel_params, raw_params


# =============================================================================
# Wrapper
# =============================================================================
def _batch_tiling(batch):
    """Batch tile: multiple of 8, capped at 128, split into >=2 grid tiles when the
    padded batch allows (keeps both v7x TensorCores busy)."""
    bp8 = ((batch + 7) // 8) * 8
    if bp8 <= 16:
        bt = bp8
    else:
        bt = min(128, ((bp8 // 2 + 7) // 8) * 8)
    bp = ((bp8 + bt - 1) // bt) * bt
    return bt, bp, bp // bt


def lstm_classifier_forward(x, params):
    """x: (B, T, F) float32 -> (B, C) float32 log-probabilities."""
    B, T, F = x.shape
    (w0ih, w0rec, b0), (w1ih, w1rec, b1) = params["layers"]
    lw, lb = params["linear_w"], params["linear_b"]
    H2 = w0rec.shape[0]
    G = 4 * H2
    C = lw.shape[0]

    bt, Bp, nb = _batch_tiling(B)
    # Time-major, batch padded to the tile size: every in-kernel access is a
    # contiguous, lane-dense (bt, feature) slab (layout plumbing, not compute).
    xt = jnp.transpose(x, (1, 0, 2))
    if Bp != B:
        xt = jnp.pad(xt, ((0, 0), (0, Bp - B), (0, 0)))

    out = pl.pallas_call(
        _fused_bilstm_classifier_kernel,
        out_shape=jax.ShapeDtypeStruct((Bp, C), jnp.float32),
        grid=(nb,),
        in_specs=[
            pl.BlockSpec((T, bt, F), lambda i: (0, i, 0)),
            pl.BlockSpec((F, G), lambda i: (0, 0)),
            pl.BlockSpec((H2, G), lambda i: (0, 0)),
            pl.BlockSpec((1, G), lambda i: (0, 0)),
            pl.BlockSpec((H2, G), lambda i: (0, 0)),
            pl.BlockSpec((H2, G), lambda i: (0, 0)),
            pl.BlockSpec((1, G), lambda i: (0, 0)),
            pl.BlockSpec((C, H2), lambda i: (0, 0)),
            pl.BlockSpec((1, C), lambda i: (0, 0)),
        ],
        out_specs=pl.BlockSpec((bt, C), lambda i: (i, 0)),
        scratch_shapes=[
            pltpu.VMEM((T, bt, G), jnp.float32),    # layer-0 gate projections
            pltpu.VMEM((T, bt, G), jnp.float32),    # layer-1 gate projections
            pltpu.VMEM((T, bt, H2), jnp.float32),   # layer-0 hidden states
        ],
        compiler_params=pltpu.CompilerParams(
            dimension_semantics=("parallel",)),
    )(xt, w0ih, w0rec, b0, w1ih, w1rec, b1, lw, lb)
    return out[:B]


# =============================================================================
# Pure-JAX reference (same bf16-input / f32-accumulate matmul precision)
# =============================================================================
def reference_forward(x, raw):
    f32, bf16 = jnp.float32, jnp.bfloat16

    def bdot(a, b):
        return jnp.dot(a.astype(bf16), b.astype(bf16), preferred_element_type=f32)

    def run_dir(seq, w_ih, w_hh, b_ih, b_hh, reverse):
        B, T, _ = seq.shape
        H = w_hh.shape[1]
        h = jnp.zeros((B, H), f32)
        c = jnp.zeros((B, H), f32)
        outs = [None] * T
        order = range(T - 1, -1, -1) if reverse else range(T)
        for t in order:
            gates = bdot(seq[:, t], w_ih.T) + bdot(h, w_hh.T) + b_ih + b_hh
            i = jax.nn.sigmoid(gates[:, 0:H])
            f = jax.nn.sigmoid(gates[:, H:2 * H])
            g = jnp.tanh(gates[:, 2 * H:3 * H])
            o = jax.nn.sigmoid(gates[:, 3 * H:4 * H])
            c = f * c + i * g
            h = o * jnp.tanh(c)
            outs[t] = h
        return jnp.stack(outs, axis=1)

    y = x
    for (wif, whf, bif, bhf, wib, whb, bib, bhb) in raw["lstm"]:
        y = jnp.concatenate(
            [run_dir(y, wif, whf, bif, bhf, reverse=False),
             run_dir(y, wib, whb, bib, bhb, reverse=True)], axis=-1)
    s = jnp.sum(y, axis=1)
    logits = s @ raw["lin_w"].T + raw["lin_b"]
    return jax.nn.log_softmax(logits, axis=1)


if __name__ == "__main__":
    # Small shapes consistent with the module's (batch, seq, feature) input;
    # hidden matches the module default (64) so 2H=128 / 8H=512 stay lane-dense.
    B, T, F = 2, 8, 16
    HIDDEN = 64

    key = jax.random.PRNGKey(0)
    key, xk = jax.random.split(key)
    x = jax.random.normal(xk, (B, T, F), jnp.float32)
    kernel_params, raw_params = init_params(key, input_size=F, hidden_size=HIDDEN)

    fwd = jax.jit(lstm_classifier_forward)
    out = fwd(x, kernel_params)
    jax.block_until_ready(out)
    assert out.shape == (B, 2)

    ref = reference_forward(x, raw_params)
    np.testing.assert_allclose(np.asarray(out), np.asarray(ref), rtol=2e-2, atol=2e-2)
    print("KERNEL_OK")
</pallas_src>

<mosaic_0001>
module attributes {stable_mosaic.version = 11 : i64} {
  func.func @_fused_bilstm_classifier_kernel(%arg0: i32, %arg1: memref<8x8x16xf32, #tpu.memory_space<vmem>>, %arg2: memref<16x512xbf16, #tpu.memory_space<vmem>>, %arg3: memref<128x512xbf16, #tpu.memory_space<vmem>>, %arg4: memref<1x512xf32, #tpu.memory_space<vmem>>, %arg5: memref<128x512xbf16, #tpu.memory_space<vmem>>, %arg6: memref<128x512xbf16, #tpu.memory_space<vmem>>, %arg7: memref<1x512xf32, #tpu.memory_space<vmem>>, %arg8: memref<2x128xf32, #tpu.memory_space<vmem>>, %arg9: memref<1x2xf32, #tpu.memory_space<vmem>>, %arg10: memref<8x2xf32, #tpu.memory_space<vmem>>, %arg11: memref<8x8x512xf32, #tpu.memory_space<vmem>>, %arg12: memref<8x8x512xf32, #tpu.memory_space<vmem>>, %arg13: memref<8x8x128xf32, #tpu.memory_space<vmem>>) attributes {dimension_semantics = [#tpu.dimension_semantics<parallel>], iteration_bounds = array<i64: 1>, scalar_prefetch = 0 : i64, scratch_operands = 3 : i64, tpu.core_type = #tpu.core_type<tc>, window_params = [{transform_indices = @transform_0, window_bounds = array<i64: 8, 8, 16>}, {pipeline_mode = #tpu.pipeline_mode<synchronous>, transform_indices = @transform_1, window_bounds = array<i64: 16, 512>}, {pipeline_mode = #tpu.pipeline_mode<synchronous>, transform_indices = @transform_2, window_bounds = array<i64: 128, 512>}, {pipeline_mode = #tpu.pipeline_mode<synchronous>, transform_indices = @transform_3, window_bounds = array<i64: 1, 512>}, {pipeline_mode = #tpu.pipeline_mode<synchronous>, transform_indices = @transform_4, window_bounds = array<i64: 128, 512>}, {pipeline_mode = #tpu.pipeline_mode<synchronous>, transform_indices = @transform_5, window_bounds = array<i64: 128, 512>}, {pipeline_mode = #tpu.pipeline_mode<synchronous>, transform_indices = @transform_6, window_bounds = array<i64: 1, 512>}, {pipeline_mode = #tpu.pipeline_mode<synchronous>, transform_indices = @transform_7, window_bounds = array<i64: 2, 128>}, {pipeline_mode = #tpu.pipeline_mode<synchronous>, transform_indices = @transform_8, window_bounds = array<i64: 1, 2>}, {transform_indices = @transform_9, window_bounds = array<i64: 8, 2>}]} {
    %0 = tpu.iota {dimensions = array<i32: 1>} : vector<1x512xi32>
    %c128_i32 = arith.constant 128 : i32
    %c0_i32 = arith.constant 0 : i32
    %1 = arith.cmpi eq, %c128_i32, %c0_i32 : i32
    %c1_i32 = arith.constant 1 : i32
    %2 = arith.select %1, %c1_i32, %c128_i32 : i32
    %3 = vector.broadcast %2 : i32 to vector<1x512xi32>
    %4 = arith.remsi %0, %3 : vector<1x512xi32>
    %c0_i32_0 = arith.constant 0 : i32
    %5 = vector.broadcast %c0_i32_0 : i32 to vector<1x512xi32>
    %6 = arith.cmpi ne, %4, %5 : vector<1x512xi32>
    %c0_i32_1 = arith.constant 0 : i32
    %7 = vector.broadcast %c0_i32_1 : i32 to vector<1x512xi32>
    %8 = arith.cmpi slt, %4, %7 : vector<1x512xi32>
    %c0_i32_2 = arith.constant 0 : i32
    %9 = arith.cmpi slt, %2, %c0_i32_2 : i32
    %10 = vector.broadcast %9 : i1 to vector<1x512xi1>
    %11 = vector.broadcast %10 : vector<1x512xi1> to vector<1x512xi1>
    %12 = arith.xori %8, %11 : vector<1x512xi1>
    %13 = arith.andi %12, %6 : vector<1x512xi1>
    %14 = vector.broadcast %2 : i32 to vector<1x512xi32>
    %15 = arith.addi %4, %14 : vector<1x512xi32>
    %16 = arith.select %13, %15, %4 : vector<1x512xi1>, vector<1x512xi32>
    %c64_i32 = arith.constant 64 : i32
    %17 = vector.broadcast %c64_i32 : i32 to vector<1x512xi32>
    %18 = arith.cmpi slt, %16, %17 : vector<1x512xi32>
    %19 = tpu.iota {dimensions = array<i32: 1>} : vector<1x128xi32>
    %c64_i32_3 = arith.constant 64 : i32
    %20 = vector.broadcast %c64_i32_3 : i32 to vector<1x128xi32>
    %21 = arith.cmpi slt, %19, %20 : vector<1x128xi32>
    %c0 = arith.constant 0 : index
    %c0_4 = arith.constant 0 : index
    %c0_5 = arith.constant 0 : index
    %22 = vector.load %arg1[%c0, %c0_4, %c0_5] : memref<8x8x16xf32, #tpu.memory_space<vmem>>, vector<1x8x16xf32>
    %23 = vector.shape_cast %22 : vector<1x8x16xf32> to vector<8x16xf32>
    %24 = arith.truncf %23 : vector<8x16xf32> to vector<8x16xbf16>
    %c0_6 = arith.constant 0 : index
    %c0_7 = arith.constant 0 : index
    %25 = vector.load %arg2[%c0_6, %c0_7] : memref<16x512xbf16, #tpu.memory_space<vmem>>, vector<16x512xbf16>
    %cst = arith.constant dense<0.000000e+00> : vector<8x512xf32>
    %26 = tpu.matmul %24, %25, %cst {dimension_numbers = #tpu.dot_dimension_numbers<[1], [0], [0], [1], [0, 0, 1, 1], [], []>} : vector<8x16xbf16>, vector<16x512xbf16>, vector<8x512xf32> -> vector<8x512xf32>
    %c0_8 = arith.constant 0 : index
    %c0_9 = arith.constant 0 : index
    %27 = vector.load %arg4[%c0_8, %c0_9] : memref<1x512xf32, #tpu.memory_space<vmem>>, vector<1x512xf32>
    %28 = vector.broadcast %27 : vector<1x512xf32> to vector<8x512xf32>
    %29 = arith.addf %26, %28 : vector<8x512xf32>
    %c0_10 = arith.constant 0 : index
    %c0_11 = arith.constant 0 : index
    %c0_12 = arith.constant 0 : index
    %30 = vector.load %arg11[%c0_10, %c0_11, %c0_12] : memref<8x8x512xf32, #tpu.memory_space<vmem>>, vector<1x8x512xf32>
    %31 = vector.shape_cast %30 : vector<1x8x512xf32> to vector<8x512xf32>
    %32 = vector.shape_cast %29 : vector<8x512xf32> to vector<1x8x512xf32>
    tpu.vector_store %arg11[%c0_10, %c0_11, %c0_12], %32 {strides = array<i32>} : memref<8x8x512xf32, #tpu.memory_space<vmem>>, vector<1x8x512xf32>,
    %c1 = arith.constant 1 : index
    %c0_13 = arith.constant 0 : index
    %c0_14 = arith.constant 0 : index
    %33 = vector.load %arg1[%c1, %c0_13, %c0_14] : memref<8x8x16xf32, #tpu.memory_space<vmem>>, vector<1x8x16xf32>
    %34 = vector.shape_cast %33 : vector<1x8x16xf32> to vector<8x16xf32>
    %35 = arith.truncf %34 : vector<8x16xf32> to vector<8x16xbf16>
    %c0_15 = arith.constant 0 : index
    %c0_16 = arith.constant 0 : index
    %36 = vector.load %arg2[%c0_15, %c0_16] : memref<16x512xbf16, #tpu.memory_space<vmem>>, vector<16x512xbf16>
    %cst_17 = arith.constant dense<0.000000e+00> : vector<8x512xf32>
    %37 = tpu.matmul %35, %36, %cst_17 {dimension_numbers = #tpu.dot_dimension_numbers<[1], [0], [0], [1], [0, 0, 1, 1], [], []>} : vector<8x16xbf16>, vector<16x512xbf16>, vector<8x512xf32> -> vector<8x512xf32>
    %c0_18 = arith.constant 0 : index
    %c0_19 = arith.constant 0 : index
    %38 = vector.load %arg4[%c0_18, %c0_19] : memref<1x512xf32, #tpu.memory_space<vmem>>, vector<1x512xf32>
    %39 = vector.broadcast %38 : vector<1x512xf32> to vector<8x512xf32>
    %40 = arith.addf %37, %39 : vector<8x512xf32>
    %c1_20 = arith.constant 1 : index
    %c0_21 = arith.constant 0 : index
    %c0_22 = arith.constant 0 : index
    %41 = vector.load %arg11[%c1_20, %c0_21, %c0_22] : memref<8x8x512xf32, #tpu.memory_space<vmem>>, vector<1x8x512xf32>
    %42 = vector.shape_cast %41 : vector<1x8x512xf32> to vector<8x512xf32>
    %43 = vector.shape_cast %40 : vector<8x512xf32> to vector<1x8x512xf32>
    tpu.vector_store %arg11[%c1_20, %c0_21, %c0_22], %43 {strides = array<i32>} : memref<8x8x512xf32, #tpu.memory_space<vmem>>, vector<1x8x512xf32>,
    %c2 = arith.constant 2 : index
    %c0_23 = arith.constant 0 : index
    %c0_24 = arith.constant 0 : index
    %44 = vector.load %arg1[%c2, %c0_23, %c0_24] : memref<8x8x16xf32, #tpu.memory_space<vmem>>, vector<1x8x16xf32>
    %45 = vector.shape_cast %44 : vector<1x8x16xf32> to vector<8x16xf32>
    %46 = arith.truncf %45 : vector<8x16xf32> to vector<8x16xbf16>
    %c0_25 = arith.constant 0 : index
    %c0_26 = arith.constant 0 : index
    %47 = vector.load %arg2[%c0_25, %c0_26] : memref<16x512xbf16, #tpu.memory_space<vmem>>, vector<16x512xbf16>
    %cst_27 = arith.constant dense<0.000000e+00> : vector<8x512xf32>
    %48 = tpu.matmul %46, %47, %cst_27 {dimension_numbers = #tpu.dot_dimension_numbers<[1], [0], [0], [1], [0, 0, 1, 1], [], []>} : vector<8x16xbf16>, vector<16x512xbf16>, vector<8x512xf32> -> vector<8x512xf32>
    %c0_28 = arith.constant 0 : index
    %c0_29 = arith.constant 0 : index
    %49 = vector.load %arg4[%c0_28, %c0_29] : memref<1x512xf32, #tpu.memory_space<vmem>>, vector<1x512xf32>
    %50 = vector.broadcast %49 : vector<1x512xf32> to vector<8x512xf32>
    %51 = arith.addf %48, %50 : vector<8x512xf32>
    %c2_30 = arith.constant 2 : index
    %c0_31 = arith.constant 0 : index
    %c0_32 = arith.constant 0 : index
    %52 = vector.load %arg11[%c2_30, %c0_31, %c0_32] : memref<8x8x512xf32, #tpu.memory_space<vmem>>, vector<1x8x512xf32>
    %53 = vector.shape_cast %52 : vector<1x8x512xf32> to vector<8x512xf32>
    %54 = vector.shape_cast %51 : vector<8x512xf32> to vector<1x8x512xf32>
    tpu.vector_store %arg11[%c2_30, %c0_31, %c0_32], %54 {strides = array<i32>} : memref<8x8x512xf32, #tpu.memory_space<vmem>>, vector<1x8x512xf32>,
    %c3 = arith.constant 3 : index
    %c0_33 = arith.constant 0 : index
    %c0_34 = arith.constant 0 : index
    %55 = vector.load %arg1[%c3, %c0_33, %c0_34] : memref<8x8x16xf32, #tpu.memory_space<vmem>>, vector<1x8x16xf32>
    %56 = vector.shape_cast %55 : vector<1x8x16xf32> to vector<8x16xf32>
    %57 = arith.truncf %56 : vector<8x16xf32> to vector<8x16xbf16>
    %c0_35 = arith.constant 0 : index
    %c0_36 = arith.constant 0 : index
    %58 = vector.load %arg2[%c0_35, %c0_36] : memref<16x512xbf16, #tpu.memory_space<vmem>>, vector<16x512xbf16>
    %cst_37 = arith.constant dense<0.000000e+00> : vector<8x512xf32>
    %59 = tpu.matmul %57, %58, %cst_37 {dimension_numbers = #tpu.dot_dimension_numbers<[1], [0], [0], [1], [0, 0, 1, 1], [], []>} : vector<8x16xbf16>, vector<16x512xbf16>, vector<8x512xf32> -> vector<8x512xf32>
    %c0_38 = arith.constant 0 : index
    %c0_39 = arith.constant 0 : index
    %60 = vector.load %arg4[%c0_38, %c0_39] : memref<1x512xf32, #tpu.memory_space<vmem>>, vector<1x512xf32>
    %61 = vector.broadcast %60 : vector<1x512xf32> to vector<8x512xf32>
    %62 = arith.addf %59, %61 : vector<8x512xf32>
    %c3_40 = arith.constant 3 : index
    %c0_41 = arith.constant 0 : index
    %c0_42 = arith.constant 0 : index
    %63 = vector.load %arg11[%c3_40, %c0_41, %c0_42] : memref<8x8x512xf32, #tpu.memory_space<vmem>>, vector<1x8x512xf32>
    %64 = vector.shape_cast %63 : vector<1x8x512xf32> to vector<8x512xf32>
    %65 = vector.shape_cast %62 : vector<8x512xf32> to vector<1x8x512xf32>
    tpu.vector_store %arg11[%c3_40, %c0_41, %c0_42], %65 {strides = array<i32>} : memref<8x8x512xf32, #tpu.memory_space<vmem>>, vector<1x8x512xf32>,
    %c4 = arith.constant 4 : index
    %c0_43 = arith.constant 0 : index
    %c0_44 = arith.constant 0 : index
    %66 = vector.load %arg1[%c4, %c0_43, %c0_44] : memref<8x8x16xf32, #tpu.memory_space<vmem>>, vector<1x8x16xf32>
    %67 = vector.shape_cast %66 : vector<1x8x16xf32> to vector<8x16xf32>
    %68 = arith.truncf %67 : vector<8x16xf32> to vector<8x16xbf16>
    %c0_45 = arith.constant 0 : index
    %c0_46 = arith.constant 0 : index
    %69 = vector.load %arg2[%c0_45, %c0_46] : memref<16x512xbf16, #tpu.memory_space<vmem>>, vector<16x512xbf16>
    %cst_47 = arith.constant dense<0.000000e+00> : vector<8x512xf32>
    %70 = tpu.matmul %68, %69, %cst_47 {dimension_numbers = #tpu.dot_dimension_numbers<[1], [0], [0], [1], [0, 0, 1, 1], [], []>} : vector<8x16xbf16>, vector<16x512xbf16>, vector<8x512xf32> -> vector<8x512xf32>
    %c0_48 = arith.constant 0 : index
    %c0_49 = arith.constant 0 : index
    %71 = vector.load %arg4[%c0_48, %c0_49] : memref<1x512xf32, #tpu.memory_space<vmem>>, vector<1x512xf32>
    %72 = vector.broadcast %71 : vector<1x512xf32> to vector<8x512xf32>
    %73 = arith.addf %70, %72 : vector<8x512xf32>
    %c4_50 = arith.constant 4 : index
    %c0_51 = arith.constant 0 : index
    %c0_52 = arith.constant 0 : index
    %74 = vector.load %arg11[%c4_50, %c0_51, %c0_52] : memref<8x8x512xf32, #tpu.memory_space<vmem>>, vector<1x8x512xf32>
    %75 = vector.shape_cast %74 : vector<1x8x512xf32> to vector<8x512xf32>
    %76 = vector.shape_cast %73 : vector<8x512xf32> to vector<1x8x512xf32>
    tpu.vector_store %arg11[%c4_50, %c0_51, %c0_52], %76 {strides = array<i32>} : memref<8x8x512xf32, #tpu.memory_space<vmem>>, vector<1x8x512xf32>,
    %c5 = arith.constant 5 : index
    %c0_53 = arith.constant 0 : index
    %c0_54 = arith.constant 0 : index
    %77 = vector.load %arg1[%c5, %c0_53, %c0_54] : memref<8x8x16xf32, #tpu.memory_space<vmem>>, vector<1x8x16xf32>
    %78 = vector.shape_cast %77 : vector<1x8x16xf32> to vector<8x16xf32>
    %79 = arith.truncf %78 : vector<8x16xf32> to vector<8x16xbf16>
    %c0_55 = arith.constant 0 : index
    %c0_56 = arith.constant 0 : index
    %80 = vector.load %arg2[%c0_55, %c0_56] : memref<16x512xbf16, #tpu.memory_space<vmem>>, vector<16x512xbf16>
    %cst_57 = arith.constant dense<0.000000e+00> : vector<8x512xf32>
    %81 = tpu.matmul %79, %80, %cst_57 {dimension_numbers = #tpu.dot_dimension_numbers<[1], [0], [0], [1], [0, 0, 1, 1], [], []>} : vector<8x16xbf16>, vector<16x512xbf16>, vector<8x512xf32> -> vector<8x512xf32>
    %c0_58 = arith.constant 0 : index
    %c0_59 = arith.constant 0 : index
    %82 = vector.load %arg4[%c0_58, %c0_59] : memref<1x512xf32, #tpu.memory_space<vmem>>, vector<1x512xf32>
    %83 = vector.broadcast %82 : vector<1x512xf32> to vector<8x512xf32>
    %84 = arith.addf %81, %83 : vector<8x512xf32>
    %c5_60 = arith.constant 5 : index
    %c0_61 = arith.constant 0 : index
    %c0_62 = arith.constant 0 : index
    %85 = vector.load %arg11[%c5_60, %c0_61, %c0_62] : memref<8x8x512xf32, #tpu.memory_space<vmem>>, vector<1x8x512xf32>
    %86 = vector.shape_cast %85 : vector<1x8x512xf32> to vector<8x512xf32>
    %87 = vector.shape_cast %84 : vector<8x512xf32> to vector<1x8x512xf32>
    tpu.vector_store %arg11[%c5_60, %c0_61, %c0_62], %87 {strides = array<i32>} : memref<8x8x512xf32, #tpu.memory_space<vmem>>, vector<1x8x512xf32>,
    %c6 = arith.constant 6 : index
    %c0_63 = arith.constant 0 : index
    %c0_64 = arith.constant 0 : index
    %88 = vector.load %arg1[%c6, %c0_63, %c0_64] : memref<8x8x16xf32, #tpu.memory_space<vmem>>, vector<1x8x16xf32>
    %89 = vector.shape_cast %88 : vector<1x8x16xf32> to vector<8x16xf32>
    %90 = arith.truncf %89 : vector<8x16xf32> to vector<8x16xbf16>
    %c0_65 = arith.constant 0 : index
    %c0_66 = arith.constant 0 : index
    %91 = vector.load %arg2[%c0_65, %c0_66] : memref<16x512xbf16, #tpu.memory_space<vmem>>, vector<16x512xbf16>
    %cst_67 = arith.constant dense<0.000000e+00> : vector<8x512xf32>
    %92 = tpu.matmul %90, %91, %cst_67 {dimension_numbers = #tpu.dot_dimension_numbers<[1], [0], [0], [1], [0, 0, 1, 1], [], []>} : vector<8x16xbf16>, vector<16x512xbf16>, vector<8x512xf32> -> vector<8x512xf32>
    %c0_68 = arith.constant 0 : index
    %c0_69 = arith.constant 0 : index
    %93 = vector.load %arg4[%c0_68, %c0_69] : memref<1x512xf32, #tpu.memory_space<vmem>>, vector<1x512xf32>
    %94 = vector.broadcast %93 : vector<1x512xf32> to vector<8x512xf32>
    %95 = arith.addf %92, %94 : vector<8x512xf32>
    %c6_70 = arith.constant 6 : index
    %c0_71 = arith.constant 0 : index
    %c0_72 = arith.constant 0 : index
    %96 = vector.load %arg11[%c6_70, %c0_71, %c0_72] : memref<8x8x512xf32, #tpu.memory_space<vmem>>, vector<1x8x512xf32>
    %97 = vector.shape_cast %96 : vector<1x8x512xf32> to vector<8x512xf32>
    %98 = vector.shape_cast %95 : vector<8x512xf32> to vector<1x8x512xf32>
    tpu.vector_store %arg11[%c6_70, %c0_71, %c0_72], %98 {strides = array<i32>} : memref<8x8x512xf32, #tpu.memory_space<vmem>>, vector<1x8x512xf32>,
    %c7 = arith.constant 7 : index
    %c0_73 = arith.constant 0 : index
    %c0_74 = arith.constant 0 : index
    %99 = vector.load %arg1[%c7, %c0_73, %c0_74] : memref<8x8x16xf32, #tpu.memory_space<vmem>>, vector<1x8x16xf32>
    %100 = vector.shape_cast %99 : vector<1x8x16xf32> to vector<8x16xf32>
    %101 = arith.truncf %100 : vector<8x16xf32> to vector<8x16xbf16>
    %c0_75 = arith.constant 0 : index
    %c0_76 = arith.constant 0 : index
    %102 = vector.load %arg2[%c0_75, %c0_76] : memref<16x512xbf16, #tpu.memory_space<vmem>>, vector<16x512xbf16>
    %cst_77 = arith.constant dense<0.000000e+00> : vector<8x512xf32>
    %103 = tpu.matmul %101, %102, %cst_77 {dimension_numbers = #tpu.dot_dimension_numbers<[1], [0], [0], [1], [0, 0, 1, 1], [], []>} : vector<8x16xbf16>, vector<16x512xbf16>, vector<8x512xf32> -> vector<8x512xf32>
    %c0_78 = arith.constant 0 : index
    %c0_79 = arith.constant 0 : index
    %104 = vector.load %arg4[%c0_78, %c0_79] : memref<1x512xf32, #tpu.memory_space<vmem>>, vector<1x512xf32>
    %105 = vector.broadcast %104 : vector<1x512xf32> to vector<8x512xf32>
    %106 = arith.addf %103, %105 : vector<8x512xf32>
    %c7_80 = arith.constant 7 : index
    %c0_81 = arith.constant 0 : index
    %c0_82 = arith.constant 0 : index
    %107 = vector.load %arg11[%c7_80, %c0_81, %c0_82] : memref<8x8x512xf32, #tpu.memory_space<vmem>>, vector<1x8x512xf32>
    %108 = vector.shape_cast %107 : vector<1x8x512xf32> to vector<8x512xf32>
    %109 = vector.shape_cast %106 : vector<8x512xf32> to vector<1x8x512xf32>
    tpu.vector_store %arg11[%c7_80, %c0_81, %c0_82], %109 {strides = array<i32>} : memref<8x8x512xf32, #tpu.memory_space<vmem>>, vector<1x8x512xf32>,
    %cst_83 = arith.constant 0.000000e+00 : f32
    %110 = vector.broadcast %cst_83 : f32 to vector<8x128xf32>
    %cst_84 = arith.constant 0.000000e+00 : f32
    %111 = vector.broadcast %cst_84 : f32 to vector<8x128xf32>
    %c0_85 = arith.constant 0 : index
    %c0_86 = arith.constant 0 : index
    %c0_87 = arith.constant 0 : index
    %112 = vector.load %arg11[%c0_85, %c0_86, %c0_87] : memref<8x8x512xf32, #tpu.memory_space<vmem>>, vector<1x8x512xf32>
    %113 = vector.shape_cast %112 : vector<1x8x512xf32> to vector<8x512xf32>
    %c7_88 = arith.constant 7 : index
    %c0_89 = arith.constant 0 : index
    %c0_90 = arith.constant 0 : index
    %114 = vector.load %arg11[%c7_88, %c0_89, %c0_90] : memref<8x8x512xf32, #tpu.memory_space<vmem>>, vector<1x8x512xf32>
    %115 = vector.shape_cast %114 : vector<1x8x512xf32> to vector<8x512xf32>
    %116 = vector.shape_cast %18 : vector<1x512xi1> to vector<1x512xi1>
    %117 = vector.broadcast %116 : vector<1x512xi1> to vector<8x512xi1>
    %118 = arith.select %117, %113, %115 : vector<8x512xi1>, vector<8x512xf32>
    %119 = arith.truncf %110 : vector<8x128xf32> to vector<8x128xbf16>
    %c0_91 = arith.constant 0 : index
    %c0_92 = arith.constant 0 : index
    %120 = vector.load %arg3[%c0_91, %c0_92] : memref<128x512xbf16, #tpu.memory_space<vmem>>, vector<128x512xbf16>
    %cst_93 = arith.constant dense<0.000000e+00> : vector<8x512xf32>
    %121 = tpu.matmul %119, %120, %cst_93 {dimension_numbers = #tpu.dot_dimension_numbers<[1], [0], [0], [1], [0, 0, 1, 1], [], []>} : vector<8x128xbf16>, vector<128x512xbf16>, vector<8x512xf32> -> vector<8x512xf32>
    %122 = arith.addf %118, %121 : vector<8x512xf32>
    %123 = vector.extract_strided_slice %122 {offsets = [0, 0], sizes = [8, 128], strides = [1, 1]} : vector<8x512xf32> to vector<8x128xf32>
    %124 = arith.negf %123 : vector<8x128xf32>
    %125 = math.exp %124 : vector<8x128xf32>
    %cst_94 = arith.constant 1.000000e+00 : f32
    %126 = vector.broadcast %cst_94 : f32 to vector<8x128xf32>
    %127 = arith.addf %126, %125 : vector<8x128xf32>
    %128 = arith.divf %126, %127 : vector<8x128xf32>
    %129 = vector.extract_strided_slice %122 {offsets = [0, 128], sizes = [8, 128], strides = [1, 1]} : vector<8x512xf32> to vector<8x128xf32>
    %130 = arith.negf %129 : vector<8x128xf32>
    %131 = math.exp %130 : vector<8x128xf32>
    %cst_95 = arith.constant 1.000000e+00 : f32
    %132 = vector.broadcast %cst_95 : f32 to vector<8x128xf32>
    %133 = arith.addf %132, %131 : vector<8x128xf32>
    %134 = arith.divf %132, %133 : vector<8x128xf32>
    %135 = vector.extract_strided_slice %122 {offsets = [0, 256], sizes = [8, 128], strides = [1, 1]} : vector<8x512xf32> to vector<8x128xf32>
    %136 = math.tanh %135 : vector<8x128xf32>
    %137 = vector.extract_strided_slice %122 {offsets = [0, 384], sizes = [8, 128], strides = [1, 1]} : vector<8x512xf32> to vector<8x128xf32>
    %138 = arith.negf %137 : vector<8x128xf32>
    %139 = math.exp %138 : vector<8x128xf32>
    %cst_96 = arith.constant 1.000000e+00 : f32
    %140 = vector.broadcast %cst_96 : f32 to vector<8x128xf32>
    %141 = arith.addf %140, %139 : vector<8x128xf32>
    %142 = arith.divf %140, %141 : vector<8x128xf32>
    %143 = arith.mulf %134, %111 : vector<8x128xf32>
    %144 = arith.mulf %128, %136 : vector<8x128xf32>
    %145 = arith.addf %143, %144 : vector<8x128xf32>
    %146 = math.tanh %145 : vector<8x128xf32>
    %147 = arith.mulf %142, %146 : vector<8x128xf32>
    %c0_97 = arith.constant 0 : index
    %c0_98 = arith.constant 0 : index
    %c0_99 = arith.constant 0 : index
    %148 = vector.load %arg13[%c0_97, %c0_98, %c0_99] : memref<8x8x128xf32, #tpu.memory_space<vmem>>, vector<1x8x128xf32>
    %149 = vector.shape_cast %148 : vector<1x8x128xf32> to vector<8x128xf32>
    %150 = vector.shape_cast %147 : vector<8x128xf32> to vector<1x8x128xf32>
    tpu.vector_store %arg13[%c0_97, %c0_98, %c0_99], %150 {strides = array<i32>} : memref<8x8x128xf32, #tpu.memory_space<vmem>>, vector<1x8x128xf32>,
    %c1_100 = arith.constant 1 : index
    %c0_101 = arith.constant 0 : index
    %c0_102 = arith.constant 0 : index
    %151 = vector.load %arg11[%c1_100, %c0_101, %c0_102] : memref<8x8x512xf32, #tpu.memory_space<vmem>>, vector<1x8x512xf32>
    %152 = vector.shape_cast %151 : vector<1x8x512xf32> to vector<8x512xf32>
    %c6_103 = arith.constant 6 : index
    %c0_104 = arith.constant 0 : index
    %c0_105 = arith.constant 0 : index
    %153 = vector.load %arg11[%c6_103, %c0_104, %c0_105] : memref<8x8x512xf32, #tpu.memory_space<vmem>>, vector<1x8x512xf32>
    %154 = vector.shape_cast %153 : vector<1x8x512xf32> to vector<8x512xf32>
    %155 = vector.shape_cast %18 : vector<1x512xi1> to vector<1x512xi1>
    %156 = vector.broadcast %155 : vector<1x512xi1> to vector<8x512xi1>
    %157 = arith.select %156, %152, %154 : vector<8x512xi1>, vector<8x512xf32>
    %158 = arith.truncf %147 : vector<8x128xf32> to vector<8x128xbf16>
    %c0_106 = arith.constant 0 : index
    %c0_107 = arith.constant 0 : index
    %159 = vector.load %arg3[%c0_106, %c0_107] : memref<128x512xbf16, #tpu.memory_space<vmem>>, vector<128x512xbf16>
    %cst_108 = arith.constant dense<0.000000e+00> : vector<8x512xf32>
    %160 = tpu.matmul %158, %159, %cst_108 {dimension_numbers = #tpu.dot_dimension_numbers<[1], [0], [0], [1], [0, 0, 1, 1], [], []>} : vector<8x128xbf16>, vector<128x512xbf16>, vector<8x512xf32> -> vector<8x512xf32>
    %161 = arith.addf %157, %160 : vector<8x512xf32>
    %162 = vector.extract_strided_slice %161 {offsets = [0, 0], sizes = [8, 128], strides = [1, 1]} : vector<8x512xf32> to vector<8x128xf32>
    %163 = arith.negf %162 : vector<8x128xf32>
    %164 = math.exp %163 : vector<8x128xf32>
    %cst_109 = arith.constant 1.000000e+00 : f32
    %165 = vector.broadcast %cst_109 : f32 to vector<8x128xf32>
    %166 = arith.addf %165, %164 : vector<8x128xf32>
    %167 = arith.divf %165, %166 : vector<8x128xf32>
    %168 = vector.extract_strided_slice %161 {offsets = [0, 128], sizes = [8, 128], strides = [1, 1]} : vector<8x512xf32> to vector<8x128xf32>
    %169 = arith.negf %168 : vector<8x128xf32>
    %170 = math.exp %169 : vector<8x128xf32>
    %cst_110 = arith.constant 1.000000e+00 : f32
    %171 = vector.broadcast %cst_110 : f32 to vector<8x128xf32>
    %172 = arith.addf %171, %170 : vector<8x128xf32>
    %173 = arith.divf %171, %172 : vector<8x128xf32>
    %174 = vector.extract_strided_slice %161 {offsets = [0, 256], sizes = [8, 128], strides = [1, 1]} : vector<8x512xf32> to vector<8x128xf32>
    %175 = math.tanh %174 : vector<8x128xf32>
    %176 = vector.extract_strided_slice %161 {offsets = [0, 384], sizes = [8, 128], strides = [1, 1]} : vector<8x512xf32> to vector<8x128xf32>
    %177 = arith.negf %176 : vector<8x128xf32>
    %178 = math.exp %177 : vector<8x128xf32>
    %cst_111 = arith.constant 1.000000e+00 : f32
    %179 = vector.broadcast %cst_111 : f32 to vector<8x128xf32>
    %180 = arith.addf %179, %178 : vector<8x128xf32>
    %181 = arith.divf %179, %180 : vector<8x128xf32>
    %182 = arith.mulf %173, %145 : vector<8x128xf32>
    %183 = arith.mulf %167, %175 : vector<8x128xf32>
    %184 = arith.addf %182, %183 : vector<8x128xf32>
    %185 = math.tanh %184 : vector<8x128xf32>
    %186 = arith.mulf %181, %185 : vector<8x128xf32>
    %c1_112 = arith.constant 1 : index
    %c0_113 = arith.constant 0 : index
    %c0_114 = arith.constant 0 : index
    %187 = vector.load %arg13[%c1_112, %c0_113, %c0_114] : memref<8x8x128xf32, #tpu.memory_space<vmem>>, vector<1x8x128xf32>
    %188 = vector.shape_cast %187 : vector<1x8x128xf32> to vector<8x128xf32>
    %189 = vector.shape_cast %186 : vector<8x128xf32> to vector<1x8x128xf32>
    tpu.vector_store %arg13[%c1_112, %c0_113, %c0_114], %189 {strides = array<i32>} : memref<8x8x128xf32, #tpu.memory_space<vmem>>, vector<1x8x128xf32>,
    %c2_115 = arith.constant 2 : index
    %c0_116 = arith.constant 0 : index
    %c0_117 = arith.constant 0 : index
    %190 = vector.load %arg11[%c2_115, %c0_116, %c0_117] : memref<8x8x512xf32, #tpu.memory_space<vmem>>, vector<1x8x512xf32>
    %191 = vector.shape_cast %190 : vector<1x8x512xf32> to vector<8x512xf32>
    %c5_118 = arith.constant 5 : index
    %c0_119 = arith.constant 0 : index
    %c0_120 = arith.constant 0 : index
    %192 = vector.load %arg11[%c5_118, %c0_119, %c0_120] : memref<8x8x512xf32, #tpu.memory_space<vmem>>, vector<1x8x512xf32>
    %193 = vector.shape_cast %192 : vector<1x8x512xf32> to vector<8x512xf32>
    %194 = vector.shape_cast %18 : vector<1x512xi1> to vector<1x512xi1>
    %195 = vector.broadcast %194 : vector<1x512xi1> to vector<8x512xi1>
    %196 = arith.select %195, %191, %193 : vector<8x512xi1>, vector<8x512xf32>
    %197 = arith.truncf %186 : vector<8x128xf32> to vector<8x128xbf16>
    %c0_121 = arith.constant 0 : index
    %c0_122 = arith.constant 0 : index
    %198 = vector.load %arg3[%c0_121, %c0_122] : memref<128x512xbf16, #tpu.memory_space<vmem>>, vector<128x512xbf16>
    %cst_123 = arith.constant dense<0.000000e+00> : vector<8x512xf32>
    %199 = tpu.matmul %197, %198, %cst_123 {dimension_numbers = #tpu.dot_dimension_numbers<[1], [0], [0], [1], [0, 0, 1, 1], [], []>} : vector<8x128xbf16>, vector<128x512xbf16>, vector<8x512xf32> -> vector<8x512xf32>
    %200 = arith.addf %196, %199 : vector<8x512xf32>
    %201 = vector.extract_strided_slice %200 {offsets = [0, 0], sizes = [8, 128], strides = [1, 1]} : vector<8x512xf32> to vector<8x128xf32>
    %202 = arith.negf %201 : vector<8x128xf32>
    %203 = math.exp %202 : vector<8x128xf32>
    %cst_124 = arith.constant 1.000000e+00 : f32
    %204 = vector.broadcast %cst_124 : f32 to vector<8x128xf32>
    %205 = arith.addf %204, %203 : vector<8x128xf32>
    %206 = arith.divf %204, %205 : vector<8x128xf32>
    %207 = vector.extract_strided_slice %200 {offsets = [0, 128], sizes = [8, 128], strides = [1, 1]} : vector<8x512xf32> to vector<8x128xf32>
    %208 = arith.negf %207 : vector<8x128xf32>
    %209 = math.exp %208 : vector<8x128xf32>
    %cst_125 = arith.constant 1.000000e+00 : f32
    %210 = vector.broadcast %cst_125 : f32 to vector<8x128xf32>
    %211 = arith.addf %210, %209 : vector<8x128xf32>
    %212 = arith.divf %210, %211 : vector<8x128xf32>
    %213 = vector.extract_strided_slice %200 {offsets = [0, 256], sizes = [8, 128], strides = [1, 1]} : vector<8x512xf32> to vector<8x128xf32>
    %214 = math.tanh %213 : vector<8x128xf32>
    %215 = vector.extract_strided_slice %200 {offsets = [0, 384], sizes = [8, 128], strides = [1, 1]} : vector<8x512xf32> to vector<8x128xf32>
    %216 = arith.negf %215 : vector<8x128xf32>
    %217 = math.exp %216 : vector<8x128xf32>
    %cst_126 = arith.constant 1.000000e+00 : f32
    %218 = vector.broadcast %cst_126 : f32 to vector<8x128xf32>
    %219 = arith.addf %218, %217 : vector<8x128xf32>
    %220 = arith.divf %218, %219 : vector<8x128xf32>
    %221 = arith.mulf %212, %184 : vector<8x128xf32>
    %222 = arith.mulf %206, %214 : vector<8x128xf32>
    %223 = arith.addf %221, %222 : vector<8x128xf32>
    %224 = math.tanh %223 : vector<8x128xf32>
    %225 = arith.mulf %220, %224 : vector<8x128xf32>
    %c2_127 = arith.constant 2 : index
    %c0_128 = arith.constant 0 : index
    %c0_129 = arith.constant 0 : index
    %226 = vector.load %arg13[%c2_127, %c0_128, %c0_129] : memref<8x8x128xf32, #tpu.memory_space<vmem>>, vector<1x8x128xf32>
    %227 = vector.shape_cast %226 : vector<1x8x128xf32> to vector<8x128xf32>
    %228 = vector.shape_cast %225 : vector<8x128xf32> to vector<1x8x128xf32>
    tpu.vector_store %arg13[%c2_127, %c0_128, %c0_129], %228 {strides = array<i32>} : memref<8x8x128xf32, #tpu.memory_space<vmem>>, vector<1x8x128xf32>,
    %c3_130 = arith.constant 3 : index
    %c0_131 = arith.constant 0 : index
    %c0_132 = arith.constant 0 : index
    %229 = vector.load %arg11[%c3_130, %c0_131, %c0_132] : memref<8x8x512xf32, #tpu.memory_space<vmem>>, vector<1x8x512xf32>
    %230 = vector.shape_cast %229 : vector<1x8x512xf32> to vector<8x512xf32>
    %c4_133 = arith.constant 4 : index
    %c0_134 = arith.constant 0 : index
    %c0_135 = arith.constant 0 : index
    %231 = vector.load %arg11[%c4_133, %c0_134, %c0_135] : memref<8x8x512xf32, #tpu.memory_space<vmem>>, vector<1x8x512xf32>
    %232 = vector.shape_cast %231 : vector<1x8x512xf32> to vector<8x512xf32>
    %233 = vector.shape_cast %18 : vector<1x512xi1> to vector<1x512xi1>
    %234 = vector.broadcast %233 : vector<1x512xi1> to vector<8x512xi1>
    %235 = arith.select %234, %230, %232 : vector<8x512xi1>, vector<8x512xf32>
    %236 = arith.truncf %225 : vector<8x128xf32> to vector<8x128xbf16>
    %c0_136 = arith.constant 0 : index
    %c0_137 = arith.constant 0 : index
    %237 = vector.load %arg3[%c0_136, %c0_137] : memref<128x512xbf16, #tpu.memory_space<vmem>>, vector<128x512xbf16>
    %cst_138 = arith.constant dense<0.000000e+00> : vector<8x512xf32>
    %238 = tpu.matmul %236, %237, %cst_138 {dimension_numbers = #tpu.dot_dimension_numbers<[1], [0], [0], [1], [0, 0, 1, 1], [], []>} : vector<8x128xbf16>, vector<128x512xbf16>, vector<8x512xf32> -> vector<8x512xf32>
    %239 = arith.addf %235, %238 : vector<8x512xf32>
    %240 = vector.extract_strided_slice %239 {offsets = [0, 0], sizes = [8, 128], strides = [1, 1]} : vector<8x512xf32> to vector<8x128xf32>
    %241 = arith.negf %240 : vector<8x128xf32>
    %242 = math.exp %241 : vector<8x128xf32>
    %cst_139 = arith.constant 1.000000e+00 : f32
    %243 = vector.broadcast %cst_139 : f32 to vector<8x128xf32>
    %244 = arith.addf %243, %242 : vector<8x128xf32>
    %245 = arith.divf %243, %244 : vector<8x128xf32>
    %246 = vector.extract_strided_slice %239 {offsets = [0, 128], sizes = [8, 128], strides = [1, 1]} : vector<8x512xf32> to vector<8x128xf32>
    %247 = arith.negf %246 : vector<8x128xf32>
    %248 = math.exp %247 : vector<8x128xf32>
    %cst_140 = arith.constant 1.000000e+00 : f32
    %249 = vector.broadcast %cst_140 : f32 to vector<8x128xf32>
    %250 = arith.addf %249, %248 : vector<8x128xf32>
    %251 = arith.divf %249, %250 : vector<8x128xf32>
    %252 = vector.extract_strided_slice %239 {offsets = [0, 256], sizes = [8, 128], strides = [1, 1]} : vector<8x512xf32> to vector<8x128xf32>
    %253 = math.tanh %252 : vector<8x128xf32>
    %254 = vector.extract_strided_slice %239 {offsets = [0, 384], sizes = [8, 128], strides = [1, 1]} : vector<8x512xf32> to vector<8x128xf32>
    %255 = arith.negf %254 : vector<8x128xf32>
    %256 = math.exp %255 : vector<8x128xf32>
    %cst_141 = arith.constant 1.000000e+00 : f32
    %257 = vector.broadcast %cst_141 : f32 to vector<8x128xf32>
    %258 = arith.addf %257, %256 : vector<8x128xf32>
    %259 = arith.divf %257, %258 : vector<8x128xf32>
    %260 = arith.mulf %251, %223 : vector<8x128xf32>
    %261 = arith.mulf %245, %253 : vector<8x128xf32>
    %262 = arith.addf %260, %261 : vector<8x128xf32>
    %263 = math.tanh %262 : vector<8x128xf32>
    %264 = arith.mulf %259, %263 : vector<8x128xf32>
    %c3_142 = arith.constant 3 : index
    %c0_143 = arith.constant 0 : index
    %c0_144 = arith.constant 0 : index
    %265 = vector.load %arg13[%c3_142, %c0_143, %c0_144] : memref<8x8x128xf32, #tpu.memory_space<vmem>>, vector<1x8x128xf32>
    %266 = vector.shape_cast %265 : vector<1x8x128xf32> to vector<8x128xf32>
    %267 = vector.shape_cast %264 : vector<8x128xf32> to vector<1x8x128xf32>
    tpu.vector_store %arg13[%c3_142, %c0_143, %c0_144], %267 {strides = array<i32>} : memref<8x8x128xf32, #tpu.memory_space<vmem>>, vector<1x8x128xf32>,
    %c4_145 = arith.constant 4 : index
    %c0_146 = arith.constant 0 : index
    %c0_147 = arith.constant 0 : index
    %268 = vector.load %arg11[%c4_145, %c0_146, %c0_147] : memref<8x8x512xf32, #tpu.memory_space<vmem>>, vector<1x8x512xf32>
    %269 = vector.shape_cast %268 : vector<1x8x512xf32> to vector<8x512xf32>
    %c3_148 = arith.constant 3 : index
    %c0_149 = arith.constant 0 : index
    %c0_150 = arith.constant 0 : index
    %270 = vector.load %arg11[%c3_148, %c0_149, %c0_150] : memref<8x8x512xf32, #tpu.memory_space<vmem>>, vector<1x8x512xf32>
    %271 = vector.shape_cast %270 : vector<1x8x512xf32> to vector<8x512xf32>
    %272 = vector.shape_cast %18 : vector<1x512xi1> to vector<1x512xi1>
    %273 = vector.broadcast %272 : vector<1x512xi1> to vector<8x512xi1>
    %274 = arith.select %273, %269, %271 : vector<8x512xi1>, vector<8x512xf32>
    %275 = arith.truncf %264 : vector<8x128xf32> to vector<8x128xbf16>
    %c0_151 = arith.constant 0 : index
    %c0_152 = arith.constant 0 : index
    %276 = vector.load %arg3[%c0_151, %c0_152] : memref<128x512xbf16, #tpu.memory_space<vmem>>, vector<128x512xbf16>
    %cst_153 = arith.constant dense<0.000000e+00> : vector<8x512xf32>
    %277 = tpu.matmul %275, %276, %cst_153 {dimension_numbers = #tpu.dot_dimension_numbers<[1], [0], [0], [1], [0, 0, 1, 1], [], []>} : vector<8x128xbf16>, vector<128x512xbf16>, vector<8x512xf32> -> vector<8x512xf32>
    %278 = arith.addf %274, %277 : vector<8x512xf32>
    %279 = vector.extract_strided_slice %278 {offsets = [0, 0], sizes = [8, 128], strides = [1, 1]} : vector<8x512xf32> to vector<8x128xf32>
    %280 = arith.negf %279 : vector<8x128xf32>
    %281 = math.exp %280 : vector<8x128xf32>
    %cst_154 = arith.constant 1.000000e+00 : f32
    %282 = vector.broadcast %cst_154 : f32 to vector<8x128xf32>
    %283 = arith.addf %282, %281 : vector<8x128xf32>
    %284 = arith.divf %282, %283 : vector<8x128xf32>
    %285 = vector.extract_strided_slice %278 {offsets = [0, 128], sizes = [8, 128], strides = [1, 1]} : vector<8x512xf32> to vector<8x128xf32>
    %286 = arith.negf %285 : vector<8x128xf32>
    %287 = math.exp %286 : vector<8x128xf32>
    %cst_155 = arith.constant 1.000000e+00 : f32
    %288 = vector.broadcast %cst_155 : f32 to vector<8x128xf32>
    %289 = arith.addf %288, %287 : vector<8x128xf32>
    %290 = arith.divf %288, %289 : vector<8x128xf32>
    %291 = vector.extract_strided_slice %278 {offsets = [0, 256], sizes = [8, 128], strides = [1, 1]} : vector<8x512xf32> to vector<8x128xf32>
    %292 = math.tanh %291 : vector<8x128xf32>
    %293 = vector.extract_strided_slice %278 {offsets = [0, 384], sizes = [8, 128], strides = [1, 1]} : vector<8x512xf32> to vector<8x128xf32>
    %294 = arith.negf %293 : vector<8x128xf32>
    %295 = math.exp %294 : vector<8x128xf32>
    %cst_156 = arith.constant 1.000000e+00 : f32
    %296 = vector.broadcast %cst_156 : f32 to vector<8x128xf32>
    %297 = arith.addf %296, %295 : vector<8x128xf32>
    %298 = arith.divf %296, %297 : vector<8x128xf32>
    %299 = arith.mulf %290, %262 : vector<8x128xf32>
    %300 = arith.mulf %284, %292 : vector<8x128xf32>
    %301 = arith.addf %299, %300 : vector<8x128xf32>
    %302 = math.tanh %301 : vector<8x128xf32>
    %303 = arith.mulf %298, %302 : vector<8x128xf32>
    %c4_157 = arith.constant 4 : index
    %c0_158 = arith.constant 0 : index
    %c0_159 = arith.constant 0 : index
    %304 = vector.load %arg13[%c4_157, %c0_158, %c0_159] : memref<8x8x128xf32, #tpu.memory_space<vmem>>, vector<1x8x128xf32>
    %305 = vector.shape_cast %304 : vector<1x8x128xf32> to vector<8x128xf32>
    %306 = vector.shape_cast %303 : vector<8x128xf32> to vector<1x8x128xf32>
    tpu.vector_store %arg13[%c4_157, %c0_158, %c0_159], %306 {strides = array<i32>} : memref<8x8x128xf32, #tpu.memory_space<vmem>>, vector<1x8x128xf32>,
    %c5_160 = arith.constant 5 : index
    %c0_161 = arith.constant 0 : index
    %c0_162 = arith.constant 0 : index
    %307 = vector.load %arg11[%c5_160, %c0_161, %c0_162] : memref<8x8x512xf32, #tpu.memory_space<vmem>>, vector<1x8x512xf32>
    %308 = vector.shape_cast %307 : vector<1x8x512xf32> to vector<8x512xf32>
    %c2_163 = arith.constant 2 : index
    %c0_164 = arith.constant 0 : index
    %c0_165 = arith.constant 0 : index
    %309 = vector.load %arg11[%c2_163, %c0_164, %c0_165] : memref<8x8x512xf32, #tpu.memory_space<vmem>>, vector<1x8x512xf32>
    %310 = vector.shape_cast %309 : vector<1x8x512xf32> to vector<8x512xf32>
    %311 = vector.shape_cast %18 : vector<1x512xi1> to vector<1x512xi1>
    %312 = vector.broadcast %311 : vector<1x512xi1> to vector<8x512xi1>
    %313 = arith.select %312, %308, %310 : vector<8x512xi1>, vector<8x512xf32>
    %314 = arith.truncf %303 : vector<8x128xf32> to vector<8x128xbf16>
    %c0_166 = arith.constant 0 : index
    %c0_167 = arith.constant 0 : index
    %315 = vector.load %arg3[%c0_166, %c0_167] : memref<128x512xbf16, #tpu.memory_space<vmem>>, vector<128x512xbf16>
    %cst_168 = arith.constant dense<0.000000e+00> : vector<8x512xf32>
    %316 = tpu.matmul %314, %315, %cst_168 {dimension_numbers = #tpu.dot_dimension_numbers<[1], [0], [0], [1], [0, 0, 1, 1], [], []>} : vector<8x128xbf16>, vector<128x512xbf16>, vector<8x512xf32> -> vector<8x512xf32>
    %317 = arith.addf %313, %316 : vector<8x512xf32>
    %318 = vector.extract_strided_slice %317 {offsets = [0, 0], sizes = [8, 128], strides = [1, 1]} : vector<8x512xf32> to vector<8x128xf32>
    %319 = arith.negf %318 : vector<8x128xf32>
    %320 = math.exp %319 : vector<8x128xf32>
    %cst_169 = arith.constant 1.000000e+00 : f32
    %321 = vector.broadcast %cst_169 : f32 to vector<8x128xf32>
    %322 = arith.addf %321, %320 : vector<8x128xf32>
    %323 = arith.divf %321, %322 : vector<8x128xf32>
    %324 = vector.extract_strided_slice %317 {offsets = [0, 128], sizes = [8, 128], strides = [1, 1]} : vector<8x512xf32> to vector<8x128xf32>
    %325 = arith.negf %324 : vector<8x128xf32>
    %326 = math.exp %325 : vector<8x128xf32>
    %cst_170 = arith.constant 1.000000e+00 : f32
    %327 = vector.broadcast %cst_170 : f32 to vector<8x128xf32>
    %328 = arith.addf %327, %326 : vector<8x128xf32>
    %329 = arith.divf %327, %328 : vector<8x128xf32>
    %330 = vector.extract_strided_slice %317 {offsets = [0, 256], sizes = [8, 128], strides = [1, 1]} : vector<8x512xf32> to vector<8x128xf32>
    %331 = math.tanh %330 : vector<8x128xf32>
    %332 = vector.extract_strided_slice %317 {offsets = [0, 384], sizes = [8, 128], strides = [1, 1]} : vector<8x512xf32> to vector<8x128xf32>
    %333 = arith.negf %332 : vector<8x128xf32>
    %334 = math.exp %333 : vector<8x128xf32>
    %cst_171 = arith.constant 1.000000e+00 : f32
    %335 = vector.broadcast %cst_171 : f32 to vector<8x128xf32>
    %336 = arith.addf %335, %334 : vector<8x128xf32>
    %337 = arith.divf %335, %336 : vector<8x128xf32>
    %338 = arith.mulf %329, %301 : vector<8x128xf32>
    %339 = arith.mulf %323, %331 : vector<8x128xf32>
    %340 = arith.addf %338, %339 : vector<8x128xf32>
    %341 = math.tanh %340 : vector<8x128xf32>
    %342 = arith.mulf %337, %341 : vector<8x128xf32>
    %c5_172 = arith.constant 5 : index
    %c0_173 = arith.constant 0 : index
    %c0_174 = arith.constant 0 : index
    %343 = vector.load %arg13[%c5_172, %c0_173, %c0_174] : memref<8x8x128xf32, #tpu.memory_space<vmem>>, vector<1x8x128xf32>
    %344 = vector.shape_cast %343 : vector<1x8x128xf32> to vector<8x128xf32>
    %345 = vector.shape_cast %342 : vector<8x128xf32> to vector<1x8x128xf32>
    tpu.vector_store %arg13[%c5_172, %c0_173, %c0_174], %345 {strides = array<i32>} : memref<8x8x128xf32, #tpu.memory_space<vmem>>, vector<1x8x128xf32>,
    %c6_175 = arith.constant 6 : index
    %c0_176 = arith.constant 0 : index
    %c0_177 = arith.constant 0 : index
    %346 = vector.load %arg11[%c6_175, %c0_176, %c0_177] : memref<8x8x512xf32, #tpu.memory_space<vmem>>, vector<1x8x512xf32>
    %347 = vector.shape_cast %346 : vector<1x8x512xf32> to vector<8x512xf32>
    %c1_178 = arith.constant 1 : index
    %c0_179 = arith.constant 0 : index
    %c0_180 = arith.constant 0 : index
    %348 = vector.load %arg11[%c1_178, %c0_179, %c0_180] : memref<8x8x512xf32, #tpu.memory_space<vmem>>, vector<1x8x512xf32>
    %349 = vector.shape_cast %348 : vector<1x8x512xf32> to vector<8x512xf32>
    %350 = vector.shape_cast %18 : vector<1x512xi1> to vector<1x512xi1>
    %351 = vector.broadcast %350 : vector<1x512xi1> to vector<8x512xi1>
    %352 = arith.select %351, %347, %349 : vector<8x512xi1>, vector<8x512xf32>
    %353 = arith.truncf %342 : vector<8x128xf32> to vector<8x128xbf16>
    %c0_181 = arith.constant 0 : index
    %c0_182 = arith.constant 0 : index
    %354 = vector.load %arg3[%c0_181, %c0_182] : memref<128x512xbf16, #tpu.memory_space<vmem>>, vector<128x512xbf16>
    %cst_183 = arith.constant dense<0.000000e+00> : vector<8x512xf32>
    %355 = tpu.matmul %353, %354, %cst_183 {dimension_numbers = #tpu.dot_dimension_numbers<[1], [0], [0], [1], [0, 0, 1, 1], [], []>} : vector<8x128xbf16>, vector<128x512xbf16>, vector<8x512xf32> -> vector<8x512xf32>
    %356 = arith.addf %352, %355 : vector<8x512xf32>
    %357 = vector.extract_strided_slice %356 {offsets = [0, 0], sizes = [8, 128], strides = [1, 1]} : vector<8x512xf32> to vector<8x128xf32>
    %358 = arith.negf %357 : vector<8x128xf32>
    %359 = math.exp %358 : vector<8x128xf32>
    %cst_184 = arith.constant 1.000000e+00 : f32
    %360 = vector.broadcast %cst_184 : f32 to vector<8x128xf32>
    %361 = arith.addf %360, %359 : vector<8x128xf32>
    %362 = arith.divf %360, %361 : vector<8x128xf32>
    %363 = vector.extract_strided_slice %356 {offsets = [0, 128], sizes = [8, 128], strides = [1, 1]} : vector<8x512xf32> to vector<8x128xf32>
    %364 = arith.negf %363 : vector<8x128xf32>
    %365 = math.exp %364 : vector<8x128xf32>
    %cst_185 = arith.constant 1.000000e+00 : f32
    %366 = vector.broadcast %cst_185 : f32 to vector<8x128xf32>
    %367 = arith.addf %366, %365 : vector<8x128xf32>
    %368 = arith.divf %366, %367 : vector<8x128xf32>
    %369 = vector.extract_strided_slice %356 {offsets = [0, 256], sizes = [8, 128], strides = [1, 1]} : vector<8x512xf32> to vector<8x128xf32>
    %370 = math.tanh %369 : vector<8x128xf32>
    %371 = vector.extract_strided_slice %356 {offsets = [0, 384], sizes = [8, 128], strides = [1, 1]} : vector<8x512xf32> to vector<8x128xf32>
    %372 = arith.negf %371 : vector<8x128xf32>
    %373 = math.exp %372 : vector<8x128xf32>
    %cst_186 = arith.constant 1.000000e+00 : f32
    %374 = vector.broadcast %cst_186 : f32 to vector<8x128xf32>
    %375 = arith.addf %374, %373 : vector<8x128xf32>
    %376 = arith.divf %374, %375 : vector<8x128xf32>
    %377 = arith.mulf %368, %340 : vector<8x128xf32>
    %378 = arith.mulf %362, %370 : vector<8x128xf32>
    %379 = arith.addf %377, %378 : vector<8x128xf32>
    %380 = math.tanh %379 : vector<8x128xf32>
    %381 = arith.mulf %376, %380 : vector<8x128xf32>
    %c6_187 = arith.constant 6 : index
    %c0_188 = arith.constant 0 : index
    %c0_189 = arith.constant 0 : index
    %382 = vector.load %arg13[%c6_187, %c0_188, %c0_189] : memref<8x8x128xf32, #tpu.memory_space<vmem>>, vector<1x8x128xf32>
    %383 = vector.shape_cast %382 : vector<1x8x128xf32> to vector<8x128xf32>
    %384 = vector.shape_cast %381 : vector<8x128xf32> to vector<1x8x128xf32>
    tpu.vector_store %arg13[%c6_187, %c0_188, %c0_189], %384 {strides = array<i32>} : memref<8x8x128xf32, #tpu.memory_space<vmem>>, vector<1x8x128xf32>,
    %c7_190 = arith.constant 7 : index
    %c0_191 = arith.constant 0 : index
    %c0_192 = arith.constant 0 : index
    %385 = vector.load %arg11[%c7_190, %c0_191, %c0_192] : memref<8x8x512xf32, #tpu.memory_space<vmem>>, vector<1x8x512xf32>
    %386 = vector.shape_cast %385 : vector<1x8x512xf32> to vector<8x512xf32>
    %c0_193 = arith.constant 0 : index
    %c0_194 = arith.constant 0 : index
    %c0_195 = arith.constant 0 : index
    %387 = vector.load %arg11[%c0_193, %c0_194, %c0_195] : memref<8x8x512xf32, #tpu.memory_space<vmem>>, vector<1x8x512xf32>
    %388 = vector.shape_cast %387 : vector<1x8x512xf32> to vector<8x512xf32>
    %389 = vector.shape_cast %18 : vector<1x512xi1> to vector<1x512xi1>
    %390 = vector.broadcast %389 : vector<1x512xi1> to vector<8x512xi1>
    %391 = arith.select %390, %386, %388 : vector<8x512xi1>, vector<8x512xf32>
    %392 = arith.truncf %381 : vector<8x128xf32> to vector<8x128xbf16>
    %c0_196 = arith.constant 0 : index
    %c0_197 = arith.constant 0 : index
    %393 = vector.load %arg3[%c0_196, %c0_197] : memref<128x512xbf16, #tpu.memory_space<vmem>>, vector<128x512xbf16>
    %cst_198 = arith.constant dense<0.000000e+00> : vector<8x512xf32>
    %394 = tpu.matmul %392, %393, %cst_198 {dimension_numbers = #tpu.dot_dimension_numbers<[1], [0], [0], [1], [0, 0, 1, 1], [], []>} : vector<8x128xbf16>, vector<128x512xbf16>, vector<8x512xf32> -> vector<8x512xf32>
    %395 = arith.addf %391, %394 : vector<8x512xf32>
    %396 = vector.extract_strided_slice %395 {offsets = [0, 0], sizes = [8, 128], strides = [1, 1]} : vector<8x512xf32> to vector<8x128xf32>
    %397 = arith.negf %396 : vector<8x128xf32>
    %398 = math.exp %397 : vector<8x128xf32>
    %cst_199 = arith.constant 1.000000e+00 : f32
    %399 = vector.broadcast %cst_199 : f32 to vector<8x128xf32>
    %400 = arith.addf %399, %398 : vector<8x128xf32>
    %401 = arith.divf %399, %400 : vector<8x128xf32>
    %402 = vector.extract_strided_slice %395 {offsets = [0, 128], sizes = [8, 128], strides = [1, 1]} : vector<8x512xf32> to vector<8x128xf32>
    %403 = arith.negf %402 : vector<8x128xf32>
    %404 = math.exp %403 : vector<8x128xf32>
    %cst_200 = arith.constant 1.000000e+00 : f32
    %405 = vector.broadcast %cst_200 : f32 to vector<8x128xf32>
    %406 = arith.addf %405, %404 : vector<8x128xf32>
    %407 = arith.divf %405, %406 : vector<8x128xf32>
    %408 = vector.extract_strided_slice %395 {offsets = [0, 256], sizes = [8, 128], strides = [1, 1]} : vector<8x512xf32> to vector<8x128xf32>
    %409 = math.tanh %408 : vector<8x128xf32>
    %410 = vector.extract_strided_slice %395 {offsets = [0, 384], sizes = [8, 128], strides = [1, 1]} : vector<8x512xf32> to vector<8x128xf32>
    %411 = arith.negf %410 : vector<8x128xf32>
    %412 = math.exp %411 : vector<8x128xf32>
    %cst_201 = arith.constant 1.000000e+00 : f32
    %413 = vector.broadcast %cst_201 : f32 to vector<8x128xf32>
    %414 = arith.addf %413, %412 : vector<8x128xf32>
    %415 = arith.divf %413, %414 : vector<8x128xf32>
    %416 = arith.mulf %407, %379 : vector<8x128xf32>
    %417 = arith.mulf %401, %409 : vector<8x128xf32>
    %418 = arith.addf %416, %417 : vector<8x128xf32>
    %419 = math.tanh %418 : vector<8x128xf32>
    %420 = arith.mulf %415, %419 : vector<8x128xf32>
    %c7_202 = arith.constant 7 : index
    %c0_203 = arith.constant 0 : index
    %c0_204 = arith.constant 0 : index
    %421 = vector.load %arg13[%c7_202, %c0_203, %c0_204] : memref<8x8x128xf32, #tpu.memory_space<vmem>>, vector<1x8x128xf32>
    %422 = vector.shape_cast %421 : vector<1x8x128xf32> to vector<8x128xf32>
    %423 = vector.shape_cast %420 : vector<8x128xf32> to vector<1x8x128xf32>
    tpu.vector_store %arg13[%c7_202, %c0_203, %c0_204], %423 {strides = array<i32>} : memref<8x8x128xf32, #tpu.memory_space<vmem>>, vector<1x8x128xf32>,
    %c0_205 = arith.constant 0 : index
    %c0_206 = arith.constant 0 : index
    %c0_207 = arith.constant 0 : index
    %424 = vector.load %arg13[%c0_205, %c0_206, %c0_207] : memref<8x8x128xf32, #tpu.memory_space<vmem>>, vector<1x8x128xf32>
    %425 = vector.shape_cast %424 : vector<1x8x128xf32> to vector<8x128xf32>
    %c7_208 = arith.constant 7 : index
    %c0_209 = arith.constant 0 : index
    %c0_210 = arith.constant 0 : index
    %426 = vector.load %arg13[%c7_208, %c0_209, %c0_210] : memref<8x8x128xf32, #tpu.memory_space<vmem>>, vector<1x8x128xf32>
    %427 = vector.shape_cast %426 : vector<1x8x128xf32> to vector<8x128xf32>
    %428 = vector.shape_cast %21 : vector<1x128xi1> to vector<1x128xi1>
    %429 = vector.broadcast %428 : vector<1x128xi1> to vector<8x128xi1>
    %430 = arith.select %429, %425, %427 : vector<8x128xi1>, vector<8x128xf32>
    %431 = arith.truncf %430 : vector<8x128xf32> to vector<8x128xbf16>
    %c0_211 = arith.constant 0 : index
    %c0_212 = arith.constant 0 : index
    %432 = vector.load %arg5[%c0_211, %c0_212] : memref<128x512xbf16, #tpu.memory_space<vmem>>, vector<128x512xbf16>
    %cst_213 = arith.constant dense<0.000000e+00> : vector<8x512xf32>
    %433 = tpu.matmul %431, %432, %cst_213 {dimension_numbers = #tpu.dot_dimension_numbers<[1], [0], [0], [1], [0, 0, 1, 1], [], []>} : vector<8x128xbf16>, vector<128x512xbf16>, vector<8x512xf32> -> vector<8x512xf32>
    %c0_214 = arith.constant 0 : index
    %c0_215 = arith.constant 0 : index
    %434 = vector.load %arg7[%c0_214, %c0_215] : memref<1x512xf32, #tpu.memory_space<vmem>>, vector<1x512xf32>
    %435 = vector.broadcast %434 : vector<1x512xf32> to vector<8x512xf32>
    %436 = arith.addf %433, %435 : vector<8x512xf32>
    %c0_216 = arith.constant 0 : index
    %c0_217 = arith.constant 0 : index
    %c0_218 = arith.constant 0 : index
    %437 = vector.load %arg12[%c0_216, %c0_217, %c0_218] : memref<8x8x512xf32, #tpu.memory_space<vmem>>, vector<1x8x512xf32>
    %438 = vector.shape_cast %437 : vector<1x8x512xf32> to vector<8x512xf32>
    %439 = vector.shape_cast %436 : vector<8x512xf32> to vector<1x8x512xf32>
    tpu.vector_store %arg12[%c0_216, %c0_217, %c0_218], %439 {strides = array<i32>} : memref<8x8x512xf32, #tpu.memory_space<vmem>>, vector<1x8x512xf32>,
    %c1_219 = arith.constant 1 : index
    %c0_220 = arith.constant 0 : index
    %c0_221 = arith.constant 0 : index
    %440 = vector.load %arg13[%c1_219, %c0_220, %c0_221] : memref<8x8x128xf32, #tpu.memory_space<vmem>>, vector<1x8x128xf32>
    %441 = vector.shape_cast %440 : vector<1x8x128xf32> to vector<8x128xf32>
    %c6_222 = arith.constant 6 : index
    %c0_223 = arith.constant 0 : index
    %c0_224 = arith.constant 0 : index
    %442 = vector.load %arg13[%c6_222, %c0_223, %c0_224] : memref<8x8x128xf32, #tpu.memory_space<vmem>>, vector<1x8x128xf32>
    %443 = vector.shape_cast %442 : vector<1x8x128xf32> to vector<8x128xf32>
    %444 = vector.shape_cast %21 : vector<1x128xi1> to vector<1x128xi1>
    %445 = vector.broadcast %444 : vector<1x128xi1> to vector<8x128xi1>
    %446 = arith.select %445, %441, %443 : vector<8x128xi1>, vector<8x128xf32>
    %447 = arith.truncf %446 : vector<8x128xf32> to vector<8x128xbf16>
    %c0_225 = arith.constant 0 : index
    %c0_226 = arith.constant 0 : index
    %448 = vector.load %arg5[%c0_225, %c0_226] : memref<128x512xbf16, #tpu.memory_space<vmem>>, vector<128x512xbf16>
    %cst_227 = arith.constant dense<0.000000e+00> : vector<8x512xf32>
    %449 = tpu.matmul %447, %448, %cst_227 {dimension_numbers = #tpu.dot_dimension_numbers<[1], [0], [0], [1], [0, 0, 1, 1], [], []>} : vector<8x128xbf16>, vector<128x512xbf16>, vector<8x512xf32> -> vector<8x512xf32>
    %c0_228 = arith.constant 0 : index
    %c0_229 = arith.constant 0 : index
    %450 = vector.load %arg7[%c0_228, %c0_229] : memref<1x512xf32, #tpu.memory_space<vmem>>, vector<1x512xf32>
    %451 = vector.broadcast %450 : vector<1x512xf32> to vector<8x512xf32>
    %452 = arith.addf %449, %451 : vector<8x512xf32>
    %c1_230 = arith.constant 1 : index
    %c0_231 = arith.constant 0 : index
    %c0_232 = arith.constant 0 : index
    %453 = vector.load %arg12[%c1_230, %c0_231, %c0_232] : memref<8x8x512xf32, #tpu.memory_space<vmem>>, vector<1x8x512xf32>
    %454 = vector.shape_cast %453 : vector<1x8x512xf32> to vector<8x512xf32>
    %455 = vector.shape_cast %452 : vector<8x512xf32> to vector<1x8x512xf32>
    tpu.vector_store %arg12[%c1_230, %c0_231, %c0_232], %455 {strides = array<i32>} : memref<8x8x512xf32, #tpu.memory_space<vmem>>, vector<1x8x512xf32>,
    %c2_233 = arith.constant 2 : index
    %c0_234 = arith.constant 0 : index
    %c0_235 = arith.constant 0 : index
    %456 = vector.load %arg13[%c2_233, %c0_234, %c0_235] : memref<8x8x128xf32, #tpu.memory_space<vmem>>, vector<1x8x128xf32>
    %457 = vector.shape_cast %456 : vector<1x8x128xf32> to vector<8x128xf32>
    %c5_236 = arith.constant 5 : index
    %c0_237 = arith.constant 0 : index
    %c0_238 = arith.constant 0 : index
    %458 = vector.load %arg13[%c5_236, %c0_237, %c0_238] : memref<8x8x128xf32, #tpu.memory_space<vmem>>, vector<1x8x128xf32>
    %459 = vector.shape_cast %458 : vector<1x8x128xf32> to vector<8x128xf32>
    %460 = vector.shape_cast %21 : vector<1x128xi1> to vector<1x128xi1>
    %461 = vector.broadcast %460 : vector<1x128xi1> to vector<8x128xi1>
    %462 = arith.select %461, %457, %459 : vector<8x128xi1>, vector<8x128xf32>
    %463 = arith.truncf %462 : vector<8x128xf32> to vector<8x128xbf16>
    %c0_239 = arith.constant 0 : index
    %c0_240 = arith.constant 0 : index
    %464 = vector.load %arg5[%c0_239, %c0_240] : memref<128x512xbf16, #tpu.memory_space<vmem>>, vector<128x512xbf16>
    %cst_241 = arith.constant dense<0.000000e+00> : vector<8x512xf32>
    %465 = tpu.matmul %463, %464, %cst_241 {dimension_numbers = #tpu.dot_dimension_numbers<[1], [0], [0], [1], [0, 0, 1, 1], [], []>} : vector<8x128xbf16>, vector<128x512xbf16>, vector<8x512xf32> -> vector<8x512xf32>
    %c0_242 = arith.constant 0 : index
    %c0_243 = arith.constant 0 : index
    %466 = vector.load %arg7[%c0_242, %c0_243] : memref<1x512xf32, #tpu.memory_space<vmem>>, vector<1x512xf32>
    %467 = vector.broadcast %466 : vector<1x512xf32> to vector<8x512xf32>
    %468 = arith.addf %465, %467 : vector<8x512xf32>
    %c2_244 = arith.constant 2 : index
    %c0_245 = arith.constant 0 : index
    %c0_246 = arith.constant 0 : index
    %469 = vector.load %arg12[%c2_244, %c0_245, %c0_246] : memref<8x8x512xf32, #tpu.memory_space<vmem>>, vector<1x8x512xf32>
    %470 = vector.shape_cast %469 : vector<1x8x512xf32> to vector<8x512xf32>
    %471 = vector.shape_cast %468 : vector<8x512xf32> to vector<1x8x512xf32>
    tpu.vector_store %arg12[%c2_244, %c0_245, %c0_246], %471 {strides = array<i32>} : memref<8x8x512xf32, #tpu.memory_space<vmem>>, vector<1x8x512xf32>,
    %c3_247 = arith.constant 3 : index
    %c0_248 = arith.constant 0 : index
    %c0_249 = arith.constant 0 : index
    %472 = vector.load %arg13[%c3_247, %c0_248, %c0_249] : memref<8x8x128xf32, #tpu.memory_space<vmem>>, vector<1x8x128xf32>
    %473 = vector.shape_cast %472 : vector<1x8x128xf32> to vector<8x128xf32>
    %c4_250 = arith.constant 4 : index
    %c0_251 = arith.constant 0 : index
    %c0_252 = arith.constant 0 : index
    %474 = vector.load %arg13[%c4_250, %c0_251, %c0_252] : memref<8x8x128xf32, #tpu.memory_space<vmem>>, vector<1x8x128xf32>
    %475 = vector.shape_cast %474 : vector<1x8x128xf32> to vector<8x128xf32>
    %476 = vector.shape_cast %21 : vector<1x128xi1> to vector<1x128xi1>
    %477 = vector.broadcast %476 : vector<1x128xi1> to vector<8x128xi1>
    %478 = arith.select %477, %473, %475 : vector<8x128xi1>, vector<8x128xf32>
    %479 = arith.truncf %478 : vector<8x128xf32> to vector<8x128xbf16>
    %c0_253 = arith.constant 0 : index
    %c0_254 = arith.constant 0 : index
    %480 = vector.load %arg5[%c0_253, %c0_254] : memref<128x512xbf16, #tpu.memory_space<vmem>>, vector<128x512xbf16>
    %cst_255 = arith.constant dense<0.000000e+00> : vector<8x512xf32>
    %481 = tpu.matmul %479, %480, %cst_255 {dimension_numbers = #tpu.dot_dimension_numbers<[1], [0], [0], [1], [0, 0, 1, 1], [], []>} : vector<8x128xbf16>, vector<128x512xbf16>, vector<8x512xf32> -> vector<8x512xf32>
    %c0_256 = arith.constant 0 : index
    %c0_257 = arith.constant 0 : index
    %482 = vector.load %arg7[%c0_256, %c0_257] : memref<1x512xf32, #tpu.memory_space<vmem>>, vector<1x512xf32>
    %483 = vector.broadcast %482 : vector<1x512xf32> to vector<8x512xf32>
    %484 = arith.addf %481, %483 : vector<8x512xf32>
    %c3_258 = arith.constant 3 : index
    %c0_259 = arith.constant 0 : index
    %c0_260 = arith.constant 0 : index
    %485 = vector.load %arg12[%c3_258, %c0_259, %c0_260] : memref<8x8x512xf32, #tpu.memory_space<vmem>>, vector<1x8x512xf32>
    %486 = vector.shape_cast %485 : vector<1x8x512xf32> to vector<8x512xf32>
    %487 = vector.shape_cast %484 : vector<8x512xf32> to vector<1x8x512xf32>
    tpu.vector_store %arg12[%c3_258, %c0_259, %c0_260], %487 {strides = array<i32>} : memref<8x8x512xf32, #tpu.memory_space<vmem>>, vector<1x8x512xf32>,
    %c4_261 = arith.constant 4 : index
    %c0_262 = arith.constant 0 : index
    %c0_263 = arith.constant 0 : index
    %488 = vector.load %arg13[%c4_261, %c0_262, %c0_263] : memref<8x8x128xf32, #tpu.memory_space<vmem>>, vector<1x8x128xf32>
    %489 = vector.shape_cast %488 : vector<1x8x128xf32> to vector<8x128xf32>
    %c3_264 = arith.constant 3 : index
    %c0_265 = arith.constant 0 : index
    %c0_266 = arith.constant 0 : index
    %490 = vector.load %arg13[%c3_264, %c0_265, %c0_266] : memref<8x8x128xf32, #tpu.memory_space<vmem>>, vector<1x8x128xf32>
    %491 = vector.shape_cast %490 : vector<1x8x128xf32> to vector<8x128xf32>
    %492 = vector.shape_cast %21 : vector<1x128xi1> to vector<1x128xi1>
    %493 = vector.broadcast %492 : vector<1x128xi1> to vector<8x128xi1>
    %494 = arith.select %493, %489, %491 : vector<8x128xi1>, vector<8x128xf32>
    %495 = arith.truncf %494 : vector<8x128xf32> to vector<8x128xbf16>
    %c0_267 = arith.constant 0 : index
    %c0_268 = arith.constant 0 : index
    %496 = vector.load %arg5[%c0_267, %c0_268] : memref<128x512xbf16, #tpu.memory_space<vmem>>, vector<128x512xbf16>
    %cst_269 = arith.constant dense<0.000000e+00> : vector<8x512xf32>
    %497 = tpu.matmul %495, %496, %cst_269 {dimension_numbers = #tpu.dot_dimension_numbers<[1], [0], [0], [1], [0, 0, 1, 1], [], []>} : vector<8x128xbf16>, vector<128x512xbf16>, vector<8x512xf32> -> vector<8x512xf32>
    %c0_270 = arith.constant 0 : index
    %c0_271 = arith.constant 0 : index
    %498 = vector.load %arg7[%c0_270, %c0_271] : memref<1x512xf32, #tpu.memory_space<vmem>>, vector<1x512xf32>
    %499 = vector.broadcast %498 : vector<1x512xf32> to vector<8x512xf32>
    %500 = arith.addf %497, %499 : vector<8x512xf32>
    %c4_272 = arith.constant 4 : index
    %c0_273 = arith.constant 0 : index
    %c0_274 = arith.constant 0 : index
    %501 = vector.load %arg12[%c4_272, %c0_273, %c0_274] : memref<8x8x512xf32, #tpu.memory_space<vmem>>, vector<1x8x512xf32>
    %502 = vector.shape_cast %501 : vector<1x8x512xf32> to vector<8x512xf32>
    %503 = vector.shape_cast %500 : vector<8x512xf32> to vector<1x8x512xf32>
    tpu.vector_store %arg12[%c4_272, %c0_273, %c0_274], %503 {strides = array<i32>} : memref<8x8x512xf32, #tpu.memory_space<vmem>>, vector<1x8x512xf32>,
    %c5_275 = arith.constant 5 : index
    %c0_276 = arith.constant 0 : index
    %c0_277 = arith.constant 0 : index
    %504 = vector.load %arg13[%c5_275, %c0_276, %c0_277] : memref<8x8x128xf32, #tpu.memory_space<vmem>>, vector<1x8x128xf32>
    %505 = vector.shape_cast %504 : vector<1x8x128xf32> to vector<8x128xf32>
    %c2_278 = arith.constant 2 : index
    %c0_279 = arith.constant 0 : index
    %c0_280 = arith.constant 0 : index
    %506 = vector.load %arg13[%c2_278, %c0_279, %c0_280] : memref<8x8x128xf32, #tpu.memory_space<vmem>>, vector<1x8x128xf32>
    %507 = vector.shape_cast %506 : vector<1x8x128xf32> to vector<8x128xf32>
    %508 = vector.shape_cast %21 : vector<1x128xi1> to vector<1x128xi1>
    %509 = vector.broadcast %508 : vector<1x128xi1> to vector<8x128xi1>
    %510 = arith.select %509, %505, %507 : vector<8x128xi1>, vector<8x128xf32>
    %511 = arith.truncf %510 : vector<8x128xf32> to vector<8x128xbf16>
    %c0_281 = arith.constant 0 : index
    %c0_282 = arith.constant 0 : index
    %512 = vector.load %arg5[%c0_281, %c0_282] : memref<128x512xbf16, #tpu.memory_space<vmem>>, vector<128x512xbf16>
    %cst_283 = arith.constant dense<0.000000e+00> : vector<8x512xf32>
    %513 = tpu.matmul %511, %512, %cst_283 {dimension_numbers = #tpu.dot_dimension_numbers<[1], [0], [0], [1], [0, 0, 1, 1], [], []>} : vector<8x128xbf16>, vector<128x512xbf16>, vector<8x512xf32> -> vector<8x512xf32>
    %c0_284 = arith.constant 0 : index
    %c0_285 = arith.constant 0 : index
    %514 = vector.load %arg7[%c0_284, %c0_285] : memref<1x512xf32, #tpu.memory_space<vmem>>, vector<1x512xf32>
    %515 = vector.broadcast %514 : vector<1x512xf32> to vector<8x512xf32>
    %516 = arith.addf %513, %515 : vector<8x512xf32>
    %c5_286 = arith.constant 5 : index
    %c0_287 = arith.constant 0 : index
    %c0_288 = arith.constant 0 : index
    %517 = vector.load %arg12[%c5_286, %c0_287, %c0_288] : memref<8x8x512xf32, #tpu.memory_space<vmem>>, vector<1x8x512xf32>
    %518 = vector.shape_cast %517 : vector<1x8x512xf32> to vector<8x512xf32>
    %519 = vector.shape_cast %516 : vector<8x512xf32> to vector<1x8x512xf32>
    tpu.vector_store %arg12[%c5_286, %c0_287, %c0_288], %519 {strides = array<i32>} : memref<8x8x512xf32, #tpu.memory_space<vmem>>, vector<1x8x512xf32>,
    %c6_289 = arith.constant 6 : index
    %c0_290 = arith.constant 0 : index
    %c0_291 = arith.constant 0 : index
    %520 = vector.load %arg13[%c6_289, %c0_290, %c0_291] : memref<8x8x128xf32, #tpu.memory_space<vmem>>, vector<1x8x128xf32>
    %521 = vector.shape_cast %520 : vector<1x8x128xf32> to vector<8x128xf32>
    %c1_292 = arith.constant 1 : index
    %c0_293 = arith.constant 0 : index
    %c0_294 = arith.constant 0 : index
    %522 = vector.load %arg13[%c1_292, %c0_293, %c0_294] : memref<8x8x128xf32, #tpu.memory_space<vmem>>, vector<1x8x128xf32>
    %523 = vector.shape_cast %522 : vector<1x8x128xf32> to vector<8x128xf32>
    %524 = vector.shape_cast %21 : vector<1x128xi1> to vector<1x128xi1>
    %525 = vector.broadcast %524 : vector<1x128xi1> to vector<8x128xi1>
    %526 = arith.select %525, %521, %523 : vector<8x128xi1>, vector<8x128xf32>
    %527 = arith.truncf %526 : vector<8x128xf32> to vector<8x128xbf16>
    %c0_295 = arith.constant 0 : index
    %c0_296 = arith.constant 0 : index
    %528 = vector.load %arg5[%c0_295, %c0_296] : memref<128x512xbf16, #tpu.memory_space<vmem>>, vector<128x512xbf16>
    %cst_297 = arith.constant dense<0.000000e+00> : vector<8x512xf32>
    %529 = tpu.matmul %527, %528, %cst_297 {dimension_numbers = #tpu.dot_dimension_numbers<[1], [0], [0], [1], [0, 0, 1, 1], [], []>} : vector<8x128xbf16>, vector<128x512xbf16>, vector<8x512xf32> -> vector<8x512xf32>
    %c0_298 = arith.constant 0 : index
    %c0_299 = arith.constant 0 : index
    %530 = vector.load %arg7[%c0_298, %c0_299] : memref<1x512xf32, #tpu.memory_space<vmem>>, vector<1x512xf32>
    %531 = vector.broadcast %530 : vector<1x512xf32> to vector<8x512xf32>
    %532 = arith.addf %529, %531 : vector<8x512xf32>
    %c6_300 = arith.constant 6 : index
    %c0_301 = arith.constant 0 : index
    %c0_302 = arith.constant 0 : index
    %533 = vector.load %arg12[%c6_300, %c0_301, %c0_302] : memref<8x8x512xf32, #tpu.memory_space<vmem>>, vector<1x8x512xf32>
    %534 = vector.shape_cast %533 : vector<1x8x512xf32> to vector<8x512xf32>
    %535 = vector.shape_cast %532 : vector<8x512xf32> to vector<1x8x512xf32>
    tpu.vector_store %arg12[%c6_300, %c0_301, %c0_302], %535 {strides = array<i32>} : memref<8x8x512xf32, #tpu.memory_space<vmem>>, vector<1x8x512xf32>,
    %c7_303 = arith.constant 7 : index
    %c0_304 = arith.constant 0 : index
    %c0_305 = arith.constant 0 : index
    %536 = vector.load %arg13[%c7_303, %c0_304, %c0_305] : memref<8x8x128xf32, #tpu.memory_space<vmem>>, vector<1x8x128xf32>
    %537 = vector.shape_cast %536 : vector<1x8x128xf32> to vector<8x128xf32>
    %c0_306 = arith.constant 0 : index
    %c0_307 = arith.constant 0 : index
    %c0_308 = arith.constant 0 : index
    %538 = vector.load %arg13[%c0_306, %c0_307, %c0_308] : memref<8x8x128xf32, #tpu.memory_space<vmem>>, vector<1x8x128xf32>
    %539 = vector.shape_cast %538 : vector<1x8x128xf32> to vector<8x128xf32>
    %540 = vector.shape_cast %21 : vector<1x128xi1> to vector<1x128xi1>
    %541 = vector.broadcast %540 : vector<1x128xi1> to vector<8x128xi1>
    %542 = arith.select %541, %537, %539 : vector<8x128xi1>, vector<8x128xf32>
    %543 = arith.truncf %542 : vector<8x128xf32> to vector<8x128xbf16>
    %c0_309 = arith.constant 0 : index
    %c0_310 = arith.constant 0 : index
    %544 = vector.load %arg5[%c0_309, %c0_310] : memref<128x512xbf16, #tpu.memory_space<vmem>>, vector<128x512xbf16>
    %cst_311 = arith.constant dense<0.000000e+00> : vector<8x512xf32>
    %545 = tpu.matmul %543, %544, %cst_311 {dimension_numbers = #tpu.dot_dimension_numbers<[1], [0], [0], [1], [0, 0, 1, 1], [], []>} : vector<8x128xbf16>, vector<128x512xbf16>, vector<8x512xf32> -> vector<8x512xf32>
    %c0_312 = arith.constant 0 : index
    %c0_313 = arith.constant 0 : index
    %546 = vector.load %arg7[%c0_312, %c0_313] : memref<1x512xf32, #tpu.memory_space<vmem>>, vector<1x512xf32>
    %547 = vector.broadcast %546 : vector<1x512xf32> to vector<8x512xf32>
    %548 = arith.addf %545, %547 : vector<8x512xf32>
    %c7_314 = arith.constant 7 : index
    %c0_315 = arith.constant 0 : index
    %c0_316 = arith.constant 0 : index
    %549 = vector.load %arg12[%c7_314, %c0_315, %c0_316] : memref<8x8x512xf32, #tpu.memory_space<vmem>>, vector<1x8x512xf32>
    %550 = vector.shape_cast %549 : vector<1x8x512xf32> to vector<8x512xf32>
    %551 = vector.shape_cast %548 : vector<8x512xf32> to vector<1x8x512xf32>
    tpu.vector_store %arg12[%c7_314, %c0_315, %c0_316], %551 {strides = array<i32>} : memref<8x8x512xf32, #tpu.memory_space<vmem>>, vector<1x8x512xf32>,
    %cst_317 = arith.constant 0.000000e+00 : f32
    %552 = vector.broadcast %cst_317 : f32 to vector<8x128xf32>
    %cst_318 = arith.constant 0.000000e+00 : f32
    %553 = vector.broadcast %cst_318 : f32 to vector<8x128xf32>
    %cst_319 = arith.constant 0.000000e+00 : f32
    %554 = vector.broadcast %cst_319 : f32 to vector<8x128xf32>
    %c0_320 = arith.constant 0 : index
    %c0_321 = arith.constant 0 : index
    %c0_322 = arith.constant 0 : index
    %555 = vector.load %arg12[%c0_320, %c0_321, %c0_322] : memref<8x8x512xf32, #tpu.memory_space<vmem>>, vector<1x8x512xf32>
    %556 = vector.shape_cast %555 : vector<1x8x512xf32> to vector<8x512xf32>
    %c7_323 = arith.constant 7 : index
    %c0_324 = arith.constant 0 : index
    %c0_325 = arith.constant 0 : index
    %557 = vector.load %arg12[%c7_323, %c0_324, %c0_325] : memref<8x8x512xf32, #tpu.memory_space<vmem>>, vector<1x8x512xf32>
    %558 = vector.shape_cast %557 : vector<1x8x512xf32> to vector<8x512xf32>
    %559 = vector.shape_cast %18 : vector<1x512xi1> to vector<1x512xi1>
    %560 = vector.broadcast %559 : vector<1x512xi1> to vector<8x512xi1>
    %561 = arith.select %560, %556, %558 : vector<8x512xi1>, vector<8x512xf32>
    %562 = arith.truncf %552 : vector<8x128xf32> to vector<8x128xbf16>
    %c0_326 = arith.constant 0 : index
    %c0_327 = arith.constant 0 : index
    %563 = vector.load %arg6[%c0_326, %c0_327] : memref<128x512xbf16, #tpu.memory_space<vmem>>, vector<128x512xbf16>
    %cst_328 = arith.constant dense<0.000000e+00> : vector<8x512xf32>
    %564 = tpu.matmul %562, %563, %cst_328 {dimension_numbers = #tpu.dot_dimension_numbers<[1], [0], [0], [1], [0, 0, 1, 1], [], []>} : vector<8x128xbf16>, vector<128x512xbf16>, vector<8x512xf32> -> vector<8x512xf32>
    %565 = arith.addf %561, %564 : vector<8x512xf32>
    %566 = vector.extract_strided_slice %565 {offsets = [0, 0], sizes = [8, 128], strides = [1, 1]} : vector<8x512xf32> to vector<8x128xf32>
    %567 = arith.negf %566 : vector<8x128xf32>
    %568 = math.exp %567 : vector<8x128xf32>
    %cst_329 = arith.constant 1.000000e+00 : f32
    %569 = vector.broadcast %cst_329 : f32 to vector<8x128xf32>
    %570 = arith.addf %569, %568 : vector<8x128xf32>
    %571 = arith.divf %569, %570 : vector<8x128xf32>
    %572 = vector.extract_strided_slice %565 {offsets = [0, 128], sizes = [8, 128], strides = [1, 1]} : vector<8x512xf32> to vector<8x128xf32>
    %573 = arith.negf %572 : vector<8x128xf32>
    %574 = math.exp %573 : vector<8x128xf32>
    %cst_330 = arith.constant 1.000000e+00 : f32
    %575 = vector.broadcast %cst_330 : f32 to vector<8x128xf32>
    %576 = arith.addf %575, %574 : vector<8x128xf32>
    %577 = arith.divf %575, %576 : vector<8x128xf32>
    %578 = vector.extract_strided_slice %565 {offsets = [0, 256], sizes = [8, 128], strides = [1, 1]} : vector<8x512xf32> to vector<8x128xf32>
    %579 = math.tanh %578 : vector<8x128xf32>
    %580 = vector.extract_strided_slice %565 {offsets = [0, 384], sizes = [8, 128], strides = [1, 1]} : vector<8x512xf32> to vector<8x128xf32>
    %581 = arith.negf %580 : vector<8x128xf32>
    %582 = math.exp %581 : vector<8x128xf32>
    %cst_331 = arith.constant 1.000000e+00 : f32
    %583 = vector.broadcast %cst_331 : f32 to vector<8x128xf32>
    %584 = arith.addf %583, %582 : vector<8x128xf32>
    %585 = arith.divf %583, %584 : vector<8x128xf32>
    %586 = arith.mulf %577, %553 : vector<8x128xf32>
    %587 = arith.mulf %571, %579 : vector<8x128xf32>
    %588 = arith.addf %586, %587 : vector<8x128xf32>
    %589 = math.tanh %588 : vector<8x128xf32>
    %590 = arith.mulf %585, %589 : vector<8x128xf32>
    %591 = arith.addf %554, %590 : vector<8x128xf32>
    %c1_332 = arith.constant 1 : index
    %c0_333 = arith.constant 0 : index
    %c0_334 = arith.constant 0 : index
    %592 = vector.load %arg12[%c1_332, %c0_333, %c0_334] : memref<8x8x512xf32, #tpu.memory_space<vmem>>, vector<1x8x512xf32>
    %593 = vector.shape_cast %592 : vector<1x8x512xf32> to vector<8x512xf32>
    %c6_335 = arith.constant 6 : index
    %c0_336 = arith.constant 0 : index
    %c0_337 = arith.constant 0 : index
    %594 = vector.load %arg12[%c6_335, %c0_336, %c0_337] : memref<8x8x512xf32, #tpu.memory_space<vmem>>, vector<1x8x512xf32>
    %595 = vector.shape_cast %594 : vector<1x8x512xf32> to vector<8x512xf32>
    %596 = vector.shape_cast %18 : vector<1x512xi1> to vector<1x512xi1>
    %597 = vector.broadcast %596 : vector<1x512xi1> to vector<8x512xi1>
    %598 = arith.select %597, %593, %595 : vector<8x512xi1>, vector<8x512xf32>
    %599 = arith.truncf %590 : vector<8x128xf32> to vector<8x128xbf16>
    %c0_338 = arith.constant 0 : index
    %c0_339 = arith.constant 0 : index
    %600 = vector.load %arg6[%c0_338, %c0_339] : memref<128x512xbf16, #tpu.memory_space<vmem>>, vector<128x512xbf16>
    %cst_340 = arith.constant dense<0.000000e+00> : vector<8x512xf32>
    %601 = tpu.matmul %599, %600, %cst_340 {dimension_numbers = #tpu.dot_dimension_numbers<[1], [0], [0], [1], [0, 0, 1, 1], [], []>} : vector<8x128xbf16>, vector<128x512xbf16>, vector<8x512xf32> -> vector<8x512xf32>
    %602 = arith.addf %598, %601 : vector<8x512xf32>
    %603 = vector.extract_strided_slice %602 {offsets = [0, 0], sizes = [8, 128], strides = [1, 1]} : vector<8x512xf32> to vector<8x128xf32>
    %604 = arith.negf %603 : vector<8x128xf32>
    %605 = math.exp %604 : vector<8x128xf32>
    %cst_341 = arith.constant 1.000000e+00 : f32
    %606 = vector.broadcast %cst_341 : f32 to vector<8x128xf32>
    %607 = arith.addf %606, %605 : vector<8x128xf32>
    %608 = arith.divf %606, %607 : vector<8x128xf32>
    %609 = vector.extract_strided_slice %602 {offsets = [0, 128], sizes = [8, 128], strides = [1, 1]} : vector<8x512xf32> to vector<8x128xf32>
    %610 = arith.negf %609 : vector<8x128xf32>
    %611 = math.exp %610 : vector<8x128xf32>
    %cst_342 = arith.constant 1.000000e+00 : f32
    %612 = vector.broadcast %cst_342 : f32 to vector<8x128xf32>
    %613 = arith.addf %612, %611 : vector<8x128xf32>
    %614 = arith.divf %612, %613 : vector<8x128xf32>
    %615 = vector.extract_strided_slice %602 {offsets = [0, 256], sizes = [8, 128], strides = [1, 1]} : vector<8x512xf32> to vector<8x128xf32>
    %616 = math.tanh %615 : vector<8x128xf32>
    %617 = vector.extract_strided_slice %602 {offsets = [0, 384], sizes = [8, 128], strides = [1, 1]} : vector<8x512xf32> to vector<8x128xf32>
    %618 = arith.negf %617 : vector<8x128xf32>
    %619 = math.exp %618 : vector<8x128xf32>
    %cst_343 = arith.constant 1.000000e+00 : f32
    %620 = vector.broadcast %cst_343 : f32 to vector<8x128xf32>
    %621 = arith.addf %620, %619 : vector<8x128xf32>
    %622 = arith.divf %620, %621 : vector<8x128xf32>
    %623 = arith.mulf %614, %588 : vector<8x128xf32>
    %624 = arith.mulf %608, %616 : vector<8x128xf32>
    %625 = arith.addf %623, %624 : vector<8x128xf32>
    %626 = math.tanh %625 : vector<8x128xf32>
    %627 = arith.mulf %622, %626 : vector<8x128xf32>
    %628 = arith.addf %591, %627 : vector<8x128xf32>
    %c2_344 = arith.constant 2 : index
    %c0_345 = arith.constant 0 : index
    %c0_346 = arith.constant 0 : index
    %629 = vector.load %arg12[%c2_344, %c0_345, %c0_346] : memref<8x8x512xf32, #tpu.memory_space<vmem>>, vector<1x8x512xf32>
    %630 = vector.shape_cast %629 : vector<1x8x512xf32> to vector<8x512xf32>
    %c5_347 = arith.constant 5 : index
    %c0_348 = arith.constant 0 : index
    %c0_349 = arith.constant 0 : index
    %631 = vector.load %arg12[%c5_347, %c0_348, %c0_349] : memref<8x8x512xf32, #tpu.memory_space<vmem>>, vector<1x8x512xf32>
    %632 = vector.shape_cast %631 : vector<1x8x512xf32> to vector<8x512xf32>
    %633 = vector.shape_cast %18 : vector<1x512xi1> to vector<1x512xi1>
    %634 = vector.broadcast %633 : vector<1x512xi1> to vector<8x512xi1>
    %635 = arith.select %634, %630, %632 : vector<8x512xi1>, vector<8x512xf32>
    %636 = arith.truncf %627 : vector<8x128xf32> to vector<8x128xbf16>
    %c0_350 = arith.constant 0 : index
    %c0_351 = arith.constant 0 : index
    %637 = vector.load %arg6[%c0_350, %c0_351] : memref<128x512xbf16, #tpu.memory_space<vmem>>, vector<128x512xbf16>
    %cst_352 = arith.constant dense<0.000000e+00> : vector<8x512xf32>
    %638 = tpu.matmul %636, %637, %cst_352 {dimension_numbers = #tpu.dot_dimension_numbers<[1], [0], [0], [1], [0, 0, 1, 1], [], []>} : vector<8x128xbf16>, vector<128x512xbf16>, vector<8x512xf32> -> vector<8x512xf32>
    %639 = arith.addf %635, %638 : vector<8x512xf32>
    %640 = vector.extract_strided_slice %639 {offsets = [0, 0], sizes = [8, 128], strides = [1, 1]} : vector<8x512xf32> to vector<8x128xf32>
    %641 = arith.negf %640 : vector<8x128xf32>
    %642 = math.exp %641 : vector<8x128xf32>
    %cst_353 = arith.constant 1.000000e+00 : f32
    %643 = vector.broadcast %cst_353 : f32 to vector<8x128xf32>
    %644 = arith.addf %643, %642 : vector<8x128xf32>
    %645 = arith.divf %643, %644 : vector<8x128xf32>
    %646 = vector.extract_strided_slice %639 {offsets = [0, 128], sizes = [8, 128], strides = [1, 1]} : vector<8x512xf32> to vector<8x128xf32>
    %647 = arith.negf %646 : vector<8x128xf32>
    %648 = math.exp %647 : vector<8x128xf32>
    %cst_354 = arith.constant 1.000000e+00 : f32
    %649 = vector.broadcast %cst_354 : f32 to vector<8x128xf32>
    %650 = arith.addf %649, %648 : vector<8x128xf32>
    %651 = arith.divf %649, %650 : vector<8x128xf32>
    %652 = vector.extract_strided_slice %639 {offsets = [0, 256], sizes = [8, 128], strides = [1, 1]} : vector<8x512xf32> to vector<8x128xf32>
    %653 = math.tanh %652 : vector<8x128xf32>
    %654 = vector.extract_strided_slice %639 {offsets = [0, 384], sizes = [8, 128], strides = [1, 1]} : vector<8x512xf32> to vector<8x128xf32>
    %655 = arith.negf %654 : vector<8x128xf32>
    %656 = math.exp %655 : vector<8x128xf32>
    %cst_355 = arith.constant 1.000000e+00 : f32
    %657 = vector.broadcast %cst_355 : f32 to vector<8x128xf32>
    %658 = arith.addf %657, %656 : vector<8x128xf32>
    %659 = arith.divf %657, %658 : vector<8x128xf32>
    %660 = arith.mulf %651, %625 : vector<8x128xf32>
    %661 = arith.mulf %645, %653 : vector<8x128xf32>
    %662 = arith.addf %660, %661 : vector<8x128xf32>
    %663 = math.tanh %662 : vector<8x128xf32>
    %664 = arith.mulf %659, %663 : vector<8x128xf32>
    %665 = arith.addf %628, %664 : vector<8x128xf32>
    %c3_356 = arith.constant 3 : index
    %c0_357 = arith.constant 0 : index
    %c0_358 = arith.constant 0 : index
    %666 = vector.load %arg12[%c3_356, %c0_357, %c0_358] : memref<8x8x512xf32, #tpu.memory_space<vmem>>, vector<1x8x512xf32>
    %667 = vector.shape_cast %666 : vector<1x8x512xf32> to vector<8x512xf32>
    %c4_359 = arith.constant 4 : index
    %c0_360 = arith.constant 0 : index
    %c0_361 = arith.constant 0 : index
    %668 = vector.load %arg12[%c4_359, %c0_360, %c0_361] : memref<8x8x512xf32, #tpu.memory_space<vmem>>, vector<1x8x512xf32>
    %669 = vector.shape_cast %668 : vector<1x8x512xf32> to vector<8x512xf32>
    %670 = vector.shape_cast %18 : vector<1x512xi1> to vector<1x512xi1>
    %671 = vector.broadcast %670 : vector<1x512xi1> to vector<8x512xi1>
    %672 = arith.select %671, %667, %669 : vector<8x512xi1>, vector<8x512xf32>
    %673 = arith.truncf %664 : vector<8x128xf32> to vector<8x128xbf16>
    %c0_362 = arith.constant 0 : index
    %c0_363 = arith.constant 0 : index
    %674 = vector.load %arg6[%c0_362, %c0_363] : memref<128x512xbf16, #tpu.memory_space<vmem>>, vector<128x512xbf16>
    %cst_364 = arith.constant dense<0.000000e+00> : vector<8x512xf32>
    %675 = tpu.matmul %673, %674, %cst_364 {dimension_numbers = #tpu.dot_dimension_numbers<[1], [0], [0], [1], [0, 0, 1, 1], [], []>} : vector<8x128xbf16>, vector<128x512xbf16>, vector<8x512xf32> -> vector<8x512xf32>
    %676 = arith.addf %672, %675 : vector<8x512xf32>
    %677 = vector.extract_strided_slice %676 {offsets = [0, 0], sizes = [8, 128], strides = [1, 1]} : vector<8x512xf32> to vector<8x128xf32>
    %678 = arith.negf %677 : vector<8x128xf32>
    %679 = math.exp %678 : vector<8x128xf32>
    %cst_365 = arith.constant 1.000000e+00 : f32
    %680 = vector.broadcast %cst_365 : f32 to vector<8x128xf32>
    %681 = arith.addf %680, %679 : vector<8x128xf32>
    %682 = arith.divf %680, %681 : vector<8x128xf32>
    %683 = vector.extract_strided_slice %676 {offsets = [0, 128], sizes = [8, 128], strides = [1, 1]} : vector<8x512xf32> to vector<8x128xf32>
    %684 = arith.negf %683 : vector<8x128xf32>
    %685 = math.exp %684 : vector<8x128xf32>
    %cst_366 = arith.constant 1.000000e+00 : f32
    %686 = vector.broadcast %cst_366 : f32 to vector<8x128xf32>
    %687 = arith.addf %686, %685 : vector<8x128xf32>
    %688 = arith.divf %686, %687 : vector<8x128xf32>
    %689 = vector.extract_strided_slice %676 {offsets = [0, 256], sizes = [8, 128], strides = [1, 1]} : vector<8x512xf32> to vector<8x128xf32>
    %690 = math.tanh %689 : vector<8x128xf32>
    %691 = vector.extract_strided_slice %676 {offsets = [0, 384], sizes = [8, 128], strides = [1, 1]} : vector<8x512xf32> to vector<8x128xf32>
    %692 = arith.negf %691 : vector<8x128xf32>
    %693 = math.exp %692 : vector<8x128xf32>
    %cst_367 = arith.constant 1.000000e+00 : f32
    %694 = vector.broadcast %cst_367 : f32 to vector<8x128xf32>
    %695 = arith.addf %694, %693 : vector<8x128xf32>
    %696 = arith.divf %694, %695 : vector<8x128xf32>
    %697 = arith.mulf %688, %662 : vector<8x128xf32>
    %698 = arith.mulf %682, %690 : vector<8x128xf32>
    %699 = arith.addf %697, %698 : vector<8x128xf32>
    %700 = math.tanh %699 : vector<8x128xf32>
    %701 = arith.mulf %696, %700 : vector<8x128xf32>
    %702 = arith.addf %665, %701 : vector<8x128xf32>
    %c4_368 = arith.constant 4 : index
    %c0_369 = arith.constant 0 : index
    %c0_370 = arith.constant 0 : index
    %703 = vector.load %arg12[%c4_368, %c0_369, %c0_370] : memref<8x8x512xf32, #tpu.memory_space<vmem>>, vector<1x8x512xf32>
    %704 = vector.shape_cast %703 : vector<1x8x512xf32> to vector<8x512xf32>
    %c3_371 = arith.constant 3 : index
    %c0_372 = arith.constant 0 : index
    %c0_373 = arith.constant 0 : index
    %705 = vector.load %arg12[%c3_371, %c0_372, %c0_373] : memref<8x8x512xf32, #tpu.memory_space<vmem>>, vector<1x8x512xf32>
    %706 = vector.shape_cast %705 : vector<1x8x512xf32> to vector<8x512xf32>
    %707 = vector.shape_cast %18 : vector<1x512xi1> to vector<1x512xi1>
    %708 = vector.broadcast %707 : vector<1x512xi1> to vector<8x512xi1>
    %709 = arith.select %708, %704, %706 : vector<8x512xi1>, vector<8x512xf32>
    %710 = arith.truncf %701 : vector<8x128xf32> to vector<8x128xbf16>
    %c0_374 = arith.constant 0 : index
    %c0_375 = arith.constant 0 : index
    %711 = vector.load %arg6[%c0_374, %c0_375] : memref<128x512xbf16, #tpu.memory_space<vmem>>, vector<128x512xbf16>
    %cst_376 = arith.constant dense<0.000000e+00> : vector<8x512xf32>
    %712 = tpu.matmul %710, %711, %cst_376 {dimension_numbers = #tpu.dot_dimension_numbers<[1], [0], [0], [1], [0, 0, 1, 1], [], []>} : vector<8x128xbf16>, vector<128x512xbf16>, vector<8x512xf32> -> vector<8x512xf32>
    %713 = arith.addf %709, %712 : vector<8x512xf32>
    %714 = vector.extract_strided_slice %713 {offsets = [0, 0], sizes = [8, 128], strides = [1, 1]} : vector<8x512xf32> to vector<8x128xf32>
    %715 = arith.negf %714 : vector<8x128xf32>
    %716 = math.exp %715 : vector<8x128xf32>
    %cst_377 = arith.constant 1.000000e+00 : f32
    %717 = vector.broadcast %cst_377 : f32 to vector<8x128xf32>
    %718 = arith.addf %717, %716 : vector<8x128xf32>
    %719 = arith.divf %717, %718 : vector<8x128xf32>
    %720 = vector.extract_strided_slice %713 {offsets = [0, 128], sizes = [8, 128], strides = [1, 1]} : vector<8x512xf32> to vector<8x128xf32>
    %721 = arith.negf %720 : vector<8x128xf32>
    %722 = math.exp %721 : vector<8x128xf32>
    %cst_378 = arith.constant 1.000000e+00 : f32
    %723 = vector.broadcast %cst_378 : f32 to vector<8x128xf32>
    %724 = arith.addf %723, %722 : vector<8x128xf32>
    %725 = arith.divf %723, %724 : vector<8x128xf32>
    %726 = vector.extract_strided_slice %713 {offsets = [0, 256], sizes = [8, 128], strides = [1, 1]} : vector<8x512xf32> to vector<8x128xf32>
    %727 = math.tanh %726 : vector<8x128xf32>
    %728 = vector.extract_strided_slice %713 {offsets = [0, 384], sizes = [8, 128], strides = [1, 1]} : vector<8x512xf32> to vector<8x128xf32>
    %729 = arith.negf %728 : vector<8x128xf32>
    %730 = math.exp %729 : vector<8x128xf32>
    %cst_379 = arith.constant 1.000000e+00 : f32
    %731 = vector.broadcast %cst_379 : f32 to vector<8x128xf32>
    %732 = arith.addf %731, %730 : vector<8x128xf32>
    %733 = arith.divf %731, %732 : vector<8x128xf32>
    %734 = arith.mulf %725, %699 : vector<8x128xf32>
    %735 = arith.mulf %719, %727 : vector<8x128xf32>
    %736 = arith.addf %734, %735 : vector<8x128xf32>
    %737 = math.tanh %736 : vector<8x128xf32>
    %738 = arith.mulf %733, %737 : vector<8x128xf32>
    %739 = arith.addf %702, %738 : vector<8x128xf32>
    %c5_380 = arith.constant 5 : index
    %c0_381 = arith.constant 0 : index
    %c0_382 = arith.constant 0 : index
    %740 = vector.load %arg12[%c5_380, %c0_381, %c0_382] : memref<8x8x512xf32, #tpu.memory_space<vmem>>, vector<1x8x512xf32>
    %741 = vector.shape_cast %740 : vector<1x8x512xf32> to vector<8x512xf32>
    %c2_383 = arith.constant 2 : index
    %c0_384 = arith.constant 0 : index
    %c0_385 = arith.constant 0 : index
    %742 = vector.load %arg12[%c2_383, %c0_384, %c0_385] : memref<8x8x512xf32, #tpu.memory_space<vmem>>, vector<1x8x512xf32>
    %743 = vector.shape_cast %742 : vector<1x8x512xf32> to vector<8x512xf32>
    %744 = vector.shape_cast %18 : vector<1x512xi1> to vector<1x512xi1>
    %745 = vector.broadcast %744 : vector<1x512xi1> to vector<8x512xi1>
    %746 = arith.select %745, %741, %743 : vector<8x512xi1>, vector<8x512xf32>
    %747 = arith.truncf %738 : vector<8x128xf32> to vector<8x128xbf16>
    %c0_386 = arith.constant 0 : index
    %c0_387 = arith.constant 0 : index
    %748 = vector.load %arg6[%c0_386, %c0_387] : memref<128x512xbf16, #tpu.memory_space<vmem>>, vector<128x512xbf16>
    %cst_388 = arith.constant dense<0.000000e+00> : vector<8x512xf32>
    %749 = tpu.matmul %747, %748, %cst_388 {dimension_numbers = #tpu.dot_dimension_numbers<[1], [0], [0], [1], [0, 0, 1, 1], [], []>} : vector<8x128xbf16>, vector<128x512xbf16>, vector<8x512xf32> -> vector<8x512xf32>
    %750 = arith.addf %746, %749 : vector<8x512xf32>
    %751 = vector.extract_strided_slice %750 {offsets = [0, 0], sizes = [8, 128], strides = [1, 1]} : vector<8x512xf32> to vector<8x128xf32>
    %752 = arith.negf %751 : vector<8x128xf32>
    %753 = math.exp %752 : vector<8x128xf32>
    %cst_389 = arith.constant 1.000000e+00 : f32
    %754 = vector.broadcast %cst_389 : f32 to vector<8x128xf32>
    %755 = arith.addf %754, %753 : vector<8x128xf32>
    %756 = arith.divf %754, %755 : vector<8x128xf32>
    %757 = vector.extract_strided_slice %750 {offsets = [0, 128], sizes = [8, 128], strides = [1, 1]} : vector<8x512xf32> to vector<8x128xf32>
    %758 = arith.negf %757 : vector<8x128xf32>
    %759 = math.exp %758 : vector<8x128xf32>
    %cst_390 = arith.constant 1.000000e+00 : f32
    %760 = vector.broadcast %cst_390 : f32 to vector<8x128xf32>
    %761 = arith.addf %760, %759 : vector<8x128xf32>
    %762 = arith.divf %760, %761 : vector<8x128xf32>
    %763 = vector.extract_strided_slice %750 {offsets = [0, 256], sizes = [8, 128], strides = [1, 1]} : vector<8x512xf32> to vector<8x128xf32>
    %764 = math.tanh %763 : vector<8x128xf32>
    %765 = vector.extract_strided_slice %750 {offsets = [0, 384], sizes = [8, 128], strides = [1, 1]} : vector<8x512xf32> to vector<8x128xf32>
    %766 = arith.negf %765 : vector<8x128xf32>
    %767 = math.exp %766 : vector<8x128xf32>
    %cst_391 = arith.constant 1.000000e+00 : f32
    %768 = vector.broadcast %cst_391 : f32 to vector<8x128xf32>
    %769 = arith.addf %768, %767 : vector<8x128xf32>
    %770 = arith.divf %768, %769 : vector<8x128xf32>
    %771 = arith.mulf %762, %736 : vector<8x128xf32>
    %772 = arith.mulf %756, %764 : vector<8x128xf32>
    %773 = arith.addf %771, %772 : vector<8x128xf32>
    %774 = math.tanh %773 : vector<8x128xf32>
    %775 = arith.mulf %770, %774 : vector<8x128xf32>
    %776 = arith.addf %739, %775 : vector<8x128xf32>
    %c6_392 = arith.constant 6 : index
    %c0_393 = arith.constant 0 : index
    %c0_394 = arith.constant 0 : index
    %777 = vector.load %arg12[%c6_392, %c0_393, %c0_394] : memref<8x8x512xf32, #tpu.memory_space<vmem>>, vector<1x8x512xf32>
    %778 = vector.shape_cast %777 : vector<1x8x512xf32> to vector<8x512xf32>
    %c1_395 = arith.constant 1 : index
    %c0_396 = arith.constant 0 : index
    %c0_397 = arith.constant 0 : index
    %779 = vector.load %arg12[%c1_395, %c0_396, %c0_397] : memref<8x8x512xf32, #tpu.memory_space<vmem>>, vector<1x8x512xf32>
    %780 = vector.shape_cast %779 : vector<1x8x512xf32> to vector<8x512xf32>
    %781 = vector.shape_cast %18 : vector<1x512xi1> to vector<1x512xi1>
    %782 = vector.broadcast %781 : vector<1x512xi1> to vector<8x512xi1>
    %783 = arith.select %782, %778, %780 : vector<8x512xi1>, vector<8x512xf32>
    %784 = arith.truncf %775 : vector<8x128xf32> to vector<8x128xbf16>
    %c0_398 = arith.constant 0 : index
    %c0_399 = arith.constant 0 : index
    %785 = vector.load %arg6[%c0_398, %c0_399] : memref<128x512xbf16, #tpu.memory_space<vmem>>, vector<128x512xbf16>
    %cst_400 = arith.constant dense<0.000000e+00> : vector<8x512xf32>
    %786 = tpu.matmul %784, %785, %cst_400 {dimension_numbers = #tpu.dot_dimension_numbers<[1], [0], [0], [1], [0, 0, 1, 1], [], []>} : vector<8x128xbf16>, vector<128x512xbf16>, vector<8x512xf32> -> vector<8x512xf32>
    %787 = arith.addf %783, %786 : vector<8x512xf32>
    %788 = vector.extract_strided_slice %787 {offsets = [0, 0], sizes = [8, 128], strides = [1, 1]} : vector<8x512xf32> to vector<8x128xf32>
    %789 = arith.negf %788 : vector<8x128xf32>
    %790 = math.exp %789 : vector<8x128xf32>
    %cst_401 = arith.constant 1.000000e+00 : f32
    %791 = vector.broadcast %cst_401 : f32 to vector<8x128xf32>
    %792 = arith.addf %791, %790 : vector<8x128xf32>
    %793 = arith.divf %791, %792 : vector<8x128xf32>
    %794 = vector.extract_strided_slice %787 {offsets = [0, 128], sizes = [8, 128], strides = [1, 1]} : vector<8x512xf32> to vector<8x128xf32>
    %795 = arith.negf %794 : vector<8x128xf32>
    %796 = math.exp %795 : vector<8x128xf32>
    %cst_402 = arith.constant 1.000000e+00 : f32
    %797 = vector.broadcast %cst_402 : f32 to vector<8x128xf32>
    %798 = arith.addf %797, %796 : vector<8x128xf32>
    %799 = arith.divf %797, %798 : vector<8x128xf32>
    %800 = vector.extract_strided_slice %787 {offsets = [0, 256], sizes = [8, 128], strides = [1, 1]} : vector<8x512xf32> to vector<8x128xf32>
    %801 = math.tanh %800 : vector<8x128xf32>
    %802 = vector.extract_strided_slice %787 {offsets = [0, 384], sizes = [8, 128], strides = [1, 1]} : vector<8x512xf32> to vector<8x128xf32>
    %803 = arith.negf %802 : vector<8x128xf32>
    %804 = math.exp %803 : vector<8x128xf32>
    %cst_403 = arith.constant 1.000000e+00 : f32
    %805 = vector.broadcast %cst_403 : f32 to vector<8x128xf32>
    %806 = arith.addf %805, %804 : vector<8x128xf32>
    %807 = arith.divf %805, %806 : vector<8x128xf32>
    %808 = arith.mulf %799, %773 : vector<8x128xf32>
    %809 = arith.mulf %793, %801 : vector<8x128xf32>
    %810 = arith.addf %808, %809 : vector<8x128xf32>
    %811 = math.tanh %810 : vector<8x128xf32>
    %812 = arith.mulf %807, %811 : vector<8x128xf32>
    %813 = arith.addf %776, %812 : vector<8x128xf32>
    %c7_404 = arith.constant 7 : index
    %c0_405 = arith.constant 0 : index
    %c0_406 = arith.constant 0 : index
    %814 = vector.load %arg12[%c7_404, %c0_405, %c0_406] : memref<8x8x512xf32, #tpu.memory_space<vmem>>, vector<1x8x512xf32>
    %815 = vector.shape_cast %814 : vector<1x8x512xf32> to vector<8x512xf32>
    %c0_407 = arith.constant 0 : index
    %c0_408 = arith.constant 0 : index
    %c0_409 = arith.constant 0 : index
    %816 = vector.load %arg12[%c0_407, %c0_408, %c0_409] : memref<8x8x512xf32, #tpu.memory_space<vmem>>, vector<1x8x512xf32>
    %817 = vector.shape_cast %816 : vector<1x8x512xf32> to vector<8x512xf32>
    %818 = vector.shape_cast %18 : vector<1x512xi1> to vector<1x512xi1>
    %819 = vector.broadcast %818 : vector<1x512xi1> to vector<8x512xi1>
    %820 = arith.select %819, %815, %817 : vector<8x512xi1>, vector<8x512xf32>
    %821 = arith.truncf %812 : vector<8x128xf32> to vector<8x128xbf16>
    %c0_410 = arith.constant 0 : index
    %c0_411 = arith.constant 0 : index
    %822 = vector.load %arg6[%c0_410, %c0_411] : memref<128x512xbf16, #tpu.memory_space<vmem>>, vector<128x512xbf16>
    %cst_412 = arith.constant dense<0.000000e+00> : vector<8x512xf32>
    %823 = tpu.matmul %821, %822, %cst_412 {dimension_numbers = #tpu.dot_dimension_numbers<[1], [0], [0], [1], [0, 0, 1, 1], [], []>} : vector<8x128xbf16>, vector<128x512xbf16>, vector<8x512xf32> -> vector<8x512xf32>
    %824 = arith.addf %820, %823 : vector<8x512xf32>
    %825 = vector.extract_strided_slice %824 {offsets = [0, 0], sizes = [8, 128], strides = [1, 1]} : vector<8x512xf32> to vector<8x128xf32>
    %826 = arith.negf %825 : vector<8x128xf32>
    %827 = math.exp %826 : vector<8x128xf32>
    %cst_413 = arith.constant 1.000000e+00 : f32
    %828 = vector.broadcast %cst_413 : f32 to vector<8x128xf32>
    %829 = arith.addf %828, %827 : vector<8x128xf32>
    %830 = arith.divf %828, %829 : vector<8x128xf32>
    %831 = vector.extract_strided_slice %824 {offsets = [0, 128], sizes = [8, 128], strides = [1, 1]} : vector<8x512xf32> to vector<8x128xf32>
    %832 = arith.negf %831 : vector<8x128xf32>
    %833 = math.exp %832 : vector<8x128xf32>
    %cst_414 = arith.constant 1.000000e+00 : f32
    %834 = vector.broadcast %cst_414 : f32 to vector<8x128xf32>
    %835 = arith.addf %834, %833 : vector<8x128xf32>
    %836 = arith.divf %834, %835 : vector<8x128xf32>
    %837 = vector.extract_strided_slice %824 {offsets = [0, 256], sizes = [8, 128], strides = [1, 1]} : vector<8x512xf32> to vector<8x128xf32>
    %838 = math.tanh %837 : vector<8x128xf32>
    %839 = vector.extract_strided_slice %824 {offsets = [0, 384], sizes = [8, 128], strides = [1, 1]} : vector<8x512xf32> to vector<8x128xf32>
    %840 = arith.negf %839 : vector<8x128xf32>
    %841 = math.exp %840 : vector<8x128xf32>
    %cst_415 = arith.constant 1.000000e+00 : f32
    %842 = vector.broadcast %cst_415 : f32 to vector<8x128xf32>
    %843 = arith.addf %842, %841 : vector<8x128xf32>
    %844 = arith.divf %842, %843 : vector<8x128xf32>
    %845 = arith.mulf %836, %810 : vector<8x128xf32>
    %846 = arith.mulf %830, %838 : vector<8x128xf32>
    %847 = arith.addf %845, %846 : vector<8x128xf32>
    %848 = math.tanh %847 : vector<8x128xf32>
    %849 = arith.mulf %844, %848 : vector<8x128xf32>
    %850 = arith.addf %813, %849 : vector<8x128xf32>
    %c0_416 = arith.constant 0 : index
    %c0_417 = arith.constant 0 : index
    %851 = vector.load %arg8[%c0_416, %c0_417] : memref<2x128xf32, #tpu.memory_space<vmem>>, vector<2x128xf32>
    %c0_418 = arith.constant 0 : index
    %c0_419 = arith.constant 0 : index
    %852 = vector.load %arg9[%c0_418, %c0_419] : memref<1x2xf32, #tpu.memory_space<vmem>>, vector<1x2xf32>
    %853 = vector.extract_strided_slice %851 {offsets = [0, 0], sizes = [1, 128], strides = [1, 1]} : vector<2x128xf32> to vector<1x128xf32>
    %854 = vector.broadcast %853 : vector<1x128xf32> to vector<8x128xf32>
    %855 = arith.mulf %850, %854 : vector<8x128xf32>
    %cst_420 = arith.constant dense<0.000000e+00> : vector<8xf32>
    %856 = vector.multi_reduction <add>, %855, %cst_420 [1] : vector<8x128xf32> to vector<8xf32>
    %857 = vector.shape_cast %856 : vector<8xf32> to vector<8x1xf32>
    %858 = vector.extract_strided_slice %852 {offsets = [0, 0], sizes = [1, 1], strides = [1, 1]} : vector<1x2xf32> to vector<1x1xf32>
    %859 = vector.broadcast %858 : vector<1x1xf32> to vector<8x1xf32>
    %860 = arith.addf %857, %859 : vector<8x1xf32>
    %861 = vector.extract_strided_slice %851 {offsets = [1, 0], sizes = [1, 128], strides = [1, 1]} : vector<2x128xf32> to vector<1x128xf32>
    %862 = vector.broadcast %861 : vector<1x128xf32> to vector<8x128xf32>
    %863 = arith.mulf %850, %862 : vector<8x128xf32>
    %cst_421 = arith.constant dense<0.000000e+00> : vector<8xf32>
    %864 = vector.multi_reduction <add>, %863, %cst_421 [1] : vector<8x128xf32> to vector<8xf32>
    %865 = vector.shape_cast %864 : vector<8xf32> to vector<8x1xf32>
    %866 = vector.extract_strided_slice %852 {offsets = [0, 1], sizes = [1, 1], strides = [1, 1]} : vector<1x2xf32> to vector<1x1xf32>
    %867 = vector.broadcast %866 : vector<1x1xf32> to vector<8x1xf32>
    %868 = arith.addf %865, %867 : vector<8x1xf32>
    %869 = arith.maximumf %860, %868 : vector<8x1xf32>
    %cst_422 = arith.constant 0.000000e+00 : f32
    %870 = vector.broadcast %cst_422 : f32 to vector<8x1xf32>
    %871 = arith.subf %860, %869 : vector<8x1xf32>
    %872 = math.exp %871 : vector<8x1xf32>
    %873 = arith.addf %870, %872 : vector<8x1xf32>
    %874 = arith.subf %868, %869 : vector<8x1xf32>
    %875 = math.exp %874 : vector<8x1xf32>
    %876 = arith.addf %873, %875 : vector<8x1xf32>
    %877 = math.log %876 : vector<8x1xf32>
    %878 = arith.addf %877, %869 : vector<8x1xf32>
    %879 = arith.subf %860, %878 : vector<8x1xf32>
    %c0_423 = arith.constant 0 : index
    %c0_424 = arith.constant 0 : index
    %880 = vector.load %arg10[%c0_423, %c0_424] : memref<8x2xf32, #tpu.memory_space<vmem>>, vector<8x1xf32>
    tpu.vector_store %arg10[%c0_423, %c0_424], %879 {strides = array<i32>} : memref<8x2xf32, #tpu.memory_space<vmem>>, vector<8x1xf32>,
    %881 = arith.subf %868, %878 : vector<8x1xf32>
    %c0_425 = arith.constant 0 : index
    %c1_426 = arith.constant 1 : index
    %882 = vector.load %arg10[%c0_425, %c1_426] : memref<8x2xf32, #tpu.memory_space<vmem>>, vector<8x1xf32>
    tpu.vector_store %arg10[%c0_425, %c1_426], %881 {strides = array<i32>} : memref<8x2xf32, #tpu.memory_space<vmem>>, vector<8x1xf32>,
    return
  }
  func.func @transform_0(%arg0: i32) -> (i32, i32, i32) {
    %c0_i32 = arith.constant 0 : i32
    %c0_i32_0 = arith.constant 0 : i32
    %c0_i32_1 = arith.constant 0 : i32
    return %c0_i32, %arg0, %c0_i32_0 : i32, i32, i32
  }
  func.func @transform_1(%arg0: i32) -> (i32, i32) {
    %c0_i32 = arith.constant 0 : i32
    %c0_i32_0 = arith.constant 0 : i32
    %c0_i32_1 = arith.constant 0 : i32
    return %c0_i32, %c0_i32_0 : i32, i32
  }
  func.func @transform_2(%arg0: i32) -> (i32, i32) {
    %c0_i32 = arith.constant 0 : i32
    %c0_i32_0 = arith.constant 0 : i32
    %c0_i32_1 = arith.constant 0 : i32
    return %c0_i32, %c0_i32_0 : i32, i32
  }
  func.func @transform_3(%arg0: i32) -> (i32, i32) {
    %c0_i32 = arith.constant 0 : i32
    %c0_i32_0 = arith.constant 0 : i32
    %c0_i32_1 = arith.constant 0 : i32
    return %c0_i32, %c0_i32_0 : i32, i32
  }
  func.func @transform_4(%arg0: i32) -> (i32, i32) {
    %c0_i32 = arith.constant 0 : i32
    %c0_i32_0 = arith.constant 0 : i32
    %c0_i32_1 = arith.constant 0 : i32
    return %c0_i32, %c0_i32_0 : i32, i32
  }
  func.func @transform_5(%arg0: i32) -> (i32, i32) {
    %c0_i32 = arith.constant 0 : i32
    %c0_i32_0 = arith.constant 0 : i32
    %c0_i32_1 = arith.constant 0 : i32
    return %c0_i32, %c0_i32_0 : i32, i32
  }
  func.func @transform_6(%arg0: i32) -> (i32, i32) {
    %c0_i32 = arith.constant 0 : i32
    %c0_i32_0 = arith.constant 0 : i32
    %c0_i32_1 = arith.constant 0 : i32
    return %c0_i32, %c0_i32_0 : i32, i32
  }
  func.func @transform_7(%arg0: i32) -> (i32, i32) {
    %c0_i32 = arith.constant 0 : i32
    %c0_i32_0 = arith.constant 0 : i32
    %c0_i32_1 = arith.constant 0 : i32
    return %c0_i32, %c0_i32_0 : i32, i32
  }
  func.func @transform_8(%arg0: i32) -> (i32, i32) {
    %c0_i32 = arith.constant 0 : i32
    %c0_i32_0 = arith.constant 0 : i32
    %c0_i32_1 = arith.constant 0 : i32
    return %c0_i32, %c0_i32_0 : i32, i32
  }
  func.func @transform_9(%arg0: i32) -> (i32, i32) {
    %c0_i32 = arith.constant 0 : i32
    %c0_i32_0 = arith.constant 0 : i32
    return %arg0, %c0_i32 : i32, i32
  }
}

</mosaic_0001>

<bundles_post_ra>
// kernel: lstm_classifier_forward.1
= control target key start
LH: loop header
LB: loop body
LE: loop exit
PB: predicated region body
PF: predicated region fallthrough
CT: control target
= control target key end

     0   :  { %14 = vsyncpa [#allocation6], 0  ;;  %s10989_s0 = inlined_call_operand.vmem [shape: f32[8,8,16], index: 0, kind: input, shape index: {}]   ;;  %s10990_s1 = inlined_call_operand.vmem [shape: bf16[16,512], index: 1, kind: input, shape index: {}]   ;;  %s10991_s2 = inlined_call_operand.hbm [shape: bf16[128,512], index: 2, kind: input, shape index: {}]   ;;  %s10992_s3 = inlined_call_operand.vmem [shape: f32[1,512], index: 3, kind: input, shape index: {}]   ;;  %s10993_s4 = inlined_call_operand.hbm [shape: bf16[128,512], index: 4, kind: input, shape index: {}]   ;;  %s10994_s5 = inlined_call_operand.hbm [shape: bf16[128,512], index: 5, kind: input, shape index: {}]   ;;  %s10995_s6 = inlined_call_operand.vmem [shape: f32[1,512], index: 6, kind: input, shape index: {}]   ;;  %s10996_s7 = inlined_call_operand.vmem [shape: f32[2,128], index: 7, kind: input, shape index: {}]   ;;  %s10997_s8 = inlined_call_operand.vmem [shape: f32[1,2], index: 8, kind: input, shape index: {}]   ;;  %s10998_s9 = inlined_call_operand.vmem [shape: f32[8,2], index: 9, kind: output, shape index: {}]  }
   0x1   :  { %15 = vsyncpa [#allocation8], 0  ;;  %s8755_s30 = smov [#allocation7]   ;;  %s8756_s11 = smov [#allocation5]  }
   0x2   :  { %s39_s10 = sshll.u32 %s8755_s30, 4  ;;  %s25_s12 = sshll.u32 %s8756_s11, 4  ;;  %s40_s10 = int_to_ptr.vmem [resolvable:$true] %s39_s10  ;;  %s8813_s12 = int_to_ptr.vmem [resolvable:$true] %s25_s12 }
   0x3   :  { %s8685_s15 = scalar_lea.hbm %s10993_s4, 4096 }
   0x4   :  { %p8686_p0 = scmp.ne.s32.totalorder %s10993_s4, %s8685_s15  ;;  %p8689_p1 = scmp.lt.u32.totalorder %s8685_s15, %s10993_s4 }
   0x6   :  { %p8691_p2 = pnand %p8689_p1, %p8686_p0 }
   0x8   :  { %8694 = shalt.err (!%p8691_p2)
}
   0x9   :  { %s8695_s20 = scalar_lea.vmem %s40_s10, 4096  ;;  %p8700_p4 = scmp.lt.s32.totalorder %s40_s10, %s40_s10 }
   0xa   :  { %p8696_p3 = scmp.ne.s32.totalorder %s40_s10, %s8695_s20  ;;  %p8701_p5 = scmp.lt.s32.totalorder %s8695_s20, %s8695_s20 }
   0xc   :  { %p8702_p6 = por %p8701_p5, %p8700_p4 }
   0xe   :  { %p8703_p7 = pnand %p8702_p6, %p8696_p3 }
  0x10   :  { %8706 = shalt.err (!%p8703_p7)
}
  0x11   :  { %s8757_s21 = smov 256   ;;  %s8758_s22 = smov 16  }
  0x12   :  { %45 = dma.hbm_to_vmem [thread:$0]  %s10993_s4, 4096, %s40_s10, [#allocation8], %s8757_s21, %s8757_s21, %s8758_s22  }
  0x13   :  { %s8707_s27 = scalar_lea.hbm %s10991_s2, 4096 }
  0x14   :  { %p8708_p8 = scmp.ne.s32.totalorder %s10991_s2, %s8707_s27  ;;  %p8711_p9 = scmp.lt.u32.totalorder %s8707_s27, %s10991_s2 }
  0x16   :  { %p8713_p10 = pnand %p8711_p9, %p8708_p8 }
  0x18   :  { %8716 = shalt.err (!%p8713_p10)
}
  0x19   :  { %s8717_s13 = scalar_lea.vmem %s8813_s12, 4096  ;;  %p8722_p12 = scmp.lt.s32.totalorder %s8813_s12, %s8813_s12 }
  0x1a   :  { %p8718_p11 = scmp.ne.s32.totalorder %s8813_s12, %s8717_s13  ;;  %p8723_p13 = scmp.lt.s32.totalorder %s8717_s13, %s8717_s13 }
  0x1c   :  { %p8724_p0 = por %p8723_p13, %p8722_p12 }
  0x1e   :  { %p8725_p1 = pnand %p8724_p0, %p8718_p11 }
  0x20   :  { %8728 = shalt.err (!%p8725_p1)
}
  0x21   :  { %31 = dma.hbm_to_vmem [thread:$0]  %s10991_s2, 4096, %s8813_s12, [#allocation6], %s8757_s21, %s8757_s21, %s8758_s22  }
  0x22   :  { %s8759_s14 = smov [#allocation9]   ;;  %s8729_s18 = scalar_lea.hbm %s10994_s5, 4096 }
  0x23   :  { %s51_s15 = sshll.u32 %s8759_s14, 4  ;;  %p8730_p2 = scmp.ne.s32.totalorder %s10994_s5, %s8729_s18  ;;  %s52_s15 = int_to_ptr.vmem [resolvable:$true] %s51_s15 }
  0x24   :  { %p8733_p3 = scmp.lt.u32.totalorder %s8729_s18, %s10994_s5 }
  0x26   :  { %p8735_p4 = pnand %p8733_p3, %p8730_p2 }
  0x28   :  { %8738 = shalt.err (!%p8735_p4)
}
  0x29   :  { %s8739_s25 = scalar_lea.vmem %s52_s15, 4096  ;;  %p8744_p6 = scmp.lt.s32.totalorder %s52_s15, %s52_s15 }
  0x2a   :  { %p8740_p5 = scmp.ne.s32.totalorder %s52_s15, %s8739_s25  ;;  %p8745_p7 = scmp.lt.s32.totalorder %s8739_s25, %s8739_s25 }
  0x2c   :  { %p8746_p8 = por %p8745_p7, %p8744_p6 }
  0x2e   :  { %p8747_p9 = pnand %p8746_p8, %p8740_p5 }
  0x30   :  { %8750 = shalt.err (!%p8747_p9)
}
  0x31   :  { %57 = dma.hbm_to_vmem [thread:$0]  %s10994_s5, 4096, %s52_s15, [#allocation8], %s8757_s21, %s8757_s21, %s8758_s22  }
  0x32   :  { %8751 = dma.done.wait [#allocation6], 4096  }
  0x33   :  { %8752 = vsyncadd [#allocation6], 4294963200 }
  0x34   :  { %8753 = dma.done.wait [#allocation8], 8192  }
  0x35   :  { %8754 = vsyncadd [#allocation8], 4294959104  ;;  %v10999_v0 = vmov 0   ;;  %v8870_v1 = vld [vmem:[%s10990_s1 + $0x4] ss:$16 sps:$4 sm:$0xff]   ;;  %vm180_vm0 = vcmask 130048  }
  0x36   :  { %216 = vmatprep.mubr.bf16.mxu0 %v10999_v0  ;;  %257 = vmatprep.mubr.bf16.mxu1 %v10999_v0  ;;  %v8875_v2 = vld [vmem:[%s10990_s1 + $0xc] ss:$16 sps:$4 sm:$0xff]   ;;  %v8881_v3 = vld [vmem:[%s10990_s1] ss:$16 sps:$4 sm:$0xff]   ;;  %v8886_v4 = vld [vmem:[%s10990_s1 + $0x8] ss:$16 sps:$4 sm:$0xff]  }
  0x37   :  { %184 = vmatprep.subr.bf16.mxu0 %v8870_v1  ;;  %v132_v5 = vld [vmem:[%s10989_s0] sm:$0xff]  ;;  %225 = vmatprep.subr.bf16.mxu1 %v8875_v2  ;;  %v7447_v7 = vld [vmem:[%s10989_s0 + $0x8] sm:$0xff]  ;;  %v7454_v9 = vld [vmem:[%s10989_s0 + $0x10] sm:$0xff]  ;;  %s8761_s22 = smov 127   ;;  %vm7426_vm5 = vcmask 7168   ;;  %vm7433_vm6 = vcmask 15368  }
  0x38   :  { %v133_v6 = vpack.c.bf16 %v132_v5, %v132_v5  ;;  %185 = vmatpush1.bf16.msra.mxu0 %v8881_v3  ;;  %226 = vmatpush1.bf16.msra.mxu1 %v8886_v4  ;;  %v272_v8 = vpack.c.bf16 %v7447_v7, %v7447_v7  ;;  %v411_v10 = vpack.c.bf16 %v7454_v9, %v7454_v9  ;;  %v7461_v11 = vld [vmem:[%s10989_s0 + $0x18] sm:$0xff]  ;;  %v7468_v13 = vld [vmem:[%s10989_s0 + $0x20] sm:$0xff]  ;;  %v7475_v15 = vld [vmem:[%s10989_s0 + $0x28] sm:$0xff] }
  0x39   :  { %322 = vmatprep.subr.bf16.mxu0 %v8870_v1  ;;  %363 = vmatprep.subr.bf16.mxu1 %v8875_v2  ;;  %v550_v12 = vpack.c.bf16 %v7461_v11, %v7461_v11  ;;  %v689_v14 = vpack.c.bf16 %v7468_v13, %v7468_v13  ;;  %v828_v16 = vpack.c.bf16 %v7475_v15, %v7475_v15  ;;  %v7482_v17 = vld [vmem:[%s10989_s0 + $0x30] sm:$0xff]  ;;  %v8964_v20 = vld [vmem:[#allocation5 + $0xc] ss:$16 sps:$4 sm:$0xff]   ;;  %v8978_v23 = vld [vmem:[#allocation5 + $0x8] ss:$16 sps:$4 sm:$0xff]  }
  0x3a   :  { %v967_v18 = vpack.c.bf16 %v7482_v17, %v7482_v17  ;;  %v8962_v19 = vld [vmem:[#allocation5 + $0x4] ss:$16 sps:$4 sm:$0xff]   ;;  %v7489_v21 = vld [vmem:[%s10989_s0 + $0x38] sm:$0xff]  ;;  %v8975_v22 = vld [vmem:[#allocation5] ss:$16 sps:$4 sm:$0xff]  }
  0x3b   :  { %7445 = vmatmul.mubr.msk.bf16.vlgmr.msra.gmra.mrb[0].mxu0 %vm180_vm0, %v133_v6  ;;  %7446 = vmatmul.mubr.msk.bf16.vlgmr.msra.gmra.mrb[0].mxu1 %vm180_vm0, %v133_v6  ;;  %v1106_v24 = vpack.c.bf16 %v7489_v21, %v7489_v21  ;;  %v8981_v25 = vld [vmem:[#allocation5 + $0x24] ss:$16 sps:$4 sm:$0xff]   ;;  %v8983_v26 = vld [vmem:[#allocation5 + $0x2c] ss:$16 sps:$4 sm:$0xff]   ;;  %v8985_v27 = vld [vmem:[#allocation5 + $0x20] ss:$16 sps:$4 sm:$0xff]  }
  0x3c   :  { %323 = vmatpush1.bf16.msra.mxu0 %v8881_v3  ;;  %364 = vmatpush1.bf16.msra.mxu1 %v8886_v4  ;;  %v8987_v28 = vld [vmem:[#allocation5 + $0x28] ss:$16 sps:$4 sm:$0xff]   ;;  %v8991_v29 = vld [vmem:[#allocation5 + $0x44] ss:$16 sps:$4 sm:$0xff]   ;;  %v8993_v30 = vld [vmem:[#allocation5 + $0x4c] ss:$16 sps:$4 sm:$0xff]  }
  0x3d   :  { %354 = vmatprep.mubr.bf16.mxu0 %v10999_v0  ;;  %395 = vmatprep.mubr.bf16.mxu1 %v10999_v0  ;;  %v8999_v31 = vld [vmem:[#allocation5 + $0x40] ss:$16 sps:$4 sm:$0xff]   ;;  %v9001_v32 = vld [vmem:[#allocation5 + $0x48] ss:$16 sps:$4 sm:$0xff]   ;;  %v9005_v33 = vld [vmem:[#allocation5 + $0x64] ss:$16 sps:$4 sm:$0xff]  }
  0x3e   :  { %461 = vmatprep.subr.bf16.mxu0 %v8870_v1  ;;  %502 = vmatprep.subr.bf16.mxu1 %v8875_v2  ;;  %v9007_v34 = vld [vmem:[#allocation5 + $0x6c] ss:$16 sps:$4 sm:$0xff]   ;;  %v9013_v35 = vld [vmem:[#allocation5 + $0x60] ss:$16 sps:$4 sm:$0xff]   ;;  %v9015_v36 = vld [vmem:[#allocation5 + $0x68] ss:$16 sps:$4 sm:$0xff]  }
  0x3f   :  { %v9017_v37 = vld [vmem:[#allocation5 + $0x84] ss:$16 sps:$4 sm:$0xff]   ;;  %v9019_v38 = vld [vmem:[#allocation5 + $0x8c] ss:$16 sps:$4 sm:$0xff]   ;;  %v9025_v39 = vld [vmem:[#allocation5 + $0x80] ss:$16 sps:$4 sm:$0xff]  }
  0x40   :  { %v9027_v40 = vld [vmem:[#allocation5 + $0x88] ss:$16 sps:$4 sm:$0xff]   ;;  %v9029_v41 = vld [vmem:[#allocation5 + $0xa4] ss:$16 sps:$4 sm:$0xff]   ;;  %v9031_v42 = vld [vmem:[#allocation5 + $0xac] ss:$16 sps:$4 sm:$0xff]  }
  0x41   :  { %v9039_v43 = vld [vmem:[#allocation5 + $0xa0] ss:$16 sps:$4 sm:$0xff]   ;;  %v9041_v44 = vld [vmem:[#allocation5 + $0xa8] ss:$16 sps:$4 sm:$0xff]   ;;  %v9045_v45 = vld [vmem:[#allocation5 + $0xc4] ss:$16 sps:$4 sm:$0xff]  }
  0x42   :  { %11118 = vst [vmem:[#allocation12_spill] sm:$0xff] %v9041_v44  ;;  %11119 = vst [vmem:[#allocation13_spill] sm:$0xff] %v9045_v45  ;;  %v9047_v46 = vld [vmem:[#allocation5 + $0xcc] ss:$16 sps:$4 sm:$0xff]   ;;  %v9051_v47 = vld [vmem:[#allocation5 + $0xc0] ss:$16 sps:$4 sm:$0xff]  }
  0x43   :  { %7452 = vmatmul.mubr.msk.bf16.vlgmr.msra.gmra.mrb[4].mxu0 %vm180_vm0, %v272_v8  ;;  %7453 = vmatmul.mubr.msk.bf16.vlgmr.msra.gmra.mrb[4].mxu1 %vm180_vm0, %v272_v8  ;;  %11120 = vst [vmem:[#allocation14_spill] sm:$0xff] %v9047_v46  ;;  %11121 = vst [vmem:[#allocation15_spill] sm:$0xff] %v9051_v47  ;;  %v9053_v48 = vld [vmem:[#allocation5 + $0xc8] ss:$16 sps:$4 sm:$0xff]   ;;  %v9057_v49 = vld [vmem:[#allocation5 + $0xe4] ss:$16 sps:$4 sm:$0xff]  }
  0x44   :  { %462 = vmatpush1.bf16.msra.mxu0 %v8881_v3  ;;  %503 = vmatpush1.bf16.msra.mxu1 %v8886_v4  ;;  %11122 = vst [vmem:[#allocation16_spill] sm:$0xff] %v9053_v48  ;;  %11123 = vst [vmem:[#allocation17_spill] sm:$0xff] %v9057_v49  ;;  %v9059_v50 = vld [vmem:[#allocation5 + $0xec] ss:$16 sps:$4 sm:$0xff]   ;;  %v9063_v51 = vld [vmem:[#allocation5 + $0xe0] ss:$16 sps:$4 sm:$0xff]  }
  0x45   :  { %493 = vmatprep.mubr.bf16.mxu0 %v10999_v0  ;;  %534 = vmatprep.mubr.bf16.mxu1 %v10999_v0  ;;  %11124 = vst [vmem:[#allocation18_spill] sm:$0xff] %v9059_v50  ;;  %11125 = vst [vmem:[#allocation19_spill] sm:$0xff] %v9063_v51  ;;  %v9065_v52 = vld [vmem:[#allocation5 + $0xe8] ss:$16 sps:$4 sm:$0xff]  }
  0x46   :  { %600 = vmatprep.subr.bf16.mxu0 %v8870_v1  ;;  %641 = vmatprep.subr.bf16.mxu1 %v8875_v2  ;;  %11126 = vst [vmem:[#allocation20_spill] sm:$0xff] %v9065_v52 }
  0x4b   :  { %7459 = vmatmul.mubr.msk.bf16.vlgmr.msra.gmra.mrb[8].mxu0 %vm180_vm0, %v411_v10  ;;  %7460 = vmatmul.mubr.msk.bf16.vlgmr.msra.gmra.mrb[8].mxu1 %vm180_vm0, %v411_v10  ;;  %v74_v10 = vlaneseq }
  0x4c   :  { %601 = vmatpush1.bf16.msra.mxu0 %v8881_v3  ;;  %642 = vmatpush1.bf16.msra.mxu1 %v8886_v4 }
  0x4d   :  { %632 = vmatprep.mubr.bf16.mxu0 %v10999_v0  ;;  %673 = vmatprep.mubr.bf16.mxu1 %v10999_v0  ;;  %v9133_v15 = vand.u32 127, %v74_v10 }
  0x4e   :  { %739 = vmatprep.subr.bf16.mxu0 %v8870_v1  ;;  %780 = vmatprep.subr.bf16.mxu1 %v8875_v2 }
  0x4f   :  { %11127 = vst [vmem:[#allocation21_spill] sm:$0xff] %v9133_v15  ;;  %vm127_vm1 = vcmp.lt.s32.totalorder %v9133_v15, 64 }
  0x53   :  { %7466 = vmatmul.mubr.msk.bf16.vlgmr.msra.gmra.mrb[12].mxu0 %vm180_vm0, %v550_v12  ;;  %7467 = vmatmul.mubr.msk.bf16.vlgmr.msra.gmra.mrb[12].mxu1 %vm180_vm0, %v550_v12 }
  0x54   :  { %740 = vmatpush1.bf16.msra.mxu0 %v8881_v3  ;;  %781 = vmatpush1.bf16.msra.mxu1 %v8886_v4 }
  0x55   :  { %771 = vmatprep.mubr.bf16.mxu0 %v10999_v0  ;;  %812 = vmatprep.mubr.bf16.mxu1 %v10999_v0 }
  0x56   :  { %878 = vmatprep.subr.bf16.mxu0 %v8870_v1  ;;  %919 = vmatprep.subr.bf16.mxu1 %v8875_v2 }
  0x5b   :  { %7473 = vmatmul.mubr.msk.bf16.vlgmr.msra.gmra.mrb[16].mxu0 %vm180_vm0, %v689_v14  ;;  %7474 = vmatmul.mubr.msk.bf16.vlgmr.msra.gmra.mrb[16].mxu1 %vm180_vm0, %v689_v14 }
  0x5c   :  { %879 = vmatpush1.bf16.msra.mxu0 %v8881_v3  ;;  %920 = vmatpush1.bf16.msra.mxu1 %v8886_v4 }
  0x5d   :  { %910 = vmatprep.mubr.bf16.mxu0 %v10999_v0  ;;  %951 = vmatprep.mubr.bf16.mxu1 %v10999_v0 }
  0x5e   :  { %1017 = vmatprep.subr.bf16.mxu0 %v8870_v1  ;;  %1058 = vmatprep.subr.bf16.mxu1 %v8875_v2 }
  0x63   :  { %7480 = vmatmul.mubr.msk.bf16.vlgmr.msra.gmra.mrb[20].mxu0 %vm180_vm0, %v828_v16  ;;  %7481 = vmatmul.mubr.msk.bf16.vlgmr.msra.gmra.mrb[20].mxu1 %vm180_vm0, %v828_v16  ;;  %v141_v16 = vshrl.u32 %v74_v10, 7 }
  0x64   :  { %1018 = vmatpush1.bf16.msra.mxu0 %v8881_v3  ;;  %1059 = vmatpush1.bf16.msra.mxu1 %v8886_v4 }
  0x65   :  { %1049 = vmatprep.mubr.bf16.mxu0 %v10999_v0  ;;  %1090 = vmatprep.mubr.bf16.mxu1 %v10999_v0  ;;  %v9137_v21 = vsub.s32 2, %v141_v16 }
  0x66   :  { %1156 = vmatprep.subr.bf16.mxu0 %v8870_v1  ;;  %1197 = vmatprep.subr.bf16.mxu1 %v8875_v2 }
  0x67   :  { %11128 = vst [vmem:[#allocation22_spill] sm:$0xff] %v9137_v21 }
  0x6b   :  { %7487 = vmatmul.mubr.msk.bf16.vlgmr.msra.gmra.mrb[24].mxu0 %vm180_vm0, %v967_v18  ;;  %7488 = vmatmul.mubr.msk.bf16.vlgmr.msra.gmra.mrb[24].mxu1 %vm180_vm0, %v967_v18 }
  0x6c   :  { %1157 = vmatpush1.bf16.msra.mxu0 %v8881_v3  ;;  %1198 = vmatpush1.bf16.msra.mxu1 %v8886_v4 }
  0x6d   :  { %1188 = vmatprep.mubr.bf16.mxu0 %v10999_v0  ;;  %1229 = vmatprep.mubr.bf16.mxu1 %v10999_v0 }
  0x6e   :  { %1455 = vmatprep.subr.bf16.mxu0 %v8962_v19  ;;  %1496 = vmatprep.subr.bf16.mxu1 %v8964_v20 }
  0x73   :  { %7494 = vmatmul.mubr.msk.bf16.vlgmr.msra.gmra.mrb[28].mxu0 %vm180_vm0, %v1106_v24  ;;  %7495 = vmatmul.mubr.msk.bf16.vlgmr.msra.gmra.mrb[28].mxu1 %vm180_vm0, %v1106_v24  ;;  %v9139_v24 = vsub.s32 3, %v141_v16 }
  0x74   :  { %1456 = vmatpush1.bf16.msra.mxu0 %v8975_v22  ;;  %1497 = vmatpush1.bf16.msra.mxu1 %v8978_v23 }
  0x75   :  { %1457 = vmatprep.subr.bf16.mxu0 %v8981_v25  ;;  %1498 = vmatprep.subr.bf16.mxu1 %v8983_v26  ;;  %11129 = vst [vmem:[#allocation23_spill] sm:$0xff] %v9139_v24 }
  0x76   :  { %1487 = vmatprep.mubr.bf16.mxu0 %v10999_v0  ;;  %1528 = vmatprep.mubr.bf16.mxu1 %v10999_v0 }
  0x78   :  { %1458 = vmatpush1.bf16.msra.mxu0 %v8985_v27  ;;  %1499 = vmatpush1.bf16.msra.mxu1 %v8987_v28 }
  0x79   :  { %1459 = vmatprep.subr.bf16.mxu0 %v8991_v29  ;;  %1500 = vmatprep.subr.bf16.mxu1 %v8993_v30 }
  0x7c   :  { %1460 = vmatpush1.bf16.msra.mxu0 %v8999_v31  ;;  %1501 = vmatpush1.bf16.msra.mxu1 %v9001_v32 }
  0x7d   :  { %1461 = vmatprep.subr.bf16.mxu0 %v9005_v33  ;;  %1502 = vmatprep.subr.bf16.mxu1 %v9007_v34 }
  0x80   :  { %1462 = vmatpush1.bf16.msra.mxu0 %v9013_v35  ;;  %1503 = vmatpush1.bf16.msra.mxu1 %v9015_v36 }
  0x81   :  { %1463 = vmatprep.subr.bf16.mxu0 %v9017_v37  ;;  %1504 = vmatprep.subr.bf16.mxu1 %v9019_v38 }
  0x84   :  { %1464 = vmatpush1.bf16.msra.mxu0 %v9025_v39  ;;  %1505 = vmatpush1.bf16.msra.mxu1 %v9027_v40 }
  0x85   :  { %1465 = vmatprep.subr.bf16.mxu0 %v9029_v41  ;;  %1506 = vmatprep.subr.bf16.mxu1 %v9031_v42 }
  0x88   :  { %1466 = vmatpush1.bf16.msra.mxu0 %v9039_v43  ;;  %1507 = vmatpush1.bf16.msra.mxu1 %v9041_v44 }
  0x89   :  { %1467 = vmatprep.subr.bf16.mxu0 %v9045_v45  ;;  %1508 = vmatprep.subr.bf16.mxu1 %v9047_v46 }
  0x8c   :  { %1468 = vmatpush1.bf16.msra.mxu0 %v9051_v47  ;;  %1509 = vmatpush1.bf16.msra.mxu1 %v9053_v48 }
  0x8d   :  { %1469 = vmatprep.subr.bf16.mxu0 %v9057_v49  ;;  %1510 = vmatprep.subr.bf16.mxu1 %v9059_v50 }
  0x90   :  { %1470 = vmatpush1.bf16.msra.mxu0 %v9063_v51  ;;  %1511 = vmatpush1.bf16.msra.mxu1 %v9065_v52 }
  0x91   :  { %1771 = vmatprep.subr.bf16.mxu0 %v8962_v19  ;;  %1812 = vmatprep.subr.bf16.mxu1 %v8964_v20 }
  0x93   :  { %1488 = vmatmul.mubr.bf16.vlgmr.msra.gmra.mrb[32].mxu0 %v10999_v0  ;;  %1529 = vmatmul.mubr.bf16.vlgmr.msra.gmra.mrb[32].mxu1 %v10999_v0 }
  0x94   :  { %1772 = vmatpush1.bf16.msra.mxu0 %v8975_v22  ;;  %1813 = vmatpush1.bf16.msra.mxu1 %v8978_v23 }
  0x95   :  { %1773 = vmatprep.subr.bf16.mxu0 %v8981_v25  ;;  %1814 = vmatprep.subr.bf16.mxu1 %v8983_v26 }
  0x96   :  { %1803 = vmatprep.mubr.bf16.mxu0 %v10999_v0  ;;  %1844 = vmatprep.mubr.bf16.mxu1 %v10999_v0 }
  0x98   :  { %1774 = vmatpush1.bf16.msra.mxu0 %v8985_v27  ;;  %1815 = vmatpush1.bf16.msra.mxu1 %v8987_v28 }
  0x99   :  { %1775 = vmatprep.subr.bf16.mxu0 %v8991_v29  ;;  %1816 = vmatprep.subr.bf16.mxu1 %v8993_v30 }
  0x9c   :  { %1776 = vmatpush1.bf16.msra.mxu0 %v8999_v31  ;;  %1817 = vmatpush1.bf16.msra.mxu1 %v9001_v32 }
  0x9d   :  { %1777 = vmatprep.subr.bf16.mxu0 %v9005_v33  ;;  %1818 = vmatprep.subr.bf16.mxu1 %v9007_v34 }
  0xa0   :  { %1778 = vmatpush1.bf16.msra.mxu0 %v9013_v35  ;;  %1819 = vmatpush1.bf16.msra.mxu1 %v9015_v36 }
  0xa1   :  { %1779 = vmatprep.subr.bf16.mxu0 %v9017_v37  ;;  %1820 = vmatprep.subr.bf16.mxu1 %v9019_v38 }
  0xa4   :  { %1780 = vmatpush1.bf16.msra.mxu0 %v9025_v39  ;;  %1821 = vmatpush1.bf16.msra.mxu1 %v9027_v40 }
  0xa5   :  { %1781 = vmatprep.subr.bf16.mxu0 %v9029_v41  ;;  %1822 = vmatprep.subr.bf16.mxu1 %v9031_v42 }
  0xa8   :  { %1782 = vmatpush1.bf16.msra.mxu0 %v9039_v43  ;;  %1823 = vmatpush1.bf16.msra.mxu1 %v9041_v44 }
  0xa9   :  { %1783 = vmatprep.subr.bf16.mxu0 %v9045_v45  ;;  %1824 = vmatprep.subr.bf16.mxu1 %v9047_v46 }
  0xac   :  { %1784 = vmatpush1.bf16.msra.mxu0 %v9051_v47  ;;  %1825 = vmatpush1.bf16.msra.mxu1 %v9053_v48 }
  0xad   :  { %1785 = vmatprep.subr.bf16.mxu0 %v9057_v49  ;;  %1826 = vmatprep.subr.bf16.mxu1 %v9059_v50 }
  0xb0   :  { %1786 = vmatpush1.bf16.msra.mxu0 %v9063_v51  ;;  %1827 = vmatpush1.bf16.msra.mxu1 %v9065_v52 }
  0xb1   :  { %2088 = vmatprep.subr.bf16.mxu0 %v8962_v19  ;;  %2129 = vmatprep.subr.bf16.mxu1 %v8964_v20  ;;  %v77_v19 = vadd.s32 256, %v9133_v15  ;;  %v76_v20 = vadd.s32 128, %v9133_v15 }
  0xb3   :  { %v97_v0 = vand.u32 127, %v77_v19  ;;  %v90_v52 = vand.u32 127, %v76_v20 }
  0xb5   :  { %vm9165_vm2 = vcmp.lt.s32.totalorder %v97_v0, 64  ;;  %vm9169_vm3 = vcmp.lt.s32.totalorder %v90_v52, 64  ;;  %v416_v0 = vld [vmem:[%s10992_s3] sm:$0xf] }
 0x10e   :  { %v9109_v53 = vpop.f32.mrb[0].mxu0  ;;  %v9111_v54 = vpop.f32.mrb[0].mxu1 }
 0x10f   :  { %v9113_v55 = vpop.f32.mrb[1].mxu0  ;;  %v9115_v56 = vpop.f32.mrb[1].mxu1 }
 0x110   :  { %v222_v57 = vpop.f32.mrb[2].mxu0  ;;  %v263_v58 = vpop.f32.mrb[2].mxu1 }
 0x111   :  { %v223_v59 = vpop.f32.mrb[3].mxu0  ;;  %v264_v60 = vpop.f32.mrb[3].mxu1 }
 0x112   :  { %v78_v59 = vadd.s32 384, %v9133_v15  ;;  %v555_v60 = vld [vmem:[%s10992_s3] sm:$0xf] }
 0x114   :  { %v104_v49 = vand.u32 127, %v78_v59 }
 0x116   :  { %v9117_v61 = vpop.f32.mrb[4].mxu0  ;;  %v9119_v62 = vpop.f32.mrb[4].mxu1  ;;  %vm9175_vm4 = vcmp.lt.s32.totalorder %v104_v49, 64 }
 0x117   :  { %v9121_v63 = vpop.f32.mrb[5].mxu0  ;;  %v9123_v1 = vpop.f32.mrb[5].mxu1 }
 0x118   :  { %v360_v2 = vpop.f32.mrb[6].mxu0  ;;  %v401_v3 = vpop.f32.mrb[6].mxu1 }
 0x119   :  { %v361_v4 = vpop.f32.mrb[7].mxu0  ;;  %v402_v5 = vpop.f32.mrb[7].mxu1  ;;  %v694_v3 = vld [vmem:[%s10992_s3] sm:$0xf] }
 0x11a   :  { %v9148_v5 = vsub.s32 0, %v141_v16  ;;  %v707_v50 = vrot.slane %v694_v3, %v9137_v21  ;;  %v711_v48 = vrot.slane %v694_v3, %v9139_v24 }
 0x11c   :  { %11130 = vst [vmem:[#allocation24_spill] sm:$0xff] %v9148_v5  ;;  %v560_v51 = vrot.slane %v555_v60, %v9148_v5 }
 0x11e   :  { %v9125_v6 = vpop.f32.mrb[8].mxu0  ;;  %v9127_v7 = vpop.f32.mrb[8].mxu1 }
 0x11f   :  { %v9129_v8 = vpop.f32.mrb[9].mxu0  ;;  %v9131_v9 = vpop.f32.mrb[9].mxu1 }
 0x120   :  { %v499_v11 = vpop.f32.mrb[10].mxu0  ;;  %v540_v12 = vpop.f32.mrb[10].mxu1 }
 0x121   :  { %v500_v13 = vpop.f32.mrb[11].mxu0  ;;  %v541_v14 = vpop.f32.mrb[11].mxu1  ;;  %v568_v11 = vrot.slane %v555_v60, %v9137_v21 }
 0x122   :  { %v9151_v13 = vsub.s32 1, %v141_v16  ;;  %v572_v14 = vrot.slane %v555_v60, %v9139_v24 }
 0x124   :  { %11131 = vst [vmem:[#allocation25_spill] sm:$0xff] %v9151_v13 }
 0x126   :  { %v634_v17 = vpop.f32.mrb[12].mxu0  ;;  %v675_v18 = vpop.f32.mrb[12].mxu1 }
 0x127   :  { %v636_v57 = vpop.f32.mrb[13].mxu0  ;;  %v677_v58 = vpop.f32.mrb[13].mxu1 }
 0x128   :  { %v638_v2 = vpop.f32.mrb[14].mxu0  ;;  %v679_v4 = vpop.f32.mrb[14].mxu1  ;;  %v9162_v47 = vadd.f32 %v677_v58, %v572_v14 }
 0x129   :  { %v639_v10 = vpop.f32.mrb[15].mxu0  ;;  %v680_v12 = vpop.f32.mrb[15].mxu1  ;;  %v699_v2 = vrot.slane %v694_v3, %v9148_v5  ;;  %v564_v4 = vrot.slane %v555_v60, %v9151_v13  ;;  %v635_v60 = vadd.f32 %v634_v17, %v560_v51 }
 0x12a   :  { %v703_v10 = vrot.slane %v694_v3, %v9151_v13  ;;  %v9160_v12 = vadd.f32 %v675_v18, %v568_v11  ;;  %11133 = vst [vmem:[#allocation27_spill] sm:$0xff] %v9162_v47 }
 0x12b   :  { %v9182_v11 = vadd.f32 %v636_v57, %v564_v4 }
 0x12c   :  { %11132 = vst [vmem:[#allocation26_spill] sm:$0xff] %v9160_v12 }
 0x12d   :  { %11141 = vst [vmem:[#allocation29_spill] sm:$0xff] %v9182_v11 }
 0x12e   :  { %v773_v16 = vpop.f32.mrb[16].mxu0  ;;  %v814_v19 = vpop.f32.mrb[16].mxu1 }
 0x12f   :  { %v774_v46 = vadd.f32 %v773_v16, %v699_v2  ;;  %v775_v45 = vpop.f32.mrb[17].mxu0  ;;  %v9173_v3 = vadd.f32 %v814_v19, %v707_v50  ;;  %v816_v18 = vpop.f32.mrb[17].mxu1  ;;  %v833_v50 = vld [vmem:[%s10992_s3] sm:$0xf]  ;;  %v421_v19 = vrot.slane %v416_v0, %v9148_v5 }
 0x130   :  { %v9184_v52 = vadd.f32 %v775_v45, %v703_v10  ;;  %v777_v14 = vpop.f32.mrb[18].mxu0  ;;  %v9186_v44 = vadd.f32 %v816_v18, %v711_v48  ;;  %v818_v51 = vpop.f32.mrb[18].mxu1  ;;  %v838_v18 = vrot.slane %v833_v50, %v9148_v5 }
 0x131   :  { %11138 = vst [vmem:[#allocation28_spill] sm:$0xff] %v9173_v3  ;;  %v778_v49 = vpop.f32.mrb[19].mxu0  ;;  %v819_v17 = vpop.f32.mrb[19].mxu1  ;;  %v9193_v2 = vsel %vm127_vm1, %v635_v60, %v774_v46  ;;  %v9201_v48 = vsel %vm127_vm1, %v774_v46, %v635_v60  ;;  %v429_v60 = vrot.slane %v416_v0, %v9137_v21  ;;  %v846_v14 = vrot.slane %v833_v50, %v9137_v21 }
 0x132   :  { %11142 = vst [vmem:[#allocation30_spill] sm:$0xff] %v9184_v52  ;;  %11143 = vst [vmem:[#allocation31_spill] sm:$0xff] %v9186_v44  ;;  %v425_v51 = vrot.slane %v416_v0, %v9151_v13  ;;  %v433_v49 = vrot.slane %v416_v0, %v9139_v24  ;;  %v842_v17 = vrot.slane %v833_v50, %v9151_v13  ;;  %v277_v0 = vld [vmem:[%s10992_s3] sm:$0xf] }
 0x133   :  { %11144 = vst [vmem:[#allocation32_spill] sm:$0xff] %v9193_v2  ;;  %11145 = vst [vmem:[#allocation33_spill] sm:$0xff] %v9201_v48  ;;  %v850_v46 = vrot.slane %v833_v50, %v9139_v24  ;;  %v496_v16 = vadd.f32 %v9125_v6, %v421_v19  ;;  %v9233_v4 = vadd.f32 %v9127_v7, %v429_v60 }
 0x134   :  { %v9241_v52 = vadd.f32 %v9129_v8, %v425_v51  ;;  %v9244_v50 = vadd.f32 %v9131_v9, %v433_v49  ;;  %v290_v51 = vrot.slane %v277_v0, %v9137_v21 }
 0x136   :  { %v912_v57 = vpop.f32.mrb[20].mxu0  ;;  %v953_v10 = vpop.f32.mrb[20].mxu1  ;;  %11146 = vst [vmem:[#allocation34_spill] sm:$0xff] %v9241_v52  ;;  %11147 = vst [vmem:[#allocation35_spill] sm:$0xff] %v9244_v50 }
 0x137   :  { %v913_v45 = vadd.f32 %v912_v57, %v838_v18  ;;  %v9235_v48 = vadd.f32 %v953_v10, %v846_v14  ;;  %v914_v44 = vpop.f32.mrb[21].mxu0  ;;  %v955_v47 = vpop.f32.mrb[21].mxu1  ;;  %v972_v10 = vld [vmem:[%s10992_s3] sm:$0xf]  ;;  %v282_v14 = vrot.slane %v277_v0, %v9148_v5 }
 0x138   :  { %v9246_v11 = vadd.f32 %v914_v44, %v842_v17  ;;  %v9248_v6 = vadd.f32 %v955_v47, %v850_v46  ;;  %v916_v7 = vpop.f32.mrb[22].mxu0  ;;  %v957_v57 = vpop.f32.mrb[22].mxu1  ;;  %v977_v49 = vrot.slane %v972_v10, %v9148_v5  ;;  %v985_v17 = vrot.slane %v972_v10, %v9137_v21 }
 0x139   :  { %v917_v19 = vpop.f32.mrb[23].mxu0  ;;  %v958_v60 = vpop.f32.mrb[23].mxu1  ;;  %v9255_v18 = vsel %vm127_vm1, %v496_v16, %v913_v45  ;;  %v9263_v47 = vsel %vm127_vm1, %v913_v45, %v496_v16  ;;  %v286_v7 = vrot.slane %v277_v0, %v9151_v13  ;;  %v294_v57 = vrot.slane %v277_v0, %v9139_v24  ;;  %v138_v0 = vld [vmem:[%s10992_s3] sm:$0xf] }
 0x13a   :  { %11148 = vst [vmem:[#allocation36_spill] sm:$0xff] %v9246_v11  ;;  %11149 = vst [vmem:[#allocation37_spill] sm:$0xff] %v9248_v6  ;;  %v981_v19 = vrot.slane %v972_v10, %v9151_v13  ;;  %v989_v60 = vrot.slane %v972_v10, %v9139_v24  ;;  %v357_v16 = vadd.f32 %v9117_v61, %v282_v14 }
 0x13b   :  { %11150 = vst [vmem:[#allocation38_spill] sm:$0xff] %v9263_v47  ;;  %v9295_v46 = vadd.f32 %v9119_v62, %v290_v51  ;;  %v9303_v12 = vadd.f32 %v9121_v63, %v286_v7  ;;  %v9306_v10 = vadd.f32 %v9123_v1, %v294_v57  ;;  %v143_v7 = vrot.slane %v138_v0, %v9148_v5 }
 0x13c   :  { %v151_v57 = vrot.slane %v138_v0, %v9137_v21 }
 0x13d   :  { %11151 = vst [vmem:[#allocation39_spill] sm:$0xff] %v9295_v46  ;;  %11153 = vst [vmem:[#allocation41_spill] sm:$0xff] %v9303_v12 }
 0x13e   :  { %v1051_v45 = vpop.f32.mrb[24].mxu0  ;;  %v1092_v8 = vpop.f32.mrb[24].mxu1  ;;  %11154 = vst [vmem:[#allocation42_spill] sm:$0xff] %v9306_v10 }
 0x13f   :  { %v1052_v9 = vadd.f32 %v1051_v45, %v977_v49  ;;  %v9297_v44 = vadd.f32 %v1092_v8, %v985_v17  ;;  %v1053_v47 = vpop.f32.mrb[25].mxu0  ;;  %v1094_v3 = vpop.f32.mrb[25].mxu1  ;;  %v1111_v8 = vld [vmem:[%s10992_s3] sm:$0xf]  ;;  %v9357_v17 = vadd.f32 %v9111_v54, %v151_v57 }
 0x140   :  { %v9308_v2 = vadd.f32 %v1053_v47, %v981_v19  ;;  %v9310_v61 = vadd.f32 %v1094_v3, %v989_v60  ;;  %v1055_v62 = vpop.f32.mrb[26].mxu0  ;;  %v1096_v45 = vpop.f32.mrb[26].mxu1  ;;  %v1116_v19 = vrot.slane %v1111_v8, %v9148_v5  ;;  %v1124_v60 = vrot.slane %v1111_v8, %v9137_v21 }
 0x141   :  { %11152 = vst [vmem:[#allocation40_spill] sm:$0xff] %v9297_v44  ;;  %v1056_v14 = vpop.f32.mrb[27].mxu0  ;;  %v1097_v51 = vpop.f32.mrb[27].mxu1  ;;  %v9317_v49 = vsel %vm127_vm1, %v357_v16, %v1052_v9  ;;  %v9325_v1 = vsel %vm127_vm1, %v1052_v9, %v357_v16  ;;  %v147_v62 = vrot.slane %v138_v0, %v9151_v13  ;;  %v155_v45 = vrot.slane %v138_v0, %v9139_v24 }
 0x142   :  { %11155 = vst [vmem:[#allocation43_spill] sm:$0xff] %v9308_v2  ;;  %11156 = vst [vmem:[#allocation44_spill] sm:$0xff] %v9310_v61  ;;  %v1120_v14 = vrot.slane %v1111_v8, %v9151_v13  ;;  %v1128_v51 = vrot.slane %v1111_v8, %v9139_v24  ;;  %v219_v16 = vadd.f32 %v9109_v53, %v143_v7 }
 0x143   :  { %11157 = vst [vmem:[#allocation45_spill] sm:$0xff] %v9325_v1  ;;  %11158 = vst [vmem:[#allocation46_spill] sm:$0xff] %v9357_v17  ;;  %v9362_v1 = vadd.f32 %v9113_v55, %v147_v62  ;;  %v9365_v0 = vadd.f32 %v9115_v56, %v155_v45 }
 0x145   :  { %11160 = vst [vmem:[#allocation48_spill] sm:$0xff] %v9362_v1  ;;  %11161 = vst [vmem:[#allocation49_spill] sm:$0xff] %v9365_v0 }
 0x146   :  { %v1190_v9 = vpop.f32.mrb[28].mxu0  ;;  %v1231_v3 = vpop.f32.mrb[28].mxu1 }
 0x147   :  { %v1191_v47 = vadd.f32 %v1190_v9, %v1116_v19  ;;  %v9359_v63 = vadd.f32 %v1231_v3, %v1124_v60  ;;  %v1192_v5 = vpop.f32.mrb[29].mxu0  ;;  %v1233_v21 = vpop.f32.mrb[29].mxu1 }
 0x148   :  { %v9367_v13 = vadd.f32 %v1192_v5, %v1120_v14  ;;  %v9369_v8 = vadd.f32 %v1233_v21, %v1128_v51  ;;  %v1194_v24 = vpop.f32.mrb[30].mxu0  ;;  %v1235_v53 = vpop.f32.mrb[30].mxu1 }
 0x149   :  { %11159 = vst [vmem:[#allocation47_spill] sm:$0xff] %v9359_v63  ;;  %v1195_v7 = vpop.f32.mrb[31].mxu0  ;;  %v1236_v54 = vpop.f32.mrb[31].mxu1  ;;  %v1259_v3 = vsel %vm127_vm1, %v219_v16, %v1191_v47  ;;  %v1261_v55 = vsel %vm9165_vm2, %v9357_v17, %v9359_v63  ;;  %v9379_v56 = vsel %vm127_vm1, %v1191_v47, %v219_v16 }
 0x14a   :  { %11162 = vst [vmem:[#allocation50_spill] sm:$0xff] %v9367_v13  ;;  %11163 = vst [vmem:[#allocation51_spill] sm:$0xff] %v9369_v8  ;;  %v1260_v24 = vsel %vm9169_vm3, %v9362_v1, %v9367_v13  ;;  %v1262_v5 = vsel %vm9175_vm4, %v9365_v0, %v9369_v8 }
 0x14b   :  { %11164 = vst [vmem:[#allocation52_spill] sm:$0xff] %v9379_v56 }
 0x166   :  { %v1489_v16 = vpop.f32.mrb[32].mxu0  ;;  %v1530_v57 = vpop.f32.mrb[32].mxu1 }
 0x167   :  { %v1537_v19 = vadd.f32 %v1489_v16, %v1259_v3  ;;  %v1539_v60 = vadd.f32 %v1530_v57, %v1261_v55  ;;  %v1491_v62 = vpop.f32.mrb[33].mxu0  ;;  %v1532_v45 = vpop.f32.mrb[33].mxu1 }
 0x168   :  { %v1538_v14 = vadd.f32 %v1491_v62, %v1260_v24  ;;  %v1540_v51 = vadd.f32 %v1532_v45, %v1262_v5  ;;  %v1493_v53 = vpop.f32.mrb[34].mxu0  ;;  %v1534_v7 = vpop.f32.mrb[34].mxu1 }
 0x169   :  { %v7528_v54 = vmul.f32 -1.442695, %v1537_v19  ;;  %v1494_v21 = vpop.f32.mrb[35].mxu0  ;;  %v1535_v15 = vpop.f32.mrb[35].mxu1 }
 0x16a   :  { %v7529_v17 = vmul.f32 -1.442695, %v1538_v14  ;;  %v7530_v47 = vmul.f32 -1.442695, %v1540_v51 }
 0x16b   :  { %8391 = vpow2.f32 %v7528_v54 }
 0x16c   :  { %8393 = vpow2.f32 %v7529_v17 }
 0x16d   :  { %8395 = vpow2.f32 %v7530_v47  ;;  %v11166_v47 = vmov 0  }
 0x16e   :  { %8397 = vtanh.f32 %v1539_v60 }
 0x175   :  { %v8392_v1 = vpop.eup %8391 }
 0x176   :  { %v8394_v13 = vpop.eup %8393  ;;  %v1544_v9 = vadd.f32 1.0, %v8392_v1 }
 0x177   :  { %v1550_v3 = vadd.f32 1.0, %v8394_v13  ;;  %v8396_v55 = vpop.eup %8395 }
 0x178   :  { %8399 = vrcp.f32 %v1544_v9  ;;  %v8398_v24 = vpop.eup %8397  ;;  %v1557_v19 = vadd.f32 1.0, %v8396_v55 }
 0x179   :  { %8401 = vrcp.f32 %v1550_v3 }
 0x17a   :  { %8403 = vrcp.f32 %v1557_v19 }
 0x182   :  { %v8400_v5 = vpop.eup %8399 }
 0x183   :  { %v8402_v16 = vpop.eup %8401  ;;  %v1561_v57 = vmul.f32 %v8400_v5, %v8398_v24 }
 0x184   :  { %v1560_v21 = vmul.f32 0.0, %v8402_v16  ;;  %v8404_v17 = vpop.eup %8403 }
 0x186   :  { %v9401_v15 = vadd.f32 %v1561_v57, %v1560_v21 }
 0x188   :  { %8405 = vtanh.f32 %v9401_v15 }
 0x192   :  { %v8406_v62 = vpop.eup %8405 }
 0x193   :  { %v9404_v1 = vmul.f32 %v8406_v62, %v8404_v17 }
 0x195   :  { %11165 = vst [vmem:[#allocation53_spill] sm:$0xff] %v9404_v1  ;;  %v1578_v13 = vpack.c.bf16 %v9404_v1, %v9404_v1  ;;  %v11182_v1 = vsel %vm9175_vm4, %v9244_v50, %v9248_v6 }
 0x197   :  { %1804 = vmatmul.mubr.bf16.vlgmr.msra.gmra.mrb[36].mxu0 %v1578_v13  ;;  %1845 = vmatmul.mubr.bf16.vlgmr.msra.gmra.mrb[36].mxu1 %v1578_v13 }
 0x198   :  { %2089 = vmatpush1.bf16.msra.mxu0 %v8975_v22  ;;  %2130 = vmatpush1.bf16.msra.mxu1 %v8978_v23  ;;  %v11167_v22 = vld [vmem:[#allocation12_spill] sm:$0xff]  ;;  %v11168_v23 = vld [vmem:[#allocation13_spill] sm:$0xff] }
 0x199   :  { %2090 = vmatprep.subr.bf16.mxu0 %v8981_v25  ;;  %2131 = vmatprep.subr.bf16.mxu1 %v8983_v26  ;;  %v11169_v25 = vld [vmem:[#allocation14_spill] sm:$0xff]  ;;  %v11170_v26 = vld [vmem:[#allocation15_spill] sm:$0xff] }
 0x19a   :  { %2120 = vmatprep.mubr.bf16.mxu0 %v11166_v47  ;;  %2161 = vmatprep.mubr.bf16.mxu1 %v11166_v47 }
 0x19c   :  { %2091 = vmatpush1.bf16.msra.mxu0 %v8985_v27  ;;  %2132 = vmatpush1.bf16.msra.mxu1 %v8987_v28  ;;  %v11171_v27 = vld [vmem:[#allocation16_spill] sm:$0xff]  ;;  %v11172_v28 = vld [vmem:[#allocation17_spill] sm:$0xff] }
 0x19d   :  { %2092 = vmatprep.subr.bf16.mxu0 %v8991_v29  ;;  %2133 = vmatprep.subr.bf16.mxu1 %v8993_v30  ;;  %v11173_v29 = vld [vmem:[#allocation18_spill] sm:$0xff]  ;;  %v11174_v30 = vld [vmem:[#allocation19_spill] sm:$0xff] }
 0x1a0   :  { %2093 = vmatpush1.bf16.msra.mxu0 %v8999_v31  ;;  %2134 = vmatpush1.bf16.msra.mxu1 %v9001_v32  ;;  %v11175_v31 = vld [vmem:[#allocation20_spill] sm:$0xff] }
 0x1a1   :  { %2094 = vmatprep.subr.bf16.mxu0 %v9005_v33  ;;  %2135 = vmatprep.subr.bf16.mxu1 %v9007_v34 }
 0x1a4   :  { %2095 = vmatpush1.bf16.msra.mxu0 %v9013_v35  ;;  %2136 = vmatpush1.bf16.msra.mxu1 %v9015_v36  ;;  %v11176_v35 = vsel %vm9165_vm2, %v9295_v46, %v9297_v44 }
 0x1a5   :  { %2096 = vmatprep.subr.bf16.mxu0 %v9017_v37  ;;  %2137 = vmatprep.subr.bf16.mxu1 %v9019_v38 }
 0x1a8   :  { %2097 = vmatpush1.bf16.msra.mxu0 %v9025_v39  ;;  %2138 = vmatpush1.bf16.msra.mxu1 %v9027_v40  ;;  %v11177_v39 = vsel %vm9169_vm3, %v9303_v12, %v9308_v2 }
 0x1a9   :  { %2098 = vmatprep.subr.bf16.mxu0 %v9029_v41  ;;  %2139 = vmatprep.subr.bf16.mxu1 %v9031_v42  ;;  %v11178_v41 = vsel %vm9175_vm4, %v9306_v10, %v9310_v61 }
 0x1ac   :  { %2099 = vmatpush1.bf16.msra.mxu0 %v9039_v43  ;;  %2140 = vmatpush1.bf16.msra.mxu1 %v11167_v22 }
 0x1ad   :  { %2100 = vmatprep.subr.bf16.mxu0 %v11168_v23  ;;  %2141 = vmatprep.subr.bf16.mxu1 %v11169_v25  ;;  %v9466_v25 = vld [vmem:[#allocation5 + $0x4] ss:$16 sps:$4 sm:$0xff]  }
 0x1b0   :  { %2101 = vmatpush1.bf16.msra.mxu0 %v11170_v26  ;;  %2142 = vmatpush1.bf16.msra.mxu1 %v11171_v27  ;;  %v9470_v26 = vld [vmem:[#allocation5] ss:$16 sps:$4 sm:$0xff]   ;;  %v9472_v27 = vld [vmem:[#allocation5 + $0x8] ss:$16 sps:$4 sm:$0xff]  }
 0x1b1   :  { %2102 = vmatprep.subr.bf16.mxu0 %v11172_v28  ;;  %2143 = vmatprep.subr.bf16.mxu1 %v11173_v29  ;;  %v9478_v28 = vld [vmem:[#allocation5 + $0x24] ss:$16 sps:$4 sm:$0xff]   ;;  %v9480_v29 = vld [vmem:[#allocation5 + $0x2c] ss:$16 sps:$4 sm:$0xff]  }
 0x1b4   :  { %2103 = vmatpush1.bf16.msra.mxu0 %v11174_v30  ;;  %2144 = vmatpush1.bf16.msra.mxu1 %v11175_v31  ;;  %v9482_v30 = vld [vmem:[#allocation5 + $0x20] ss:$16 sps:$4 sm:$0xff]   ;;  %v9484_v31 = vld [vmem:[#allocation5 + $0x28] ss:$16 sps:$4 sm:$0xff]  }
 0x1b5   :  { %2405 = vmatprep.subr.bf16.mxu0 %v9466_v25 }
 0x26a   :  { %v1805_v32 = vpop.f32.mrb[36].mxu0  ;;  %v1846_v33 = vpop.f32.mrb[36].mxu1 }
 0x26b   :  { %v1853_v34 = vadd.f32 %v1805_v32, %v9317_v49  ;;  %v1855_v36 = vadd.f32 %v1846_v33, %v11176_v35  ;;  %v1807_v37 = vpop.f32.mrb[37].mxu0  ;;  %v1848_v38 = vpop.f32.mrb[37].mxu1  ;;  %v9490_v32 = vld [vmem:[#allocation5 + $0x44] ss:$16 sps:$4 sm:$0xff]   ;;  %v9492_v33 = vld [vmem:[#allocation5 + $0x4c] ss:$16 sps:$4 sm:$0xff]  }
 0x26c   :  { %v1854_v40 = vadd.f32 %v1807_v37, %v11177_v39  ;;  %v1856_v42 = vadd.f32 %v1848_v38, %v11178_v41  ;;  %v1809_v43 = vpop.f32.mrb[38].mxu0  ;;  %v1850_v49 = vpop.f32.mrb[38].mxu1  ;;  %v9496_v35 = vld [vmem:[#allocation5 + $0x48] ss:$16 sps:$4 sm:$0xff]   ;;  %v9504_v37 = vld [vmem:[#allocation5 + $0x6c] ss:$16 sps:$4 sm:$0xff]  }
 0x26d   :  { %v7563_v9 = vmul.f32 -1.442695, %v1853_v34  ;;  %v1810_v60 = vpop.f32.mrb[39].mxu0  ;;  %v1851_v45 = vpop.f32.mrb[39].mxu1  ;;  %v9494_v34 = vld [vmem:[#allocation5 + $0x40] ss:$16 sps:$4 sm:$0xff]  }
 0x26e   :  { %v7564_v14 = vmul.f32 -1.442695, %v1854_v40  ;;  %v7565_v51 = vmul.f32 -1.442695, %v1856_v42  ;;  %v9506_v38 = vld [vmem:[#allocation5 + $0x60] ss:$16 sps:$4 sm:$0xff]  }
 0x26f   :  { %8407 = vpow2.f32 %v7563_v9  ;;  %v9508_v39 = vld [vmem:[#allocation5 + $0x68] ss:$16 sps:$4 sm:$0xff]   ;;  %v9514_v40 = vld [vmem:[#allocation5 + $0x84] ss:$16 sps:$4 sm:$0xff]   ;;  %v9516_v41 = vld [vmem:[#allocation5 + $0x8c] ss:$16 sps:$4 sm:$0xff]  }
 0x270   :  { %8409 = vpow2.f32 %v7564_v14  ;;  %v9518_v42 = vld [vmem:[#allocation5 + $0x80] ss:$16 sps:$4 sm:$0xff]   ;;  %v9520_v43 = vld [vmem:[#allocation5 + $0x88] ss:$16 sps:$4 sm:$0xff]   ;;  %v9524_v49 = vld [vmem:[#allocation5 + $0xa4] ss:$16 sps:$4 sm:$0xff]  }
 0x271   :  { %8411 = vpow2.f32 %v7565_v51  ;;  %v9528_v9 = vld [vmem:[#allocation5 + $0xa0] ss:$16 sps:$4 sm:$0xff]   ;;  %v9530_v60 = vld [vmem:[#allocation5 + $0xa8] ss:$16 sps:$4 sm:$0xff]   ;;  %v9532_v45 = vld [vmem:[#allocation5 + $0xac] ss:$16 sps:$4 sm:$0xff]  }
 0x272   :  { %8413 = vtanh.f32 %v1855_v36  ;;  %v9502_v36 = vld [vmem:[#allocation5 + $0x64] ss:$16 sps:$4 sm:$0xff]   ;;  %v9537_v51 = vld [vmem:[#allocation5 + $0xcc] ss:$16 sps:$4 sm:$0xff]  }
 0x273   :  { %v9535_v14 = vld [vmem:[#allocation5 + $0xc4] ss:$16 sps:$4 sm:$0xff]  }
 0x279   :  { %v8408_v53 = vpop.eup %8407 }
 0x27a   :  { %v8410_v7 = vpop.eup %8409  ;;  %v1860_v54 = vadd.f32 1.0, %v8408_v53  ;;  %v9542_v53 = vld [vmem:[#allocation5 + $0xc0] ss:$16 sps:$4 sm:$0xff]  }
 0x27b   :  { %v1866_v3 = vadd.f32 1.0, %v8410_v7  ;;  %v8412_v55 = vpop.eup %8411  ;;  %v9544_v7 = vld [vmem:[#allocation5 + $0xc8] ss:$16 sps:$4 sm:$0xff]  }
 0x27c   :  { %8415 = vrcp.f32 %v1860_v54  ;;  %v8414_v24 = vpop.eup %8413  ;;  %v1873_v19 = vadd.f32 1.0, %v8412_v55  ;;  %v9548_v54 = vld [vmem:[#allocation5 + $0xe4] ss:$16 sps:$4 sm:$0xff]   ;;  %v9554_v55 = vld [vmem:[#allocation5 + $0xe0] ss:$16 sps:$4 sm:$0xff]  }
 0x27d   :  { %8417 = vrcp.f32 %v1866_v3  ;;  %v9550_v3 = vld [vmem:[#allocation5 + $0xec] ss:$16 sps:$4 sm:$0xff]  }
 0x27e   :  { %8419 = vrcp.f32 %v1873_v19  ;;  %v11180_v19 = vsel %vm9165_vm2, %v9233_v4, %v9235_v48 }
 0x286   :  { %v8416_v5 = vpop.eup %8415 }
 0x287   :  { %v8418_v16 = vpop.eup %8417  ;;  %v1877_v57 = vmul.f32 %v8416_v5, %v8414_v24  ;;  %v9556_v24 = vld [vmem:[#allocation5 + $0xe8] ss:$16 sps:$4 sm:$0xff]  }
 0x288   :  { %v1876_v21 = vmul.f32 %v8418_v16, %v9401_v15  ;;  %v8420_v62 = vpop.eup %8419  ;;  %v9468_v15 = vld [vmem:[#allocation5 + $0xc] ss:$16 sps:$4 sm:$0xff]  }
 0x289   :  { %2446 = vmatprep.subr.bf16.mxu1 %v9468_v15 }
 0x28a   :  { %v9457_v17 = vadd.f32 %v1877_v57, %v1876_v21 }
 0x28c   :  { %8421 = vtanh.f32 %v9457_v17 }
 0x296   :  { %v8422_v13 = vpop.eup %8421 }
 0x297   :  { %v9460_v22 = vmul.f32 %v8422_v13, %v8420_v62 }
 0x299   :  { %11179 = vst [vmem:[#allocation12_spill] sm:$0xff] %v9460_v22  ;;  %v1895_v23 = vpack.c.bf16 %v9460_v22, %v9460_v22 }
 0x29b   :  { %2121 = vmatmul.mubr.bf16.vlgmr.msra.gmra.mrb[40].mxu0 %v1895_v23  ;;  %2162 = vmatmul.mubr.bf16.vlgmr.msra.gmra.mrb[40].mxu1 %v1895_v23  ;;  %v11181_v23 = vsel %vm9169_vm3, %v9241_v52, %v9246_v11 }
 0x29c   :  { %2437 = vmatprep.mubr.bf16.mxu0 %v11166_v47  ;;  %2478 = vmatprep.mubr.bf16.mxu1 %v11166_v47 }
 0x29d   :  { %2406 = vmatpush1.bf16.msra.mxu0 %v9470_v26  ;;  %2447 = vmatpush1.bf16.msra.mxu1 %v9472_v27 }
 0x29e   :  { %2407 = vmatprep.subr.bf16.mxu0 %v9478_v28  ;;  %2448 = vmatprep.subr.bf16.mxu1 %v9480_v29 }
 0x2a1   :  { %2408 = vmatpush1.bf16.msra.mxu0 %v9482_v30  ;;  %2449 = vmatpush1.bf16.msra.mxu1 %v9484_v31 }
 0x2a2   :  { %2409 = vmatprep.subr.bf16.mxu0 %v9490_v32  ;;  %2450 = vmatprep.subr.bf16.mxu1 %v9492_v33 }
 0x2a5   :  { %2410 = vmatpush1.bf16.msra.mxu0 %v9494_v34  ;;  %2451 = vmatpush1.bf16.msra.mxu1 %v9496_v35 }
 0x2a6   :  { %2411 = vmatprep.subr.bf16.mxu0 %v9502_v36  ;;  %2452 = vmatprep.subr.bf16.mxu1 %v9504_v37 }
 0x2a9   :  { %2412 = vmatpush1.bf16.msra.mxu0 %v9506_v38  ;;  %2453 = vmatpush1.bf16.msra.mxu1 %v9508_v39 }
 0x2aa   :  { %2413 = vmatprep.subr.bf16.mxu0 %v9514_v40  ;;  %2454 = vmatprep.subr.bf16.mxu1 %v9516_v41 }
 0x2ad   :  { %2414 = vmatpush1.bf16.msra.mxu0 %v9518_v42  ;;  %2455 = vmatpush1.bf16.msra.mxu1 %v9520_v43 }
 0x2ae   :  { %2415 = vmatprep.subr.bf16.mxu0 %v9524_v49  ;;  %2456 = vmatprep.subr.bf16.mxu1 %v9532_v45 }
 0x2b1   :  { %2416 = vmatpush1.bf16.msra.mxu0 %v9528_v9  ;;  %2457 = vmatpush1.bf16.msra.mxu1 %v9530_v60 }
 0x2b2   :  { %2417 = vmatprep.subr.bf16.mxu0 %v9535_v14  ;;  %2458 = vmatprep.subr.bf16.mxu1 %v9537_v51 }
 0x2b5   :  { %2418 = vmatpush1.bf16.msra.mxu0 %v9542_v53  ;;  %2459 = vmatpush1.bf16.msra.mxu1 %v9544_v7 }
 0x2b6   :  { %2419 = vmatprep.subr.bf16.mxu0 %v9548_v54  ;;  %2460 = vmatprep.subr.bf16.mxu1 %v9550_v3 }
 0x2b9   :  { %2420 = vmatpush1.bf16.msra.mxu0 %v9554_v55  ;;  %2461 = vmatpush1.bf16.msra.mxu1 %v9556_v24 }
 0x2ba   :  { %2722 = vmatprep.subr.bf16.mxu0 %v9466_v25  ;;  %2763 = vmatprep.subr.bf16.mxu1 %v9468_v15 }
 0x36e   :  { %v2122_v5 = vpop.f32.mrb[40].mxu0  ;;  %v2163_v16 = vpop.f32.mrb[40].mxu1 }
 0x36f   :  { %v2170_v57 = vadd.f32 %v2122_v5, %v9255_v18  ;;  %v2172_v21 = vadd.f32 %v2163_v16, %v11180_v19  ;;  %v2124_v62 = vpop.f32.mrb[41].mxu0  ;;  %v2165_v13 = vpop.f32.mrb[41].mxu1 }
 0x370   :  { %v2171_v22 = vadd.f32 %v2124_v62, %v11181_v23  ;;  %v2173_v18 = vadd.f32 %v2165_v13, %v11182_v1  ;;  %v2126_v5 = vpop.f32.mrb[42].mxu0  ;;  %v2167_v0 = vpop.f32.mrb[42].mxu1 }
 0x371   :  { %v7598_v8 = vmul.f32 -1.442695, %v2170_v57  ;;  %v2127_v63 = vpop.f32.mrb[43].mxu0  ;;  %v2168_v56 = vpop.f32.mrb[43].mxu1  ;;  %v11186_v5 = vld [vmem:[#allocation28_spill] sm:$0xff] }
 0x372   :  { %v7599_v16 = vmul.f32 -1.442695, %v2171_v22  ;;  %v7600_v19 = vmul.f32 -1.442695, %v2173_v18  ;;  %v11185_v18 = vld [vmem:[#allocation26_spill] sm:$0xff] }
 0x373   :  { %8423 = vpow2.f32 %v7598_v8 }
 0x374   :  { %8425 = vpow2.f32 %v7599_v16  ;;  %v11187_v16 = vsel %vm9165_vm2, %v11185_v18, %v11186_v5 }
 0x375   :  { %8427 = vpow2.f32 %v7600_v19 }
 0x376   :  { %8429 = vtanh.f32 %v2172_v21 }
 0x37d   :  { %v8424_v10 = vpop.eup %8423 }
 0x37e   :  { %v8426_v61 = vpop.eup %8425  ;;  %v2177_v12 = vadd.f32 1.0, %v8424_v10 }
 0x37f   :  { %v2183_v62 = vadd.f32 1.0, %v8426_v61  ;;  %v8428_v23 = vpop.eup %8427 }
 0x380   :  { %8431 = vrcp.f32 %v2177_v12  ;;  %v8430_v2 = vpop.eup %8429  ;;  %v2190_v57 = vadd.f32 1.0, %v8428_v23 }
 0x381   :  { %8433 = vrcp.f32 %v2183_v62 }
 0x382   :  { %8435 = vrcp.f32 %v2190_v57 }
 0x38a   :  { %v8432_v1 = vpop.eup %8431 }
 0x38b   :  { %v8434_v13 = vpop.eup %8433  ;;  %v2194_v0 = vmul.f32 %v8432_v1, %v8430_v2  ;;  %v11188_v1 = vld [vmem:[#allocation29_spill] sm:$0xff] }
 0x38c   :  { %v2193_v63 = vmul.f32 %v8434_v13, %v9457_v17  ;;  %v8436_v8 = vpop.eup %8435  ;;  %v11184_v17 = vld [vmem:[#allocation32_spill] sm:$0xff]  ;;  %v11189_v13 = vld [vmem:[#allocation30_spill] sm:$0xff] }
 0x38e   :  { %v9581_v56 = vadd.f32 %v2194_v0, %v2193_v63  ;;  %v11190_v0 = vsel %vm9169_vm3, %v11188_v1, %v11189_v13  ;;  %v11191_v63 = vld [vmem:[#allocation27_spill] sm:$0xff] }
 0x390   :  { %8437 = vtanh.f32 %v9581_v56 }
 0x39a   :  { %v8438_v10 = vpop.eup %8437 }
 0x39b   :  { %v9584_v22 = vmul.f32 %v8438_v10, %v8436_v8  ;;  %v11192_v8 = vld [vmem:[#allocation31_spill] sm:$0xff] }
 0x39c   :  { %v11193_v10 = vsel %vm9175_vm4, %v11191_v63, %v11192_v8 }
 0x39d   :  { %11183 = vst [vmem:[#allocation13_spill] sm:$0xff] %v9584_v22  ;;  %v2212_v12 = vpack.c.bf16 %v9584_v22, %v9584_v22 }
 0x39f   :  { %2438 = vmatmul.mubr.bf16.vlgmr.msra.gmra.mrb[44].mxu0 %v2212_v12  ;;  %2479 = vmatmul.mubr.bf16.vlgmr.msra.gmra.mrb[44].mxu1 %v2212_v12 }
 0x3a0   :  { %2723 = vmatpush1.bf16.msra.mxu0 %v9470_v26  ;;  %2764 = vmatpush1.bf16.msra.mxu1 %v9472_v27 }
 0x3a1   :  { %2724 = vmatprep.subr.bf16.mxu0 %v9478_v28  ;;  %2765 = vmatprep.subr.bf16.mxu1 %v9480_v29 }
 0x3a2   :  { %2754 = vmatprep.mubr.bf16.mxu0 %v11166_v47  ;;  %2795 = vmatprep.mubr.bf16.mxu1 %v11166_v47 }
 0x3a4   :  { %2725 = vmatpush1.bf16.msra.mxu0 %v9482_v30  ;;  %2766 = vmatpush1.bf16.msra.mxu1 %v9484_v31 }
 0x3a5   :  { %2726 = vmatprep.subr.bf16.mxu0 %v9490_v32  ;;  %2767 = vmatprep.subr.bf16.mxu1 %v9492_v33 }
 0x3a8   :  { %2727 = vmatpush1.bf16.msra.mxu0 %v9494_v34  ;;  %2768 = vmatpush1.bf16.msra.mxu1 %v9496_v35 }
 0x3a9   :  { %2728 = vmatprep.subr.bf16.mxu0 %v9502_v36  ;;  %2769 = vmatprep.subr.bf16.mxu1 %v9504_v37 }
 0x3ac   :  { %2729 = vmatpush1.bf16.msra.mxu0 %v9506_v38  ;;  %2770 = vmatpush1.bf16.msra.mxu1 %v9508_v39 }
 0x3ad   :  { %2730 = vmatprep.subr.bf16.mxu0 %v9514_v40  ;;  %2771 = vmatprep.subr.bf16.mxu1 %v9516_v41 }
 0x3b0   :  { %2731 = vmatpush1.bf16.msra.mxu0 %v9518_v42  ;;  %2772 = vmatpush1.bf16.msra.mxu1 %v9520_v43 }
 0x3b1   :  { %2732 = vmatprep.subr.bf16.mxu0 %v9524_v49  ;;  %2773 = vmatprep.subr.bf16.mxu1 %v9532_v45 }
 0x3b4   :  { %2733 = vmatpush1.bf16.msra.mxu0 %v9528_v9  ;;  %2774 = vmatpush1.bf16.msra.mxu1 %v9530_v60 }
 0x3b5   :  { %2734 = vmatprep.subr.bf16.mxu0 %v9535_v14  ;;  %2775 = vmatprep.subr.bf16.mxu1 %v9537_v51 }
 0x3b8   :  { %2735 = vmatpush1.bf16.msra.mxu0 %v9542_v53  ;;  %2776 = vmatpush1.bf16.msra.mxu1 %v9544_v7 }
 0x3b9   :  { %2736 = vmatprep.subr.bf16.mxu0 %v9548_v54  ;;  %2777 = vmatprep.subr.bf16.mxu1 %v9550_v3 }
 0x3bc   :  { %2737 = vmatpush1.bf16.msra.mxu0 %v9554_v55  ;;  %2778 = vmatpush1.bf16.msra.mxu1 %v9556_v24 }
 0x3bd   :  { %3039 = vmatprep.subr.bf16.mxu0 %v9466_v25  ;;  %3080 = vmatprep.subr.bf16.mxu1 %v9468_v15 }
 0x472   :  { %v2439_v2 = vpop.f32.mrb[44].mxu0  ;;  %v2480_v61 = vpop.f32.mrb[44].mxu1 }
 0x473   :  { %v2487_v21 = vadd.f32 %v2439_v2, %v11184_v17  ;;  %v2489_v19 = vadd.f32 %v2480_v61, %v11187_v16  ;;  %v2441_v62 = vpop.f32.mrb[45].mxu0  ;;  %v2482_v23 = vpop.f32.mrb[45].mxu1 }
 0x474   :  { %v2488_v57 = vadd.f32 %v2441_v62, %v11190_v0  ;;  %v2490_v12 = vadd.f32 %v2482_v23, %v11193_v10  ;;  %v2443_v2 = vpop.f32.mrb[46].mxu0  ;;  %v2484_v17 = vpop.f32.mrb[46].mxu1 }
 0x475   :  { %v7633_v22 = vmul.f32 -1.442695, %v2487_v21  ;;  %v2444_v46 = vpop.f32.mrb[47].mxu0  ;;  %v2485_v44 = vpop.f32.mrb[47].mxu1 }
 0x476   :  { %v7634_v61 = vmul.f32 -1.442695, %v2488_v57  ;;  %v7635_v16 = vmul.f32 -1.442695, %v2490_v12  ;;  %v11195_v12 = vsel %vm9165_vm2, %v11186_v5, %v11185_v18 }
 0x477   :  { %8439 = vpow2.f32 %v7633_v22 }
 0x478   :  { %8441 = vpow2.f32 %v7634_v61 }
 0x479   :  { %8443 = vpow2.f32 %v7635_v16 }
 0x47a   :  { %8445 = vtanh.f32 %v2489_v19 }
 0x481   :  { %v8440_v50 = vpop.eup %8439 }
 0x482   :  { %v8442_v6 = vpop.eup %8441  ;;  %v2494_v52 = vadd.f32 1.0, %v8440_v50 }
 0x483   :  { %v2500_v62 = vadd.f32 1.0, %v8442_v6  ;;  %v8444_v0 = vpop.eup %8443 }
 0x484   :  { %8447 = vrcp.f32 %v2494_v52  ;;  %v8446_v11 = vpop.eup %8445  ;;  %v2507_v21 = vadd.f32 1.0, %v8444_v0 }
 0x485   :  { %8449 = vrcp.f32 %v2500_v62  ;;  %v11196_v62 = vsel %vm9169_vm3, %v11189_v13, %v11188_v1 }
 0x486   :  { %8451 = vrcp.f32 %v2507_v21 }
 0x48e   :  { %v8448_v23 = vpop.eup %8447 }
 0x48f   :  { %v8450_v10 = vpop.eup %8449  ;;  %v2511_v2 = vmul.f32 %v8448_v23, %v8446_v11 }
 0x490   :  { %v2510_v44 = vmul.f32 %v8450_v10, %v9581_v56  ;;  %v8452_v22 = vpop.eup %8451  ;;  %v11194_v56 = vld [vmem:[#allocation33_spill] sm:$0xff] }
 0x492   :  { %v9639_v46 = vadd.f32 %v2511_v2, %v2510_v44 }
 0x494   :  { %8453 = vtanh.f32 %v9639_v46 }
 0x49e   :  { %v8454_v50 = vpop.eup %8453 }
 0x49f   :  { %v9642_v57 = vmul.f32 %v8454_v50, %v8452_v22 }
 0x4a1   :  { %v2529_v52 = vpack.c.bf16 %v9642_v57, %v9642_v57 }
 0x4a3   :  { %2755 = vmatmul.mubr.bf16.vlgmr.msra.gmra.mrb[48].mxu0 %v2529_v52  ;;  %2796 = vmatmul.mubr.bf16.vlgmr.msra.gmra.mrb[48].mxu1 %v2529_v52 }
 0x4a4   :  { %3040 = vmatpush1.bf16.msra.mxu0 %v9470_v26  ;;  %3081 = vmatpush1.bf16.msra.mxu1 %v9472_v27 }
 0x4a5   :  { %3041 = vmatprep.subr.bf16.mxu0 %v9478_v28  ;;  %3082 = vmatprep.subr.bf16.mxu1 %v9480_v29 }
 0x4a6   :  { %3071 = vmatprep.mubr.bf16.mxu0 %v11166_v47  ;;  %3112 = vmatprep.mubr.bf16.mxu1 %v11166_v47 }
 0x4a8   :  { %3042 = vmatpush1.bf16.msra.mxu0 %v9482_v30  ;;  %3083 = vmatpush1.bf16.msra.mxu1 %v9484_v31 }
 0x4a9   :  { %3043 = vmatprep.subr.bf16.mxu0 %v9490_v32  ;;  %3084 = vmatprep.subr.bf16.mxu1 %v9492_v33 }
 0x4ac   :  { %3044 = vmatpush1.bf16.msra.mxu0 %v9494_v34  ;;  %3085 = vmatpush1.bf16.msra.mxu1 %v9496_v35 }
 0x4ad   :  { %3045 = vmatprep.subr.bf16.mxu0 %v9502_v36  ;;  %3086 = vmatprep.subr.bf16.mxu1 %v9504_v37 }
 0x4b0   :  { %3046 = vmatpush1.bf16.msra.mxu0 %v9506_v38  ;;  %3087 = vmatpush1.bf16.msra.mxu1 %v9508_v39 }
 0x4b1   :  { %3047 = vmatprep.subr.bf16.mxu0 %v9514_v40  ;;  %3088 = vmatprep.subr.bf16.mxu1 %v9516_v41 }
 0x4b4   :  { %3048 = vmatpush1.bf16.msra.mxu0 %v9518_v42  ;;  %3089 = vmatpush1.bf16.msra.mxu1 %v9520_v43 }
 0x4b5   :  { %3049 = vmatprep.subr.bf16.mxu0 %v9524_v49  ;;  %3090 = vmatprep.subr.bf16.mxu1 %v9532_v45 }
 0x4b8   :  { %3050 = vmatpush1.bf16.msra.mxu0 %v9528_v9  ;;  %3091 = vmatpush1.bf16.msra.mxu1 %v9530_v60 }
 0x4b9   :  { %3051 = vmatprep.subr.bf16.mxu0 %v9535_v14  ;;  %3092 = vmatprep.subr.bf16.mxu1 %v9537_v51 }
 0x4bc   :  { %3052 = vmatpush1.bf16.msra.mxu0 %v9542_v53  ;;  %3093 = vmatpush1.bf16.msra.mxu1 %v9544_v7 }
 0x4bd   :  { %3053 = vmatprep.subr.bf16.mxu0 %v9548_v54  ;;  %3094 = vmatprep.subr.bf16.mxu1 %v9550_v3 }
 0x4c0   :  { %3054 = vmatpush1.bf16.msra.mxu0 %v9554_v55  ;;  %3095 = vmatpush1.bf16.msra.mxu1 %v9556_v24 }
 0x4c1   :  { %3356 = vmatprep.subr.bf16.mxu0 %v9466_v25  ;;  %3397 = vmatprep.subr.bf16.mxu1 %v9468_v15  ;;  %v11197_v15 = vsel %vm9175_vm4, %v11192_v8, %v11191_v63 }
 0x576   :  { %v2756_v11 = vpop.f32.mrb[48].mxu0  ;;  %v2797_v6 = vpop.f32.mrb[48].mxu1 }
 0x577   :  { %v2804_v19 = vadd.f32 %v2756_v11, %v11194_v56  ;;  %v2806_v17 = vadd.f32 %v2797_v6, %v11195_v12  ;;  %v2758_v61 = vpop.f32.mrb[49].mxu0  ;;  %v2799_v16 = vpop.f32.mrb[49].mxu1 }
 0x578   :  { %v2805_v25 = vadd.f32 %v2758_v61, %v11196_v62  ;;  %v2807_v0 = vadd.f32 %v2799_v16, %v11197_v15  ;;  %v2760_v23 = vpop.f32.mrb[50].mxu0  ;;  %v2801_v10 = vpop.f32.mrb[50].mxu1 }
 0x579   :  { %v7668_v2 = vmul.f32 -1.442695, %v2804_v19  ;;  %v2761_v21 = vpop.f32.mrb[51].mxu0  ;;  %v2802_v18 = vpop.f32.mrb[51].mxu1 }
 0x57a   :  { %v7669_v5 = vmul.f32 -1.442695, %v2805_v25  ;;  %v7670_v44 = vmul.f32 -1.442695, %v2807_v0  ;;  %v8201_v21 = vld [vmem:[#allocation5 + $0x4] ss:$16 sps:$4 sm:$0xff]  }
 0x57b   :  { %8455 = vpow2.f32 %v7668_v2  ;;  %v8204_v18 = vld [vmem:[#allocation5 + $0xc] ss:$16 sps:$4 sm:$0xff]  }
 0x57c   :  { %8457 = vpow2.f32 %v7669_v5  ;;  %v8199_v5 = vld [vmem:[#allocation5] ss:$16 sps:$4 sm:$0xff]  }
 0x57d   :  { %8459 = vpow2.f32 %v7670_v44  ;;  %v8202_v44 = vld [vmem:[#allocation5 + $0x8] ss:$16 sps:$4 sm:$0xff]  }
 0x57e   :  { %8461 = vtanh.f32 %v2806_v17 }
 0x585   :  { %v8456_v22 = vpop.eup %8455 }
 0x586   :  { %v8458_v50 = vpop.eup %8457  ;;  %v2811_v52 = vadd.f32 1.0, %v8456_v22  ;;  %v8207_v22 = vld [vmem:[#allocation5 + $0x24] ss:$16 sps:$4 sm:$0xff]  }
 0x587   :  { %v2817_v1 = vadd.f32 1.0, %v8458_v50  ;;  %v8460_v13 = vpop.eup %8459  ;;  %v8210_v50 = vld [vmem:[#allocation5 + $0x2c] ss:$16 sps:$4 sm:$0xff]  }
 0x588   :  { %8463 = vrcp.f32 %v2811_v52  ;;  %v8462_v63 = vpop.eup %8461  ;;  %v2824_v56 = vadd.f32 1.0, %v8460_v13  ;;  %v8205_v52 = vld [vmem:[#allocation5 + $0x20] ss:$16 sps:$4 sm:$0xff]   ;;  %v8213_v13 = vld [vmem:[#allocation5 + $0x44] ss:$16 sps:$4 sm:$0xff]  }
 0x589   :  { %8465 = vrcp.f32 %v2817_v1  ;;  %v8208_v1 = vld [vmem:[#allocation5 + $0x28] ss:$16 sps:$4 sm:$0xff]  }
 0x58a   :  { %8467 = vrcp.f32 %v2824_v56  ;;  %v8222_v56 = vld [vmem:[#allocation5 + $0x6c] ss:$16 sps:$4 sm:$0xff]  }
 0x592   :  { %v8464_v8 = vpop.eup %8463 }
 0x593   :  { %v8466_v11 = vpop.eup %8465  ;;  %v2828_v6 = vmul.f32 %v8464_v8, %v8462_v63  ;;  %v8216_v63 = vld [vmem:[#allocation5 + $0x4c] ss:$16 sps:$4 sm:$0xff]   ;;  %v8211_v8 = vld [vmem:[#allocation5 + $0x40] ss:$16 sps:$4 sm:$0xff]  }
 0x594   :  { %v2827_v19 = vmul.f32 %v8466_v11, %v9639_v46  ;;  %v8468_v61 = vpop.eup %8467  ;;  %v8214_v11 = vld [vmem:[#allocation5 + $0x48] ss:$16 sps:$4 sm:$0xff]  }
 0x596   :  { %v9697_v12 = vadd.f32 %v2828_v6, %v2827_v19  ;;  %v8219_v6 = vld [vmem:[#allocation5 + $0x64] ss:$16 sps:$4 sm:$0xff]   ;;  %v8217_v19 = vld [vmem:[#allocation5 + $0x60] ss:$16 sps:$4 sm:$0xff]  }
 0x598   :  { %8469 = vtanh.f32 %v9697_v12 }
 0x5a2   :  { %v8470_v16 = vpop.eup %8469 }
 0x5a3   :  { %v9700_v62 = vmul.f32 %v8470_v16, %v8468_v61  ;;  %v8225_v61 = vld [vmem:[#allocation5 + $0x84] ss:$16 sps:$4 sm:$0xff]   ;;  %v8228_v16 = vld [vmem:[#allocation5 + $0x8c] ss:$16 sps:$4 sm:$0xff]  }
 0x5a5   :  { %v2846_v17 = vpack.c.bf16 %v9700_v62, %v9700_v62 }
 0x5a7   :  { %3072 = vmatmul.mubr.bf16.vlgmr.msra.gmra.mrb[52].mxu0 %v2846_v17  ;;  %3113 = vmatmul.mubr.bf16.vlgmr.msra.gmra.mrb[52].mxu1 %v2846_v17  ;;  %v8223_v17 = vld [vmem:[#allocation5 + $0x80] ss:$16 sps:$4 sm:$0xff]  }
 0x5a8   :  { %3357 = vmatpush1.bf16.msra.mxu0 %v9470_v26  ;;  %3398 = vmatpush1.bf16.msra.mxu1 %v9472_v27 }
 0x5a9   :  { %3358 = vmatprep.subr.bf16.mxu0 %v9478_v28  ;;  %3399 = vmatprep.subr.bf16.mxu1 %v9480_v29  ;;  %v11198_v28 = vld [vmem:[#allocation38_spill] sm:$0xff] }
 0x5aa   :  { %3388 = vmatprep.mubr.bf16.mxu0 %v11166_v47  ;;  %3429 = vmatprep.mubr.bf16.mxu1 %v11166_v47 }
 0x5ac   :  { %3359 = vmatpush1.bf16.msra.mxu0 %v9482_v30  ;;  %3400 = vmatpush1.bf16.msra.mxu1 %v9484_v31  ;;  %v11199_v30 = vsel %vm9165_vm2, %v9235_v48, %v9233_v4 }
 0x5ad   :  { %3360 = vmatprep.subr.bf16.mxu0 %v9490_v32  ;;  %3401 = vmatprep.subr.bf16.mxu1 %v9492_v33 }
 0x5b0   :  { %3361 = vmatpush1.bf16.msra.mxu0 %v9494_v34  ;;  %3402 = vmatpush1.bf16.msra.mxu1 %v9496_v35  ;;  %v11200_v34 = vld [vmem:[#allocation36_spill] sm:$0xff]  ;;  %v11201_v35 = vld [vmem:[#allocation34_spill] sm:$0xff] }
 0x5b1   :  { %3362 = vmatprep.subr.bf16.mxu0 %v9502_v36  ;;  %3403 = vmatprep.subr.bf16.mxu1 %v9504_v37  ;;  %v11202_v36 = vsel %vm9169_vm3, %v11200_v34, %v11201_v35  ;;  %v8238_v34 = vld [vmem:[#allocation5 + $0xc8] ss:$16 sps:$4 sm:$0xff]   ;;  %v8243_v35 = vld [vmem:[#allocation5 + $0xe4] ss:$16 sps:$4 sm:$0xff]  }
 0x5b4   :  { %3363 = vmatpush1.bf16.msra.mxu0 %v9506_v38  ;;  %3404 = vmatpush1.bf16.msra.mxu1 %v9508_v39  ;;  %v11203_v38 = vld [vmem:[#allocation37_spill] sm:$0xff]  ;;  %v11204_v39 = vld [vmem:[#allocation35_spill] sm:$0xff] }
 0x5b5   :  { %3364 = vmatprep.subr.bf16.mxu0 %v9514_v40  ;;  %3405 = vmatprep.subr.bf16.mxu1 %v9516_v41  ;;  %v11205_v40 = vsel %vm9175_vm4, %v11203_v38, %v11204_v39  ;;  %v8244_v38 = vld [vmem:[#allocation5 + $0xe8] ss:$16 sps:$4 sm:$0xff]  }
 0x5b8   :  { %3365 = vmatpush1.bf16.msra.mxu0 %v9518_v42  ;;  %3406 = vmatpush1.bf16.msra.mxu1 %v9520_v43 }
 0x5b9   :  { %3366 = vmatprep.subr.bf16.mxu0 %v9524_v49  ;;  %3407 = vmatprep.subr.bf16.mxu1 %v9532_v45 }
 0x5bc   :  { %3367 = vmatpush1.bf16.msra.mxu0 %v9528_v9  ;;  %3408 = vmatpush1.bf16.msra.mxu1 %v9530_v60 }
 0x5bd   :  { %3368 = vmatprep.subr.bf16.mxu0 %v9535_v14  ;;  %3409 = vmatprep.subr.bf16.mxu1 %v9537_v51 }
 0x5c0   :  { %3369 = vmatpush1.bf16.msra.mxu0 %v9542_v53  ;;  %3410 = vmatpush1.bf16.msra.mxu1 %v9544_v7 }
 0x5c1   :  { %3370 = vmatprep.subr.bf16.mxu0 %v9548_v54  ;;  %3411 = vmatprep.subr.bf16.mxu1 %v9550_v3 }
 0x5c4   :  { %3371 = vmatpush1.bf16.msra.mxu0 %v9554_v55  ;;  %3412 = vmatpush1.bf16.msra.mxu1 %v9556_v24 }
 0x5c5   :  { %3673 = vmatprep.subr.bf16.mxu0 %v8201_v21  ;;  %3714 = vmatprep.subr.bf16.mxu1 %v8204_v18 }
 0x67a   :  { %v3073_v26 = vpop.f32.mrb[52].mxu0  ;;  %v3114_v27 = vpop.f32.mrb[52].mxu1 }
 0x67b   :  { %v3121_v29 = vadd.f32 %v3073_v26, %v11198_v28  ;;  %v3123_v31 = vadd.f32 %v3114_v27, %v11199_v30  ;;  %v3075_v32 = vpop.f32.mrb[53].mxu0  ;;  %v3116_v33 = vpop.f32.mrb[53].mxu1  ;;  %v8226_v26 = vld [vmem:[#allocation5 + $0x88] ss:$16 sps:$4 sm:$0xff]   ;;  %v8231_v27 = vld [vmem:[#allocation5 + $0xa4] ss:$16 sps:$4 sm:$0xff]  }
 0x67c   :  { %v3122_v37 = vadd.f32 %v3075_v32, %v11202_v36  ;;  %v3124_v41 = vadd.f32 %v3116_v33, %v11205_v40  ;;  %v3077_v42 = vpop.f32.mrb[54].mxu0  ;;  %v3118_v43 = vpop.f32.mrb[54].mxu1  ;;  %v8229_v28 = vld [vmem:[#allocation5 + $0xa0] ss:$16 sps:$4 sm:$0xff]   ;;  %v8234_v30 = vld [vmem:[#allocation5 + $0xac] ss:$16 sps:$4 sm:$0xff]  }
 0x67d   :  { %v7703_v49 = vmul.f32 -1.442695, %v3121_v29  ;;  %v3078_v9 = vpop.f32.mrb[55].mxu0  ;;  %v3119_v48 = vpop.f32.mrb[55].mxu1  ;;  %v8232_v29 = vld [vmem:[#allocation5 + $0xa8] ss:$16 sps:$4 sm:$0xff]  }
 0x67e   :  { %v7704_v4 = vmul.f32 -1.442695, %v3122_v37  ;;  %v7705_v60 = vmul.f32 -1.442695, %v3124_v41  ;;  %v8240_v32 = vld [vmem:[#allocation5 + $0xcc] ss:$16 sps:$4 sm:$0xff]  }
 0x67f   :  { %8471 = vpow2.f32 %v7703_v49  ;;  %v8235_v33 = vld [vmem:[#allocation5 + $0xc0] ss:$16 sps:$4 sm:$0xff]   ;;  %v8246_v36 = vld [vmem:[#allocation5 + $0xec] ss:$16 sps:$4 sm:$0xff]  }
 0x680   :  { %8473 = vpow2.f32 %v7704_v4  ;;  %v8241_v37 = vld [vmem:[#allocation5 + $0xe0] ss:$16 sps:$4 sm:$0xff]   ;;  %v11206_v41 = vld [vmem:[#allocation45_spill] sm:$0xff]  ;;  %v11208_v49 = vld [vmem:[#allocation39_spill] sm:$0xff] }
 0x681   :  { %8475 = vpow2.f32 %v7705_v60  ;;  %v11207_v43 = vld [vmem:[#allocation40_spill] sm:$0xff] }
 0x682   :  { %8477 = vtanh.f32 %v3123_v31  ;;  %v8237_v31 = vld [vmem:[#allocation5 + $0xc4] ss:$16 sps:$4 sm:$0xff]   ;;  %v11209_v9 = vsel %vm9165_vm2, %v11207_v43, %v11208_v49  ;;  %v9850_v49 = vld [vmem:[#allocation7 + $0xa0] ss:$16 sps:$4 sm:$0xff]  }
 0x683   :  { %v9846_v43 = vld [vmem:[#allocation7 + $0xa4] ss:$16 sps:$4 sm:$0xff]  }
 0x689   :  { %v8472_v45 = vpop.eup %8471 }
 0x68a   :  { %v8474_v14 = vpop.eup %8473  ;;  %v3128_v51 = vadd.f32 1.0, %v8472_v45  ;;  %v11210_v45 = vld [vmem:[#allocation43_spill] sm:$0xff] }
 0x68b   :  { %v3134_v53 = vadd.f32 1.0, %v8474_v14  ;;  %v8476_v7 = vpop.eup %8475  ;;  %v11211_v14 = vld [vmem:[#allocation41_spill] sm:$0xff] }
 0x68c   :  { %8479 = vrcp.f32 %v3128_v51  ;;  %v8478_v54 = vpop.eup %8477  ;;  %v3141_v46 = vadd.f32 1.0, %v8476_v7  ;;  %v11212_v51 = vsel %vm9169_vm3, %v11210_v45, %v11211_v14  ;;  %v11213_v7 = vld [vmem:[#allocation44_spill] sm:$0xff]  ;;  %v9866_v14 = vld [vmem:[#allocation7 + $0xc8] ss:$16 sps:$4 sm:$0xff]  }
 0x68d   :  { %8481 = vrcp.f32 %v3134_v53  ;;  %v9864_v45 = vld [vmem:[#allocation7 + $0xc0] ss:$16 sps:$4 sm:$0xff]  }
 0x68e   :  { %8483 = vrcp.f32 %v3141_v46 }
 0x696   :  { %v8480_v3 = vpop.eup %8479 }
 0x697   :  { %v8482_v55 = vpop.eup %8481  ;;  %v3145_v24 = vmul.f32 %v8480_v3, %v8478_v54  ;;  %v11214_v54 = vld [vmem:[#allocation42_spill] sm:$0xff] }
 0x698   :  { %v3144_v25 = vmul.f32 %v8482_v55, %v9697_v12  ;;  %v8484_v0 = vpop.eup %8483  ;;  %v8220_v12 = vld [vmem:[#allocation5 + $0x68] ss:$16 sps:$4 sm:$0xff]   ;;  %v11215_v3 = vsel %vm9175_vm4, %v11213_v7, %v11214_v54  ;;  %v9876_v7 = vld [vmem:[#allocation7 + $0xe0] ss:$16 sps:$4 sm:$0xff]  }
 0x699   :  { %v9878_v54 = vld [vmem:[#allocation7 + $0xe8] ss:$16 sps:$4 sm:$0xff]  }
 0x69a   :  { %v9753_v15 = vadd.f32 %v3145_v24, %v3144_v25 }
 0x69c   :  { %8485 = vtanh.f32 %v9753_v15 }
 0x6a6   :  { %v8486_v23 = vpop.eup %8485 }
 0x6a7   :  { %v9756_v10 = vmul.f32 %v8486_v23, %v8484_v0 }
 0x6a9   :  { %v3163_v2 = vpack.c.bf16 %v9756_v10, %v9756_v10 }
 0x6ab   :  { %3389 = vmatmul.mubr.bf16.vlgmr.msra.gmra.mrb[56].mxu0 %v3163_v2  ;;  %3430 = vmatmul.mubr.bf16.vlgmr.msra.gmra.mrb[56].mxu1 %v3163_v2 }
 0x6ac   :  { %3705 = vmatprep.mubr.bf16.mxu0 %v11166_v47  ;;  %3746 = vmatprep.mubr.bf16.mxu1 %v11166_v47 }
 0x6ad   :  { %3674 = vmatpush1.bf16.msra.mxu0 %v8199_v5  ;;  %3715 = vmatpush1.bf16.msra.mxu1 %v8202_v44 }
 0x6ae   :  { %3675 = vmatprep.subr.bf16.mxu0 %v8207_v22  ;;  %3716 = vmatprep.subr.bf16.mxu1 %v8210_v50 }
 0x6b1   :  { %3676 = vmatpush1.bf16.msra.mxu0 %v8205_v52  ;;  %3717 = vmatpush1.bf16.msra.mxu1 %v8208_v1 }
 0x6b2   :  { %3677 = vmatprep.subr.bf16.mxu0 %v8213_v13  ;;  %3718 = vmatprep.subr.bf16.mxu1 %v8216_v63 }
 0x6b5   :  { %3678 = vmatpush1.bf16.msra.mxu0 %v8211_v8  ;;  %3719 = vmatpush1.bf16.msra.mxu1 %v8214_v11 }
 0x6b6   :  { %3679 = vmatprep.subr.bf16.mxu0 %v8219_v6  ;;  %3720 = vmatprep.subr.bf16.mxu1 %v8222_v56 }
 0x6b9   :  { %3680 = vmatpush1.bf16.msra.mxu0 %v8217_v19  ;;  %3721 = vmatpush1.bf16.msra.mxu1 %v8220_v12 }
 0x6ba   :  { %3681 = vmatprep.subr.bf16.mxu0 %v8225_v61  ;;  %3722 = vmatprep.subr.bf16.mxu1 %v8228_v16  ;;  %v9788_v16 = vld [vmem:[#allocation7 + $0x4] ss:$16 sps:$4 sm:$0xff]  }
 0x6bd   :  { %3682 = vmatpush1.bf16.msra.mxu0 %v8223_v17  ;;  %3723 = vmatpush1.bf16.msra.mxu1 %v8226_v26  ;;  %v9792_v17 = vld [vmem:[#allocation7] ss:$16 sps:$4 sm:$0xff]   ;;  %v9794_v26 = vld [vmem:[#allocation7 + $0x8] ss:$16 sps:$4 sm:$0xff]  }
 0x6be   :  { %3683 = vmatprep.subr.bf16.mxu0 %v8231_v27  ;;  %3724 = vmatprep.subr.bf16.mxu1 %v8234_v30  ;;  %v9800_v27 = vld [vmem:[#allocation7 + $0x24] ss:$16 sps:$4 sm:$0xff]   ;;  %v9806_v30 = vld [vmem:[#allocation7 + $0x28] ss:$16 sps:$4 sm:$0xff]  }
 0x6c1   :  { %3684 = vmatpush1.bf16.msra.mxu0 %v8229_v28  ;;  %3725 = vmatpush1.bf16.msra.mxu1 %v8232_v29  ;;  %v9802_v28 = vld [vmem:[#allocation7 + $0x2c] ss:$16 sps:$4 sm:$0xff]   ;;  %v9804_v29 = vld [vmem:[#allocation7 + $0x20] ss:$16 sps:$4 sm:$0xff]  }
 0x6c2   :  { %3685 = vmatprep.subr.bf16.mxu0 %v8237_v31  ;;  %3726 = vmatprep.subr.bf16.mxu1 %v8240_v32  ;;  %v9812_v31 = vld [vmem:[#allocation7 + $0x44] ss:$16 sps:$4 sm:$0xff]   ;;  %v9814_v32 = vld [vmem:[#allocation7 + $0x4c] ss:$16 sps:$4 sm:$0xff]  }
 0x6c5   :  { %3686 = vmatpush1.bf16.msra.mxu0 %v8235_v33  ;;  %3727 = vmatpush1.bf16.msra.mxu1 %v8238_v34  ;;  %v9816_v33 = vld [vmem:[#allocation7 + $0x40] ss:$16 sps:$4 sm:$0xff]   ;;  %v9818_v34 = vld [vmem:[#allocation7 + $0x48] ss:$16 sps:$4 sm:$0xff]  }
 0x6c6   :  { %3687 = vmatprep.subr.bf16.mxu0 %v8243_v35  ;;  %3728 = vmatprep.subr.bf16.mxu1 %v8246_v36  ;;  %v9824_v35 = vld [vmem:[#allocation7 + $0x64] ss:$16 sps:$4 sm:$0xff]   ;;  %v9826_v36 = vld [vmem:[#allocation7 + $0x6c] ss:$16 sps:$4 sm:$0xff]  }
 0x6c9   :  { %3688 = vmatpush1.bf16.msra.mxu0 %v8241_v37  ;;  %3729 = vmatpush1.bf16.msra.mxu1 %v8244_v38  ;;  %v9828_v37 = vld [vmem:[#allocation7 + $0x60] ss:$16 sps:$4 sm:$0xff]   ;;  %v9830_v38 = vld [vmem:[#allocation7 + $0x68] ss:$16 sps:$4 sm:$0xff]  }
 0x6ca   :  { %4005 = vmatprep.subr.bf16.mxu0 %v9788_v16 }
 0x77e   :  { %v3390_v39 = vpop.f32.mrb[56].mxu0  ;;  %v3431_v40 = vpop.f32.mrb[56].mxu1 }
 0x77f   :  { %v3438_v42 = vadd.f32 %v3390_v39, %v11206_v41  ;;  %v3440_v48 = vadd.f32 %v3431_v40, %v11209_v9  ;;  %v3392_v4 = vpop.f32.mrb[57].mxu0  ;;  %v3433_v60 = vpop.f32.mrb[57].mxu1  ;;  %v9836_v39 = vld [vmem:[#allocation7 + $0x84] ss:$16 sps:$4 sm:$0xff]   ;;  %v9838_v40 = vld [vmem:[#allocation7 + $0x8c] ss:$16 sps:$4 sm:$0xff]  }
 0x780   :  { %v3439_v53 = vadd.f32 %v3392_v4, %v11212_v51  ;;  %v3441_v55 = vadd.f32 %v3433_v60, %v11215_v3  ;;  %v3394_v24 = vpop.f32.mrb[58].mxu0  ;;  %v3435_v46 = vpop.f32.mrb[58].mxu1  ;;  %v9840_v41 = vld [vmem:[#allocation7 + $0x80] ss:$16 sps:$4 sm:$0xff]   ;;  %v9852_v9 = vld [vmem:[#allocation7 + $0xa8] ss:$16 sps:$4 sm:$0xff]  }
 0x781   :  { %v7738_v25 = vmul.f32 -1.442695, %v3438_v42  ;;  %v3395_v0 = vpop.f32.mrb[59].mxu0  ;;  %v3436_v23 = vpop.f32.mrb[59].mxu1  ;;  %v9842_v42 = vld [vmem:[#allocation7 + $0x88] ss:$16 sps:$4 sm:$0xff]  }
 0x782   :  { %v7739_v2 = vmul.f32 -1.442695, %v3439_v53  ;;  %v7740_v21 = vmul.f32 -1.442695, %v3441_v55  ;;  %v9857_v4 = vld [vmem:[#allocation7 + $0xc4] ss:$16 sps:$4 sm:$0xff]  }
 0x783   :  { %8487 = vpow2.f32 %v7738_v25  ;;  %v9859_v60 = vld [vmem:[#allocation7 + $0xcc] ss:$16 sps:$4 sm:$0xff]   ;;  %v9870_v51 = vld [vmem:[#allocation7 + $0xe4] ss:$16 sps:$4 sm:$0xff]  }
 0x784   :  { %8489 = vpow2.f32 %v7739_v2  ;;  %v9872_v53 = vld [vmem:[#allocation7 + $0xec] ss:$16 sps:$4 sm:$0xff]   ;;  %v11216_v24 = vld [vmem:[#allocation52_spill] sm:$0xff]  ;;  %v11218_v0 = vld [vmem:[#allocation46_spill] sm:$0xff] }
 0x785   :  { %8491 = vpow2.f32 %v7740_v21  ;;  %v11217_v25 = vld [vmem:[#allocation47_spill] sm:$0xff] }
 0x786   :  { %8493 = vtanh.f32 %v3440_v48  ;;  %v9854_v48 = vld [vmem:[#allocation7 + $0xac] ss:$16 sps:$4 sm:$0xff]   ;;  %v11219_v23 = vsel %vm9165_vm2, %v11217_v25, %v11218_v0 }
 0x78d   :  { %v8488_v18 = vpop.eup %8487 }
 0x78e   :  { %v8490_v5 = vpop.eup %8489  ;;  %v3445_v44 = vadd.f32 1.0, %v8488_v18 }
 0x78f   :  { %v3451_v22 = vadd.f32 1.0, %v8490_v5  ;;  %v8492_v50 = vpop.eup %8491  ;;  %v11220_v5 = vld [vmem:[#allocation50_spill] sm:$0xff] }
 0x790   :  { %8495 = vrcp.f32 %v3445_v44  ;;  %v8494_v52 = vpop.eup %8493  ;;  %v3458_v8 = vadd.f32 1.0, %v8492_v50  ;;  %v11221_v44 = vld [vmem:[#allocation48_spill] sm:$0xff] }
 0x791   :  { %8497 = vrcp.f32 %v3451_v22  ;;  %v11222_v22 = vsel %vm9169_vm3, %v11220_v5, %v11221_v44 }
 0x792   :  { %8499 = vrcp.f32 %v3458_v8 }
 0x79a   :  { %v8496_v1 = vpop.eup %8495 }
 0x79b   :  { %v8498_v13 = vpop.eup %8497  ;;  %v3462_v63 = vmul.f32 %v8496_v1, %v8494_v52  ;;  %v11223_v52 = vld [vmem:[#allocation51_spill] sm:$0xff]  ;;  %v11224_v1 = vld [vmem:[#allocation49_spill] sm:$0xff] }
 0x79c   :  { %v3461_v11 = vmul.f32 %v8498_v13, %v9753_v15  ;;  %v8500_v56 = vpop.eup %8499  ;;  %v9790_v15 = vld [vmem:[#allocation7 + $0xc] ss:$16 sps:$4 sm:$0xff]   ;;  %v11225_v13 = vsel %vm9175_vm4, %v11223_v52, %v11224_v1 }
 0x79d   :  { %4046 = vmatprep.subr.bf16.mxu1 %v9790_v15 }
 0x79e   :  { %v9779_v6 = vadd.f32 %v3462_v63, %v3461_v11 }
 0x7a0   :  { %8501 = vtanh.f32 %v9779_v6 }
 0x7aa   :  { %v8502_v19 = vpop.eup %8501 }
 0x7ab   :  { %v9782_v12 = vmul.f32 %v8502_v19, %v8500_v56 }
 0x7ad   :  { %v3480_v61 = vpack.c.bf16 %v9782_v12, %v9782_v12 }
 0x7af   :  { %3706 = vmatmul.mubr.bf16.vlgmr.msra.gmra.mrb[60].mxu0 %v3480_v61  ;;  %3747 = vmatmul.mubr.bf16.vlgmr.msra.gmra.mrb[60].mxu1 %v3480_v61 }
 0x7b0   :  { %4037 = vmatprep.mubr.bf16.mxu0 %v11166_v47  ;;  %4078 = vmatprep.mubr.bf16.mxu1 %v11166_v47 }
 0x7b1   :  { %4006 = vmatpush1.bf16.msra.mxu0 %v9792_v17  ;;  %4047 = vmatpush1.bf16.msra.mxu1 %v9794_v26 }
 0x7b2   :  { %4007 = vmatprep.subr.bf16.mxu0 %v9800_v27  ;;  %4048 = vmatprep.subr.bf16.mxu1 %v9802_v28 }
 0x7b5   :  { %4008 = vmatpush1.bf16.msra.mxu0 %v9804_v29  ;;  %4049 = vmatpush1.bf16.msra.mxu1 %v9806_v30 }
 0x7b6   :  { %4009 = vmatprep.subr.bf16.mxu0 %v9812_v31  ;;  %4050 = vmatprep.subr.bf16.mxu1 %v9814_v32 }
 0x7b9   :  { %4010 = vmatpush1.bf16.msra.mxu0 %v9816_v33  ;;  %4051 = vmatpush1.bf16.msra.mxu1 %v9818_v34 }
 0x7ba   :  { %4011 = vmatprep.subr.bf16.mxu0 %v9824_v35  ;;  %4052 = vmatprep.subr.bf16.mxu1 %v9826_v36 }
 0x7bd   :  { %4012 = vmatpush1.bf16.msra.mxu0 %v9828_v37  ;;  %4053 = vmatpush1.bf16.msra.mxu1 %v9830_v38 }
 0x7be   :  { %4013 = vmatprep.subr.bf16.mxu0 %v9836_v39  ;;  %4054 = vmatprep.subr.bf16.mxu1 %v9838_v40 }
 0x7c1   :  { %4014 = vmatpush1.bf16.msra.mxu0 %v9840_v41  ;;  %4055 = vmatpush1.bf16.msra.mxu1 %v9842_v42 }
 0x7c2   :  { %4015 = vmatprep.subr.bf16.mxu0 %v9846_v43  ;;  %4056 = vmatprep.subr.bf16.mxu1 %v9854_v48 }
 0x7c5   :  { %4016 = vmatpush1.bf16.msra.mxu0 %v9850_v49  ;;  %4057 = vmatpush1.bf16.msra.mxu1 %v9852_v9 }
 0x7c6   :  { %4017 = vmatprep.subr.bf16.mxu0 %v9857_v4  ;;  %4058 = vmatprep.subr.bf16.mxu1 %v9859_v60 }
 0x7c9   :  { %4018 = vmatpush1.bf16.msra.mxu0 %v9864_v45  ;;  %4059 = vmatpush1.bf16.msra.mxu1 %v9866_v14 }
 0x7ca   :  { %4019 = vmatprep.subr.bf16.mxu0 %v9870_v51  ;;  %4060 = vmatprep.subr.bf16.mxu1 %v9872_v53 }
 0x7cd   :  { %4020 = vmatpush1.bf16.msra.mxu0 %v9876_v7  ;;  %4061 = vmatpush1.bf16.msra.mxu1 %v9878_v54 }
 0x7ce   :  { %4309 = vmatprep.subr.bf16.mxu0 %v9788_v16  ;;  %4350 = vmatprep.subr.bf16.mxu1 %v9790_v15 }
 0x882   :  { %v3707_v3 = vpop.f32.mrb[60].mxu0  ;;  %v3748_v55 = vpop.f32.mrb[60].mxu1 }
 0x883   :  { %v3755_v46 = vadd.f32 %v3707_v3, %v11216_v24  ;;  %v3757_v2 = vadd.f32 %v3748_v55, %v11219_v23  ;;  %v3709_v21 = vpop.f32.mrb[61].mxu0  ;;  %v3750_v18 = vpop.f32.mrb[61].mxu1 }
 0x884   :  { %v3756_v50 = vadd.f32 %v3709_v21, %v11222_v22  ;;  %v3758_v63 = vadd.f32 %v3750_v18, %v11225_v13  ;;  %v3711_v8 = vpop.f32.mrb[62].mxu0  ;;  %v3752_v11 = vpop.f32.mrb[62].mxu1 }
 0x885   :  { %v7773_v56 = vmul.f32 -1.442695, %v3755_v46  ;;  %v3712_v19 = vpop.f32.mrb[63].mxu0  ;;  %v3753_v61 = vpop.f32.mrb[63].mxu1 }
 0x886   :  { %v7774_v3 = vmul.f32 -1.442695, %v3756_v50  ;;  %v7775_v55 = vmul.f32 -1.442695, %v3758_v63 }
 0x887   :  { %8503 = vpow2.f32 %v7773_v56 }
 0x888   :  { %8505 = vpow2.f32 %v7774_v3  ;;  %v11229_v3 = vld [vmem:[#allocation13_spill] sm:$0xff] }
 0x889   :  { %8507 = vpow2.f32 %v7775_v55  ;;  %v4398_v55 = vsel %vm127_vm1, %v11229_v3, %v9756_v10 }
 0x88a   :  { %8509 = vtanh.f32 %v3757_v2  ;;  %v11226_v2 = vld [vmem:[#allocation53_spill] sm:$0xff] }
 0x891   :  { %v8504_v24 = vpop.eup %8503 }
 0x892   :  { %v8506_v25 = vpop.eup %8505  ;;  %v3762_v0 = vadd.f32 1.0, %v8504_v24  ;;  %v4399_v24 = vpack.c.bf16 %v4398_v55, %v4398_v55  ;;  %v10169_v55 = vld [vmem:[#allocation9 + $0x2c] ss:$16 sps:$4 sm:$0xff]  }
 0x893   :  { %v3768_v23 = vadd.f32 1.0, %v8506_v25  ;;  %v8508_v21 = vpop.eup %8507  ;;  %v4703_v25 = vsel %vm127_vm1, %v9642_v57, %v9700_v62 }
 0x894   :  { %8511 = vrcp.f32 %v3762_v0  ;;  %v8510_v5 = vpop.eup %8509  ;;  %v3775_v46 = vadd.f32 1.0, %v8508_v21  ;;  %v4704_v0 = vpack.c.bf16 %v4703_v25, %v4703_v25  ;;  %v10181_v25 = vld [vmem:[#allocation9 + $0x4c] ss:$16 sps:$4 sm:$0xff]  }
 0x895   :  { %8513 = vrcp.f32 %v3768_v23  ;;  %v5008_v23 = vsel %vm127_vm1, %v9700_v62, %v9642_v57  ;;  %v10091_v57 = vld [vmem:[#allocation7 + $0x4] ss:$16 sps:$4 sm:$0xff]   ;;  %v10093_v62 = vld [vmem:[#allocation7 + $0xc] ss:$16 sps:$4 sm:$0xff]  }
 0x896   :  { %8515 = vrcp.f32 %v3775_v46  ;;  %v5009_v21 = vpack.c.bf16 %v5008_v23, %v5008_v23  ;;  %v10189_v23 = vld [vmem:[#allocation9 + $0x48] ss:$16 sps:$4 sm:$0xff]  }
 0x89e   :  { %v8512_v18 = vpop.eup %8511 }
 0x89f   :  { %v8514_v44 = vpop.eup %8513  ;;  %v3779_v22 = vmul.f32 %v8512_v18, %v8510_v5 }
 0x8a0   :  { %v3778_v52 = vmul.f32 %v8514_v44, %v9779_v6  ;;  %v8516_v1 = vpop.eup %8515  ;;  %v11228_v6 = vld [vmem:[#allocation12_spill] sm:$0xff] }
 0x8a1   :  { %v4093_v19 = vsel %vm127_vm1, %v11228_v6, %v9782_v12 }
 0x8a2   :  { %v3780_v50 = vadd.f32 %v3779_v22, %v3778_v52  ;;  %v4094_v61 = vpack.c.bf16 %v4093_v19, %v4093_v19  ;;  %v10163_v19 = vld [vmem:[#allocation9 + $0x8] ss:$16 sps:$4 sm:$0xff]  }
 0x8a4   :  { %8517 = vtanh.f32 %v3780_v50 }
 0x8ae   :  { %v8518_v13 = vpop.eup %8517 }
 0x8af   :  { %v9903_v63 = vmul.f32 %v8518_v13, %v8516_v1  ;;  %v10153_v13 = vld [vmem:[#allocation9 + $0x4] ss:$16 sps:$4 sm:$0xff]  }
 0x8b0   :  { %11230 = vst [vmem:[#allocation14_spill] sm:$0xff] %v10153_v13 }
 0x8b1   :  { %v3789_v11 = vsel %vm127_vm1, %v11226_v2, %v9903_v63 }
 0x8b2   :  { %v3790_v56 = vpack.c.bf16 %v3789_v11, %v3789_v11  ;;  %v10155_v11 = vld [vmem:[#allocation9 + $0xc] ss:$16 sps:$4 sm:$0xff]  }
 0x8b3   :  { %11231 = vst [vmem:[#allocation15_spill] sm:$0xff] %v10155_v11 }
 0x8b4   :  { %4038 = vmatmul.mubr.bf16.vlgmr.msra.gmra.mrb[64].mxu0 %v3790_v56  ;;  %4079 = vmatmul.mubr.bf16.vlgmr.msra.gmra.mrb[64].mxu1 %v3790_v56  ;;  %v5923_v56 = vsel %vm127_vm1, %v9903_v63, %v11226_v2  ;;  %v10173_v63 = vld [vmem:[#allocation9 + $0x20] ss:$16 sps:$4 sm:$0xff]   ;;  %v10175_v2 = vld [vmem:[#allocation9 + $0x28] ss:$16 sps:$4 sm:$0xff]  }
 0x8b5   :  { %4310 = vmatpush1.bf16.msra.mxu0 %v9792_v17  ;;  %4351 = vmatpush1.bf16.msra.mxu1 %v9794_v26 }
 0x8b6   :  { %4311 = vmatprep.subr.bf16.mxu0 %v9800_v27  ;;  %4352 = vmatprep.subr.bf16.mxu1 %v9802_v28 }
 0x8b7   :  { %4341 = vmatprep.mubr.bf16.mxu0 %v11166_v47  ;;  %4382 = vmatprep.mubr.bf16.mxu1 %v11166_v47 }
 0x8b9   :  { %4312 = vmatpush1.bf16.msra.mxu0 %v9804_v29  ;;  %4353 = vmatpush1.bf16.msra.mxu1 %v9806_v30 }
 0x8ba   :  { %4313 = vmatprep.subr.bf16.mxu0 %v9812_v31  ;;  %4354 = vmatprep.subr.bf16.mxu1 %v9814_v32 }
 0x8bd   :  { %4314 = vmatpush1.bf16.msra.mxu0 %v9816_v33  ;;  %4355 = vmatpush1.bf16.msra.mxu1 %v9818_v34 }
 0x8be   :  { %4315 = vmatprep.subr.bf16.mxu0 %v9824_v35  ;;  %4356 = vmatprep.subr.bf16.mxu1 %v9826_v36 }
 0x8c1   :  { %4316 = vmatpush1.bf16.msra.mxu0 %v9828_v37  ;;  %4357 = vmatpush1.bf16.msra.mxu1 %v9830_v38 }
 0x8c2   :  { %4317 = vmatprep.subr.bf16.mxu0 %v9836_v39  ;;  %4358 = vmatprep.subr.bf16.mxu1 %v9838_v40 }
 0x8c5   :  { %4318 = vmatpush1.bf16.msra.mxu0 %v9840_v41  ;;  %4359 = vmatpush1.bf16.msra.mxu1 %v9842_v42 }
 0x8c6   :  { %4319 = vmatprep.subr.bf16.mxu0 %v9846_v43  ;;  %4360 = vmatprep.subr.bf16.mxu1 %v9854_v48 }
 0x8c9   :  { %4320 = vmatpush1.bf16.msra.mxu0 %v9850_v49  ;;  %4361 = vmatpush1.bf16.msra.mxu1 %v9852_v9 }
 0x8ca   :  { %4321 = vmatprep.subr.bf16.mxu0 %v9857_v4  ;;  %4362 = vmatprep.subr.bf16.mxu1 %v9859_v60 }
 0x8cd   :  { %4322 = vmatpush1.bf16.msra.mxu0 %v9864_v45  ;;  %4363 = vmatpush1.bf16.msra.mxu1 %v9866_v14 }
 0x8ce   :  { %4323 = vmatprep.subr.bf16.mxu0 %v9870_v51  ;;  %4364 = vmatprep.subr.bf16.mxu1 %v9872_v53 }
 0x8d1   :  { %4324 = vmatpush1.bf16.msra.mxu0 %v9876_v7  ;;  %4365 = vmatpush1.bf16.msra.mxu1 %v9878_v54 }
 0x8d2   :  { %4614 = vmatprep.subr.bf16.mxu0 %v9788_v16  ;;  %4655 = vmatprep.subr.bf16.mxu1 %v9790_v15 }
 0x8d4   :  { %4342 = vmatmul.mubr.bf16.vlgmr.msra.gmra.mrb[68].mxu0 %v4094_v61  ;;  %4383 = vmatmul.mubr.bf16.vlgmr.msra.gmra.mrb[68].mxu1 %v4094_v61  ;;  %v5924_v61 = vpack.c.bf16 %v5923_v56, %v5923_v56 }
 0x8d5   :  { %4615 = vmatpush1.bf16.msra.mxu0 %v9792_v17  ;;  %4656 = vmatpush1.bf16.msra.mxu1 %v9794_v26 }
 0x8d6   :  { %4616 = vmatprep.subr.bf16.mxu0 %v9800_v27  ;;  %4657 = vmatprep.subr.bf16.mxu1 %v9802_v28 }
 0x8d7   :  { %4646 = vmatprep.mubr.bf16.mxu0 %v11166_v47  ;;  %4687 = vmatprep.mubr.bf16.mxu1 %v11166_v47 }
 0x8d9   :  { %4617 = vmatpush1.bf16.msra.mxu0 %v9804_v29  ;;  %4658 = vmatpush1.bf16.msra.mxu1 %v9806_v30 }
 0x8da   :  { %4618 = vmatprep.subr.bf16.mxu0 %v9812_v31  ;;  %4659 = vmatprep.subr.bf16.mxu1 %v9814_v32 }
 0x8dd   :  { %4619 = vmatpush1.bf16.msra.mxu0 %v9816_v33  ;;  %4660 = vmatpush1.bf16.msra.mxu1 %v9818_v34 }
 0x8de   :  { %4620 = vmatprep.subr.bf16.mxu0 %v9824_v35  ;;  %4661 = vmatprep.subr.bf16.mxu1 %v9826_v36 }
 0x8e1   :  { %4621 = vmatpush1.bf16.msra.mxu0 %v9828_v37  ;;  %4662 = vmatpush1.bf16.msra.mxu1 %v9830_v38 }
 0x8e2   :  { %4622 = vmatprep.subr.bf16.mxu0 %v9836_v39  ;;  %4663 = vmatprep.subr.bf16.mxu1 %v9838_v40 }
 0x8e5   :  { %4623 = vmatpush1.bf16.msra.mxu0 %v9840_v41  ;;  %4664 = vmatpush1.bf16.msra.mxu1 %v9842_v42 }
 0x8e6   :  { %4624 = vmatprep.subr.bf16.mxu0 %v9846_v43  ;;  %4665 = vmatprep.subr.bf16.mxu1 %v9854_v48 }
 0x8e9   :  { %4625 = vmatpush1.bf16.msra.mxu0 %v9850_v49  ;;  %4666 = vmatpush1.bf16.msra.mxu1 %v9852_v9 }
 0x8ea   :  { %4626 = vmatprep.subr.bf16.mxu0 %v9857_v4  ;;  %4667 = vmatprep.subr.bf16.mxu1 %v9859_v60 }
 0x8ed   :  { %4627 = vmatpush1.bf16.msra.mxu0 %v9864_v45  ;;  %4668 = vmatpush1.bf16.msra.mxu1 %v9866_v14 }
 0x8ee   :  { %4628 = vmatprep.subr.bf16.mxu0 %v9870_v51  ;;  %4669 = vmatprep.subr.bf16.mxu1 %v9872_v53 }
 0x8f1   :  { %4629 = vmatpush1.bf16.msra.mxu0 %v9876_v7  ;;  %4670 = vmatpush1.bf16.msra.mxu1 %v9878_v54 }
 0x8f2   :  { %4919 = vmatprep.subr.bf16.mxu0 %v9788_v16  ;;  %4960 = vmatprep.subr.bf16.mxu1 %v9790_v15 }
 0x8f4   :  { %4647 = vmatmul.mubr.bf16.vlgmr.msra.gmra.mrb[72].mxu0 %v4399_v24  ;;  %4688 = vmatmul.mubr.bf16.vlgmr.msra.gmra.mrb[72].mxu1 %v4399_v24  ;;  %v10179_v24 = vld [vmem:[#allocation9 + $0x44] ss:$16 sps:$4 sm:$0xff]  }
 0x8f5   :  { %4920 = vmatpush1.bf16.msra.mxu0 %v9792_v17  ;;  %4961 = vmatpush1.bf16.msra.mxu1 %v9794_v26 }
 0x8f6   :  { %4921 = vmatprep.subr.bf16.mxu0 %v9800_v27  ;;  %4962 = vmatprep.subr.bf16.mxu1 %v9802_v28 }
 0x8f7   :  { %4951 = vmatprep.mubr.bf16.mxu0 %v11166_v47  ;;  %4992 = vmatprep.mubr.bf16.mxu1 %v11166_v47 }
 0x8f9   :  { %4922 = vmatpush1.bf16.msra.mxu0 %v9804_v29  ;;  %4963 = vmatpush1.bf16.msra.mxu1 %v9806_v30 }
 0x8fa   :  { %4923 = vmatprep.subr.bf16.mxu0 %v9812_v31  ;;  %4964 = vmatprep.subr.bf16.mxu1 %v9814_v32 }
 0x8fd   :  { %4924 = vmatpush1.bf16.msra.mxu0 %v9816_v33  ;;  %4965 = vmatpush1.bf16.msra.mxu1 %v9818_v34 }
 0x8fe   :  { %4925 = vmatprep.subr.bf16.mxu0 %v9824_v35  ;;  %4966 = vmatprep.subr.bf16.mxu1 %v9826_v36 }
 0x901   :  { %4926 = vmatpush1.bf16.msra.mxu0 %v9828_v37  ;;  %4967 = vmatpush1.bf16.msra.mxu1 %v9830_v38 }
 0x902   :  { %4927 = vmatprep.subr.bf16.mxu0 %v9836_v39  ;;  %4968 = vmatprep.subr.bf16.mxu1 %v9838_v40 }
 0x905   :  { %4928 = vmatpush1.bf16.msra.mxu0 %v9840_v41  ;;  %4969 = vmatpush1.bf16.msra.mxu1 %v9842_v42 }
 0x906   :  { %4929 = vmatprep.subr.bf16.mxu0 %v9846_v43  ;;  %4970 = vmatprep.subr.bf16.mxu1 %v9854_v48 }
 0x909   :  { %4930 = vmatpush1.bf16.msra.mxu0 %v9850_v49  ;;  %4971 = vmatpush1.bf16.msra.mxu1 %v9852_v9 }
 0x90a   :  { %4931 = vmatprep.subr.bf16.mxu0 %v9857_v4  ;;  %4972 = vmatprep.subr.bf16.mxu1 %v9859_v60 }
 0x90d   :  { %4932 = vmatpush1.bf16.msra.mxu0 %v9864_v45  ;;  %4973 = vmatpush1.bf16.msra.mxu1 %v9866_v14 }
 0x90e   :  { %4933 = vmatprep.subr.bf16.mxu0 %v9870_v51  ;;  %4974 = vmatprep.subr.bf16.mxu1 %v9872_v53 }
 0x911   :  { %4934 = vmatpush1.bf16.msra.mxu0 %v9876_v7  ;;  %4975 = vmatpush1.bf16.msra.mxu1 %v9878_v54 }
 0x912   :  { %5224 = vmatprep.subr.bf16.mxu0 %v9788_v16  ;;  %5265 = vmatprep.subr.bf16.mxu1 %v9790_v15 }
 0x914   :  { %4952 = vmatmul.mubr.bf16.vlgmr.msra.gmra.mrb[76].mxu0 %v4704_v0  ;;  %4993 = vmatmul.mubr.bf16.vlgmr.msra.gmra.mrb[76].mxu1 %v4704_v0  ;;  %v10187_v0 = vld [vmem:[#allocation9 + $0x40] ss:$16 sps:$4 sm:$0xff]  }
 0x915   :  { %5225 = vmatpush1.bf16.msra.mxu0 %v9792_v17  ;;  %5266 = vmatpush1.bf16.msra.mxu1 %v9794_v26 }
 0x916   :  { %5226 = vmatprep.subr.bf16.mxu0 %v9800_v27  ;;  %5267 = vmatprep.subr.bf16.mxu1 %v9802_v28 }
 0x917   :  { %5256 = vmatprep.mubr.bf16.mxu0 %v11166_v47  ;;  %5297 = vmatprep.mubr.bf16.mxu1 %v11166_v47 }
 0x919   :  { %5227 = vmatpush1.bf16.msra.mxu0 %v9804_v29  ;;  %5268 = vmatpush1.bf16.msra.mxu1 %v9806_v30 }
 0x91a   :  { %5228 = vmatprep.subr.bf16.mxu0 %v9812_v31  ;;  %5269 = vmatprep.subr.bf16.mxu1 %v9814_v32 }
 0x91d   :  { %5229 = vmatpush1.bf16.msra.mxu0 %v9816_v33  ;;  %5270 = vmatpush1.bf16.msra.mxu1 %v9818_v34 }
 0x91e   :  { %5230 = vmatprep.subr.bf16.mxu0 %v9824_v35  ;;  %5271 = vmatprep.subr.bf16.mxu1 %v9826_v36 }
 0x921   :  { %5231 = vmatpush1.bf16.msra.mxu0 %v9828_v37  ;;  %5272 = vmatpush1.bf16.msra.mxu1 %v9830_v38 }
 0x922   :  { %5232 = vmatprep.subr.bf16.mxu0 %v9836_v39  ;;  %5273 = vmatprep.subr.bf16.mxu1 %v9838_v40 }
 0x925   :  { %5233 = vmatpush1.bf16.msra.mxu0 %v9840_v41  ;;  %5274 = vmatpush1.bf16.msra.mxu1 %v9842_v42 }
 0x926   :  { %5234 = vmatprep.subr.bf16.mxu0 %v9846_v43  ;;  %5275 = vmatprep.subr.bf16.mxu1 %v9854_v48 }
 0x929   :  { %5235 = vmatpush1.bf16.msra.mxu0 %v9850_v49  ;;  %5276 = vmatpush1.bf16.msra.mxu1 %v9852_v9 }
 0x92a   :  { %5236 = vmatprep.subr.bf16.mxu0 %v9857_v4  ;;  %5277 = vmatprep.subr.bf16.mxu1 %v9859_v60 }
 0x92d   :  { %5237 = vmatpush1.bf16.msra.mxu0 %v9864_v45  ;;  %5278 = vmatpush1.bf16.msra.mxu1 %v9866_v14 }
 0x92e   :  { %5238 = vmatprep.subr.bf16.mxu0 %v9870_v51  ;;  %5279 = vmatprep.subr.bf16.mxu1 %v9872_v53 }
 0x931   :  { %5239 = vmatpush1.bf16.msra.mxu0 %v9876_v7  ;;  %5280 = vmatpush1.bf16.msra.mxu1 %v9878_v54 }
 0x932   :  { %5529 = vmatprep.subr.bf16.mxu0 %v9788_v16  ;;  %5570 = vmatprep.subr.bf16.mxu1 %v9790_v15  ;;  %v5313_v16 = vsel %vm127_vm1, %v9756_v10, %v11229_v3  ;;  %v10101_v15 = vld [vmem:[#allocation7] ss:$16 sps:$4 sm:$0xff]   ;;  %v10167_v3 = vld [vmem:[#allocation9 + $0x24] ss:$16 sps:$4 sm:$0xff]  }
 0x933   :  { %v10113_v10 = vld [vmem:[#allocation7 + $0x20] ss:$16 sps:$4 sm:$0xff]  }
 0x934   :  { %5257 = vmatmul.mubr.bf16.vlgmr.msra.gmra.mrb[80].mxu0 %v5009_v21  ;;  %5298 = vmatmul.mubr.bf16.vlgmr.msra.gmra.mrb[80].mxu1 %v5009_v21  ;;  %v10193_v21 = vld [vmem:[#allocation9 + $0x64] ss:$16 sps:$4 sm:$0xff]  }
 0x935   :  { %5530 = vmatpush1.bf16.msra.mxu0 %v9792_v17  ;;  %5571 = vmatpush1.bf16.msra.mxu1 %v9794_v26  ;;  %v10103_v17 = vld [vmem:[#allocation7 + $0x8] ss:$16 sps:$4 sm:$0xff]   ;;  %v5314_v26 = vpack.c.bf16 %v5313_v16, %v5313_v16 }
 0x936   :  { %5531 = vmatprep.subr.bf16.mxu0 %v9800_v27  ;;  %5572 = vmatprep.subr.bf16.mxu1 %v9802_v28  ;;  %v10107_v27 = vld [vmem:[#allocation7 + $0x24] ss:$16 sps:$4 sm:$0xff]   ;;  %v10109_v28 = vld [vmem:[#allocation7 + $0x2c] ss:$16 sps:$4 sm:$0xff]   ;;  %v10201_v16 = vld [vmem:[#allocation9 + $0x68] ss:$16 sps:$4 sm:$0xff]  }
 0x937   :  { %5561 = vmatprep.mubr.bf16.mxu0 %v11166_v47  ;;  %5602 = vmatprep.mubr.bf16.mxu1 %v11166_v47 }
 0x939   :  { %5532 = vmatpush1.bf16.msra.mxu0 %v9804_v29  ;;  %5573 = vmatpush1.bf16.msra.mxu1 %v9806_v30  ;;  %v10115_v29 = vld [vmem:[#allocation7 + $0x28] ss:$16 sps:$4 sm:$0xff]   ;;  %v10119_v30 = vld [vmem:[#allocation7 + $0x44] ss:$16 sps:$4 sm:$0xff]  }
 0x93a   :  { %5533 = vmatprep.subr.bf16.mxu0 %v9812_v31  ;;  %5574 = vmatprep.subr.bf16.mxu1 %v9814_v32  ;;  %v10121_v31 = vld [vmem:[#allocation7 + $0x4c] ss:$16 sps:$4 sm:$0xff]   ;;  %v8307_v32 = vld [vmem:[#allocation7 + $0x40] ss:$16 sps:$4 sm:$0xff]  }
 0x93d   :  { %5534 = vmatpush1.bf16.msra.mxu0 %v9816_v33  ;;  %5575 = vmatpush1.bf16.msra.mxu1 %v9818_v34  ;;  %v8310_v33 = vld [vmem:[#allocation7 + $0x48] ss:$16 sps:$4 sm:$0xff]   ;;  %v8315_v34 = vld [vmem:[#allocation7 + $0x64] ss:$16 sps:$4 sm:$0xff]  }
 0x93e   :  { %5535 = vmatprep.subr.bf16.mxu0 %v9824_v35  ;;  %5576 = vmatprep.subr.bf16.mxu1 %v9826_v36  ;;  %v8318_v35 = vld [vmem:[#allocation7 + $0x6c] ss:$16 sps:$4 sm:$0xff]   ;;  %v8313_v36 = vld [vmem:[#allocation7 + $0x60] ss:$16 sps:$4 sm:$0xff]  }
 0x941   :  { %5536 = vmatpush1.bf16.msra.mxu0 %v9828_v37  ;;  %5577 = vmatpush1.bf16.msra.mxu1 %v9830_v38  ;;  %v8316_v37 = vld [vmem:[#allocation7 + $0x68] ss:$16 sps:$4 sm:$0xff]   ;;  %v8321_v38 = vld [vmem:[#allocation7 + $0x84] ss:$16 sps:$4 sm:$0xff]  }
 0x942   :  { %5537 = vmatprep.subr.bf16.mxu0 %v9836_v39  ;;  %5578 = vmatprep.subr.bf16.mxu1 %v9838_v40  ;;  %v8324_v39 = vld [vmem:[#allocation7 + $0x8c] ss:$16 sps:$4 sm:$0xff]   ;;  %v8319_v40 = vld [vmem:[#allocation7 + $0x80] ss:$16 sps:$4 sm:$0xff]  }
 0x945   :  { %5538 = vmatpush1.bf16.msra.mxu0 %v9840_v41  ;;  %5579 = vmatpush1.bf16.msra.mxu1 %v9842_v42  ;;  %v8322_v41 = vld [vmem:[#allocation7 + $0x88] ss:$16 sps:$4 sm:$0xff]   ;;  %v8327_v42 = vld [vmem:[#allocation7 + $0xa4] ss:$16 sps:$4 sm:$0xff]  }
 0x946   :  { %5539 = vmatprep.subr.bf16.mxu0 %v9846_v43  ;;  %5580 = vmatprep.subr.bf16.mxu1 %v9854_v48  ;;  %v8330_v43 = vld [vmem:[#allocation7 + $0xac] ss:$16 sps:$4 sm:$0xff]   ;;  %v8333_v48 = vld [vmem:[#allocation7 + $0xc4] ss:$16 sps:$4 sm:$0xff]  }
 0x949   :  { %5540 = vmatpush1.bf16.msra.mxu0 %v9850_v49  ;;  %5581 = vmatpush1.bf16.msra.mxu1 %v9852_v9  ;;  %v8325_v49 = vld [vmem:[#allocation7 + $0xa0] ss:$16 sps:$4 sm:$0xff]   ;;  %v8328_v9 = vld [vmem:[#allocation7 + $0xa8] ss:$16 sps:$4 sm:$0xff]  }
 0x94a   :  { %5541 = vmatprep.subr.bf16.mxu0 %v9857_v4  ;;  %5582 = vmatprep.subr.bf16.mxu1 %v9859_v60  ;;  %v8336_v4 = vld [vmem:[#allocation7 + $0xcc] ss:$16 sps:$4 sm:$0xff]   ;;  %v8331_v60 = vld [vmem:[#allocation7 + $0xc0] ss:$16 sps:$4 sm:$0xff]  }
 0x94d   :  { %5542 = vmatpush1.bf16.msra.mxu0 %v9864_v45  ;;  %5583 = vmatpush1.bf16.msra.mxu1 %v9866_v14  ;;  %v8334_v45 = vld [vmem:[#allocation7 + $0xc8] ss:$16 sps:$4 sm:$0xff]   ;;  %v8339_v14 = vld [vmem:[#allocation7 + $0xe4] ss:$16 sps:$4 sm:$0xff]  }
 0x94e   :  { %5543 = vmatprep.subr.bf16.mxu0 %v9870_v51  ;;  %5584 = vmatprep.subr.bf16.mxu1 %v9872_v53  ;;  %v8342_v51 = vld [vmem:[#allocation7 + $0xec] ss:$16 sps:$4 sm:$0xff]   ;;  %v8337_v53 = vld [vmem:[#allocation7 + $0xe0] ss:$16 sps:$4 sm:$0xff]  }
 0x951   :  { %5544 = vmatpush1.bf16.msra.mxu0 %v9876_v7  ;;  %5585 = vmatpush1.bf16.msra.mxu1 %v9878_v54  ;;  %v8340_v7 = vld [vmem:[#allocation7 + $0xe8] ss:$16 sps:$4 sm:$0xff]   ;;  %v5618_v54 = vsel %vm127_vm1, %v9782_v12, %v11228_v6  ;;  %v10161_v6 = vld [vmem:[#allocation9] ss:$16 sps:$4 sm:$0xff]  }
 0x952   :  { %5834 = vmatprep.subr.bf16.mxu0 %v10091_v57  ;;  %5875 = vmatprep.subr.bf16.mxu1 %v10093_v62  ;;  %v5619_v5 = vpack.c.bf16 %v5618_v54, %v5618_v54 }
 0x954   :  { %5562 = vmatmul.mubr.bf16.vlgmr.msra.gmra.mrb[84].mxu0 %v5314_v26  ;;  %5603 = vmatmul.mubr.bf16.vlgmr.msra.gmra.mrb[84].mxu1 %v5314_v26  ;;  %v10211_v26 = vld [vmem:[#allocation9 + $0x80] ss:$16 sps:$4 sm:$0xff]  }
 0x955   :  { %5835 = vmatpush1.bf16.msra.mxu0 %v10101_v15  ;;  %5876 = vmatpush1.bf16.msra.mxu1 %v10103_v17  ;;  %11233 = vst [vmem:[#allocation17_spill] sm:$0xff] %v10211_v26 }
 0x956   :  { %5836 = vmatprep.subr.bf16.mxu0 %v10107_v27  ;;  %5877 = vmatprep.subr.bf16.mxu1 %v10109_v28 }
 0x957   :  { %5866 = vmatprep.mubr.bf16.mxu0 %v11166_v47  ;;  %5907 = vmatprep.mubr.bf16.mxu1 %v11166_v47 }
 0x959   :  { %5837 = vmatpush1.bf16.msra.mxu0 %v10113_v10  ;;  %5878 = vmatpush1.bf16.msra.mxu1 %v10115_v29 }
 0x95a   :  { %5838 = vmatprep.subr.bf16.mxu0 %v10119_v30  ;;  %5879 = vmatprep.subr.bf16.mxu1 %v10121_v31 }
 0x95d   :  { %5839 = vmatpush1.bf16.msra.mxu0 %v8307_v32  ;;  %5880 = vmatpush1.bf16.msra.mxu1 %v8310_v33 }
 0x95e   :  { %5840 = vmatprep.subr.bf16.mxu0 %v8315_v34  ;;  %5881 = vmatprep.subr.bf16.mxu1 %v8318_v35 }
 0x961   :  { %5841 = vmatpush1.bf16.msra.mxu0 %v8313_v36  ;;  %5882 = vmatpush1.bf16.msra.mxu1 %v8316_v37 }
 0x962   :  { %5842 = vmatprep.subr.bf16.mxu0 %v8321_v38  ;;  %5883 = vmatprep.subr.bf16.mxu1 %v8324_v39 }
 0x965   :  { %5843 = vmatpush1.bf16.msra.mxu0 %v8319_v40  ;;  %5884 = vmatpush1.bf16.msra.mxu1 %v8322_v41 }
 0x966   :  { %5844 = vmatprep.subr.bf16.mxu0 %v8327_v42  ;;  %5885 = vmatprep.subr.bf16.mxu1 %v8330_v43 }
 0x969   :  { %5845 = vmatpush1.bf16.msra.mxu0 %v8325_v49  ;;  %5886 = vmatpush1.bf16.msra.mxu1 %v8328_v9 }
 0x96a   :  { %5846 = vmatprep.subr.bf16.mxu0 %v8333_v48  ;;  %5887 = vmatprep.subr.bf16.mxu1 %v8336_v4 }
 0x96d   :  { %5847 = vmatpush1.bf16.msra.mxu0 %v8331_v60  ;;  %5888 = vmatpush1.bf16.msra.mxu1 %v8334_v45 }
 0x96e   :  { %5848 = vmatprep.subr.bf16.mxu0 %v8339_v14  ;;  %5889 = vmatprep.subr.bf16.mxu1 %v8342_v51 }
 0x971   :  { %5849 = vmatpush1.bf16.msra.mxu0 %v8337_v53  ;;  %5890 = vmatpush1.bf16.msra.mxu1 %v8340_v7 }
 0x972   :  { %6139 = vmatprep.subr.bf16.mxu0 %v10091_v57  ;;  %6180 = vmatprep.subr.bf16.mxu1 %v10093_v62  ;;  %v10195_v57 = vld [vmem:[#allocation9 + $0x6c] ss:$16 sps:$4 sm:$0xff]   ;;  %v10199_v62 = vld [vmem:[#allocation9 + $0x60] ss:$16 sps:$4 sm:$0xff]  }
 0x974   :  { %5867 = vmatmul.mubr.bf16.vlgmr.msra.gmra.mrb[88].mxu0 %v5619_v5  ;;  %5908 = vmatmul.mubr.bf16.vlgmr.msra.gmra.mrb[88].mxu1 %v5619_v5 }
 0x975   :  { %6140 = vmatpush1.bf16.msra.mxu0 %v10101_v15  ;;  %6181 = vmatpush1.bf16.msra.mxu1 %v10103_v17  ;;  %v10205_v15 = vld [vmem:[#allocation9 + $0x84] ss:$16 sps:$4 sm:$0xff]   ;;  %v10207_v17 = vld [vmem:[#allocation9 + $0x8c] ss:$16 sps:$4 sm:$0xff]  }
 0x976   :  { %6141 = vmatprep.subr.bf16.mxu0 %v10107_v27  ;;  %6182 = vmatprep.subr.bf16.mxu1 %v10109_v28  ;;  %11232 = vst [vmem:[#allocation16_spill] sm:$0xff] %v10207_v17  ;;  %v10213_v27 = vld [vmem:[#allocation9 + $0x88] ss:$16 sps:$4 sm:$0xff]   ;;  %v10217_v28 = vld [vmem:[#allocation9 + $0xa4] ss:$16 sps:$4 sm:$0xff]  }
 0x977   :  { %6171 = vmatprep.mubr.bf16.mxu0 %v11166_v47  ;;  %6212 = vmatprep.mubr.bf16.mxu1 %v11166_v47  ;;  %11234 = vst [vmem:[#allocation18_spill] sm:$0xff] %v10213_v27  ;;  %11235 = vst [vmem:[#allocation19_spill] sm:$0xff] %v10217_v28 }
 0x979   :  { %6142 = vmatpush1.bf16.msra.mxu0 %v10113_v10  ;;  %6183 = vmatpush1.bf16.msra.mxu1 %v10115_v29  ;;  %v10219_v10 = vld [vmem:[#allocation9 + $0xac] ss:$16 sps:$4 sm:$0xff]   ;;  %v10223_v29 = vld [vmem:[#allocation9 + $0xa0] ss:$16 sps:$4 sm:$0xff]  }
 0x97a   :  { %6143 = vmatprep.subr.bf16.mxu0 %v10119_v30  ;;  %6184 = vmatprep.subr.bf16.mxu1 %v10121_v31  ;;  %11236 = vst [vmem:[#allocation20_spill] sm:$0xff] %v10219_v10  ;;  %11237 = vst [vmem:[#allocation32_spill] sm:$0xff] %v10223_v29  ;;  %v10225_v30 = vld [vmem:[#allocation9 + $0xa8] ss:$16 sps:$4 sm:$0xff]   ;;  %v10229_v31 = vld [vmem:[#allocation9 + $0xc4] ss:$16 sps:$4 sm:$0xff]  }
 0x97b   :  { %11238 = vst [vmem:[#allocation26_spill] sm:$0xff] %v10225_v30  ;;  %11239 = vst [vmem:[#allocation28_spill] sm:$0xff] %v10229_v31 }
 0x97d   :  { %6144 = vmatpush1.bf16.msra.mxu0 %v8307_v32  ;;  %6185 = vmatpush1.bf16.msra.mxu1 %v8310_v33  ;;  %v10231_v32 = vld [vmem:[#allocation9 + $0xcc] ss:$16 sps:$4 sm:$0xff]  }
 0x97e   :  { %6145 = vmatprep.subr.bf16.mxu0 %v8315_v34  ;;  %6186 = vmatprep.subr.bf16.mxu1 %v8318_v35  ;;  %11240 = vst [vmem:[#allocation29_spill] sm:$0xff] %v10231_v32 }
 0x981   :  { %6146 = vmatpush1.bf16.msra.mxu0 %v8313_v36  ;;  %6187 = vmatpush1.bf16.msra.mxu1 %v8316_v37 }
 0x982   :  { %6147 = vmatprep.subr.bf16.mxu0 %v8321_v38  ;;  %6188 = vmatprep.subr.bf16.mxu1 %v8324_v39  ;;  %v10243_v39 = vld [vmem:[#allocation9 + $0xc0] ss:$16 sps:$4 sm:$0xff]  }
 0x983   :  { %11241 = vst [vmem:[#allocation30_spill] sm:$0xff] %v10243_v39 }
 0x985   :  { %6148 = vmatpush1.bf16.msra.mxu0 %v8319_v40  ;;  %6189 = vmatpush1.bf16.msra.mxu1 %v8322_v41  ;;  %v10245_v40 = vld [vmem:[#allocation9 + $0xc8] ss:$16 sps:$4 sm:$0xff]  }
 0x986   :  { %6149 = vmatprep.subr.bf16.mxu0 %v8327_v42  ;;  %6190 = vmatprep.subr.bf16.mxu1 %v8330_v43  ;;  %11242 = vst [vmem:[#allocation27_spill] sm:$0xff] %v10245_v40  ;;  %v10249_v43 = vld [vmem:[#allocation9 + $0xe4] ss:$16 sps:$4 sm:$0xff]  }
 0x987   :  { %v10145_v12 = vpop.f32.mrb[64].mxu0  ;;  %v10147_v18 = vpop.f32.mrb[64].mxu1  ;;  %11243 = vst [vmem:[#allocation31_spill] sm:$0xff] %v10249_v43 }
 0x988   :  { %v10149_v44 = vpop.f32.mrb[65].mxu0  ;;  %v10151_v22 = vpop.f32.mrb[65].mxu1 }
 0x989   :  { %6150 = vmatpush1.bf16.msra.mxu0 %v8325_v49  ;;  %6191 = vmatpush1.bf16.msra.mxu1 %v8328_v9  ;;  %v4043_v46 = vpop.f32.mrb[66].mxu0  ;;  %v4084_v52 = vpop.f32.mrb[66].mxu1  ;;  %v10251_v49 = vld [vmem:[#allocation9 + $0xec] ss:$16 sps:$4 sm:$0xff]   ;;  %v10255_v9 = vld [vmem:[#allocation9 + $0xe0] ss:$16 sps:$4 sm:$0xff]  }
 0x98a   :  { %v4044_v50 = vpop.f32.mrb[67].mxu0  ;;  %v4085_v1 = vpop.f32.mrb[67].mxu1  ;;  %6151 = vmatprep.subr.bf16.mxu0 %v8333_v48  ;;  %6192 = vmatprep.subr.bf16.mxu1 %v8336_v4  ;;  %11244 = vst [vmem:[#allocation33_spill] sm:$0xff] %v10251_v49  ;;  %11245 = vst [vmem:[#allocation38_spill] sm:$0xff] %v10255_v9  ;;  %v10257_v48 = vld [vmem:[#allocation9 + $0xe8] ss:$16 sps:$4 sm:$0xff]  }
 0x98b   :  { %11246 = vst [vmem:[#allocation36_spill] sm:$0xff] %v10257_v48 }
 0x98d   :  { %6152 = vmatpush1.bf16.msra.mxu0 %v8331_v60  ;;  %6193 = vmatpush1.bf16.msra.mxu1 %v8334_v45 }
 0x98e   :  { %6153 = vmatprep.subr.bf16.mxu0 %v8339_v14  ;;  %6194 = vmatprep.subr.bf16.mxu1 %v8342_v51 }
 0x991   :  { %6154 = vmatpush1.bf16.msra.mxu0 %v8337_v53  ;;  %6195 = vmatpush1.bf16.msra.mxu1 %v8340_v7 }
 0x992   :  { %6430 = vmatprep.subr.bf16.mxu0 %v10153_v13  ;;  %6471 = vmatprep.subr.bf16.mxu1 %v10155_v11 }
 0x994   :  { %6172 = vmatmul.mubr.bf16.vlgmr.msra.gmra.mrb[92].mxu0 %v5924_v61  ;;  %6213 = vmatmul.mubr.bf16.vlgmr.msra.gmra.mrb[92].mxu1 %v5924_v61 }
 0x995   :  { %6431 = vmatpush1.bf16.msra.mxu0 %v10161_v6  ;;  %6472 = vmatpush1.bf16.msra.mxu1 %v10163_v19 }
 0x996   :  { %6432 = vmatprep.subr.bf16.mxu0 %v10167_v3  ;;  %6473 = vmatprep.subr.bf16.mxu1 %v10169_v55 }
 0x997   :  { %6462 = vmatprep.mubr.bf16.mxu0 %v11166_v47  ;;  %6503 = vmatprep.mubr.bf16.mxu1 %v11166_v47 }
 0x999   :  { %6433 = vmatpush1.bf16.msra.mxu0 %v10173_v63  ;;  %6474 = vmatpush1.bf16.msra.mxu1 %v10175_v2 }
 0x99a   :  { %6434 = vmatprep.subr.bf16.mxu0 %v10179_v24  ;;  %6475 = vmatprep.subr.bf16.mxu1 %v10181_v25 }
 0x99d   :  { %6435 = vmatpush1.bf16.msra.mxu0 %v10187_v0  ;;  %6476 = vmatpush1.bf16.msra.mxu1 %v10189_v23 }
 0x99e   :  { %6436 = vmatprep.subr.bf16.mxu0 %v10193_v21  ;;  %6477 = vmatprep.subr.bf16.mxu1 %v10195_v57 }
 0x9a1   :  { %6437 = vmatpush1.bf16.msra.mxu0 %v10199_v62  ;;  %6478 = vmatpush1.bf16.msra.mxu1 %v10201_v16 }
 0x9a2   :  { %6438 = vmatprep.subr.bf16.mxu0 %v10205_v15  ;;  %6479 = vmatprep.subr.bf16.mxu1 %v10207_v17 }
 0x9a5   :  { %6439 = vmatpush1.bf16.msra.mxu0 %v10211_v26  ;;  %6480 = vmatpush1.bf16.msra.mxu1 %v10213_v27 }
 0x9a6   :  { %6440 = vmatprep.subr.bf16.mxu0 %v10217_v28  ;;  %6481 = vmatprep.subr.bf16.mxu1 %v10219_v10 }
 0x9a7   :  { %v10233_v33 = vpop.f32.mrb[68].mxu0  ;;  %v10235_v34 = vpop.f32.mrb[68].mxu1 }
 0x9a8   :  { %v10237_v35 = vpop.f32.mrb[69].mxu0  ;;  %v10239_v36 = vpop.f32.mrb[69].mxu1 }
 0x9a9   :  { %v4347_v37 = vpop.f32.mrb[70].mxu0  ;;  %v4388_v38 = vpop.f32.mrb[70].mxu1  ;;  %6441 = vmatpush1.bf16.msra.mxu0 %v10223_v29  ;;  %6482 = vmatpush1.bf16.msra.mxu1 %v10225_v30 }
 0x9aa   :  { %v4348_v41 = vpop.f32.mrb[71].mxu0  ;;  %v4389_v42 = vpop.f32.mrb[71].mxu1  ;;  %6442 = vmatprep.subr.bf16.mxu0 %v10229_v31  ;;  %6483 = vmatprep.subr.bf16.mxu1 %v10231_v32  ;;  %v4737_v38 = vld [vmem:[%s10995_s6] sm:$0xf] }
 0x9ab   :  { %v5042_v41 = vld [vmem:[%s10995_s6] sm:$0xf] }
 0x9ac   :  { %v11247_v42 = vld [vmem:[#allocation24_spill] sm:$0xff] }
 0x9ad   :  { %6443 = vmatpush1.bf16.msra.mxu0 %v10243_v39  ;;  %6484 = vmatpush1.bf16.msra.mxu1 %v10245_v40 }
 0x9ae   :  { %6444 = vmatprep.subr.bf16.mxu0 %v10249_v43  ;;  %6485 = vmatprep.subr.bf16.mxu1 %v10251_v49 }
 0x9b1   :  { %6445 = vmatpush1.bf16.msra.mxu0 %v10255_v9  ;;  %6486 = vmatpush1.bf16.msra.mxu1 %v10257_v48 }
 0x9b2   :  { %6554 = vmatprep.subr.bf16.mxu0 %v10153_v13  ;;  %6595 = vmatprep.subr.bf16.mxu1 %v10155_v11 }
 0x9b4   :  { %6463 = vmatmul.mubr.bf16.vlgmr.msra.gmra.mrb[96].mxu0 %v11166_v47  ;;  %6504 = vmatmul.mubr.bf16.vlgmr.msra.gmra.mrb[96].mxu1 %v11166_v47 }
 0x9b5   :  { %6555 = vmatpush1.bf16.msra.mxu0 %v10161_v6  ;;  %6596 = vmatpush1.bf16.msra.mxu1 %v10163_v19 }
 0x9b6   :  { %6556 = vmatprep.subr.bf16.mxu0 %v10167_v3  ;;  %6597 = vmatprep.subr.bf16.mxu1 %v10169_v55 }
 0x9b7   :  { %6586 = vmatprep.mubr.bf16.mxu0 %v11166_v47  ;;  %6627 = vmatprep.mubr.bf16.mxu1 %v11166_v47 }
 0x9b9   :  { %6557 = vmatpush1.bf16.msra.mxu0 %v10173_v63  ;;  %6598 = vmatpush1.bf16.msra.mxu1 %v10175_v2 }
 0x9ba   :  { %6558 = vmatprep.subr.bf16.mxu0 %v10179_v24  ;;  %6599 = vmatprep.subr.bf16.mxu1 %v10181_v25 }
 0x9bd   :  { %6559 = vmatpush1.bf16.msra.mxu0 %v10187_v0  ;;  %6600 = vmatpush1.bf16.msra.mxu1 %v10189_v23 }
 0x9be   :  { %6560 = vmatprep.subr.bf16.mxu0 %v10193_v21  ;;  %6601 = vmatprep.subr.bf16.mxu1 %v10195_v57 }
 0x9c1   :  { %6561 = vmatpush1.bf16.msra.mxu0 %v10199_v62  ;;  %6602 = vmatpush1.bf16.msra.mxu1 %v10201_v16 }
 0x9c2   :  { %6562 = vmatprep.subr.bf16.mxu0 %v10205_v15  ;;  %6603 = vmatprep.subr.bf16.mxu1 %v10207_v17 }
 0x9c5   :  { %6563 = vmatpush1.bf16.msra.mxu0 %v10211_v26  ;;  %6604 = vmatpush1.bf16.msra.mxu1 %v10213_v27 }
 0x9c6   :  { %6564 = vmatprep.subr.bf16.mxu0 %v10217_v28  ;;  %6605 = vmatprep.subr.bf16.mxu1 %v10219_v10 }
 0x9c7   :  { %v10289_v4 = vpop.f32.mrb[72].mxu0  ;;  %v10291_v60 = vpop.f32.mrb[72].mxu1 }
 0x9c8   :  { %v10293_v45 = vpop.f32.mrb[73].mxu0  ;;  %v10295_v14 = vpop.f32.mrb[73].mxu1 }
 0x9c9   :  { %v4652_v51 = vpop.f32.mrb[74].mxu0  ;;  %v4693_v53 = vpop.f32.mrb[74].mxu1  ;;  %6565 = vmatpush1.bf16.msra.mxu0 %v10223_v29  ;;  %6606 = vmatpush1.bf16.msra.mxu1 %v10225_v30 }
 0x9ca   :  { %v4653_v7 = vpop.f32.mrb[75].mxu0  ;;  %v4694_v54 = vpop.f32.mrb[75].mxu1  ;;  %6566 = vmatprep.subr.bf16.mxu0 %v10229_v31  ;;  %6607 = vmatprep.subr.bf16.mxu1 %v10231_v32  ;;  %v4742_v51 = vrot.slane %v4737_v38, %v11247_v42  ;;  %v11248_v53 = vld [vmem:[#allocation22_spill] sm:$0xff] }
 0x9cb   :  { %v4750_v7 = vrot.slane %v4737_v38, %v11248_v53  ;;  %v5047_v54 = vrot.slane %v5042_v41, %v11247_v42 }
 0x9cd   :  { %6567 = vmatpush1.bf16.msra.mxu0 %v10243_v39  ;;  %6608 = vmatpush1.bf16.msra.mxu1 %v10245_v40 }
 0x9ce   :  { %6568 = vmatprep.subr.bf16.mxu0 %v10249_v43  ;;  %6609 = vmatprep.subr.bf16.mxu1 %v10251_v49 }
 0x9d1   :  { %6569 = vmatpush1.bf16.msra.mxu0 %v10255_v9  ;;  %6610 = vmatpush1.bf16.msra.mxu1 %v10257_v48 }
 0x9d2   :  { %6678 = vmatprep.subr.bf16.mxu0 %v10153_v13  ;;  %6719 = vmatprep.subr.bf16.mxu1 %v10155_v11  ;;  %v5055_v11 = vrot.slane %v5042_v41, %v11248_v53 }
 0x9e7   :  { %v4953_v5 = vpop.f32.mrb[76].mxu0  ;;  %v4994_v46 = vpop.f32.mrb[76].mxu1 }
 0x9e8   :  { %v4955_v52 = vpop.f32.mrb[77].mxu0  ;;  %v4996_v50 = vpop.f32.mrb[77].mxu1  ;;  %v4954_v43 = vadd.f32 %v4953_v5, %v4742_v51  ;;  %v10323_v40 = vadd.f32 %v4994_v46, %v4750_v7 }
 0x9e9   :  { %v4957_v1 = vpop.f32.mrb[78].mxu0  ;;  %v4998_v56 = vpop.f32.mrb[78].mxu1 }
 0x9ea   :  { %v4958_v61 = vpop.f32.mrb[79].mxu0  ;;  %v4999_v37 = vpop.f32.mrb[79].mxu1  ;;  %v11249_v1 = vld [vmem:[#allocation25_spill] sm:$0xff]  ;;  %11251 = vst [vmem:[#allocation34_spill] sm:$0xff] %v10323_v40 }
 0x9eb   :  { %v4746_v56 = vrot.slane %v4737_v38, %v11249_v1  ;;  %v11250_v61 = vld [vmem:[#allocation23_spill] sm:$0xff]  ;;  %v5051_v13 = vrot.slane %v5042_v41, %v11249_v1 }
 0x9ec   :  { %v4754_v37 = vrot.slane %v4737_v38, %v11250_v61  ;;  %v5059_v48 = vrot.slane %v5042_v41, %v11250_v61 }
 0x9ed   :  { %v10327_v29 = vadd.f32 %v4955_v52, %v4746_v56 }
 0x9ee   :  { %v10329_v10 = vadd.f32 %v4996_v50, %v4754_v37 }
 0x9ef   :  { %11253 = vst [vmem:[#allocation35_spill] sm:$0xff] %v10327_v29 }
 0x9f0   :  { %11254 = vst [vmem:[#allocation45_spill] sm:$0xff] %v10329_v10 }
 0xa07   :  { %v5258_v9 = vpop.f32.mrb[80].mxu0  ;;  %v5299_v49 = vpop.f32.mrb[80].mxu1 }
 0xa08   :  { %v5259_v39 = vadd.f32 %v5258_v9, %v5047_v54  ;;  %v10325_v32 = vadd.f32 %v5299_v49, %v5055_v11  ;;  %v5260_v31 = vpop.f32.mrb[81].mxu0  ;;  %v5301_v30 = vpop.f32.mrb[81].mxu1 }
 0xa09   :  { %v10331_v28 = vadd.f32 %v5260_v31, %v5051_v13  ;;  %v10333_v38 = vadd.f32 %v5301_v30, %v5059_v48  ;;  %v5262_v27 = vpop.f32.mrb[82].mxu0  ;;  %v5303_v41 = vpop.f32.mrb[82].mxu1  ;;  %v4432_v31 = vld [vmem:[%s10995_s6] sm:$0xf] }
 0xa0a   :  { %11252 = vst [vmem:[#allocation37_spill] sm:$0xff] %v10325_v32  ;;  %v5263_v26 = vpop.f32.mrb[83].mxu0  ;;  %v5304_v17 = vpop.f32.mrb[83].mxu1  ;;  %v10337_v5 = vsel %vm127_vm1, %v4954_v43, %v5259_v39  ;;  %v10345_v49 = vsel %vm127_vm1, %v5259_v39, %v4954_v43  ;;  %v5347_v39 = vld [vmem:[%s10995_s6] sm:$0xf]  ;;  %v4437_v43 = vrot.slane %v4432_v31, %v11247_v42  ;;  %v4445_v9 = vrot.slane %v4432_v31, %v11248_v53 }
 0xa0b   :  { %11255 = vst [vmem:[#allocation40_spill] sm:$0xff] %v10331_v28  ;;  %11256 = vst [vmem:[#allocation39_spill] sm:$0xff] %v10333_v38  ;;  %v5352_v48 = vrot.slane %v5347_v39, %v11247_v42  ;;  %v5360_v46 = vrot.slane %v5347_v39, %v11248_v53  ;;  %v4441_v52 = vrot.slane %v4432_v31, %v11249_v1 }
 0xa0c   :  { %11257 = vst [vmem:[#allocation43_spill] sm:$0xff] %v10337_v5  ;;  %11258 = vst [vmem:[#allocation41_spill] sm:$0xff] %v10345_v49  ;;  %v4449_v50 = vrot.slane %v4432_v31, %v11250_v61  ;;  %v5356_v51 = vrot.slane %v5347_v39, %v11249_v1  ;;  %v5364_v7 = vrot.slane %v5347_v39, %v11250_v61 }
 0xa0d   :  { %v4649_v37 = vadd.f32 %v10289_v4, %v4437_v43  ;;  %v10383_v41 = vadd.f32 %v10291_v60, %v4445_v9  ;;  %v10388_v17 = vadd.f32 %v10293_v45, %v4441_v52  ;;  %v5652_v52 = vld [vmem:[%s10995_s6] sm:$0xf] }
 0xa0e   :  { %v10391_v31 = vadd.f32 %v10295_v14, %v4449_v50 }
 0xa10   :  { %11259 = vst [vmem:[#allocation44_spill] sm:$0xff] %v10391_v31 }
 0xa27   :  { %v5563_v54 = vpop.f32.mrb[84].mxu0  ;;  %v5604_v56 = vpop.f32.mrb[84].mxu1 }
 0xa28   :  { %v5564_v30 = vadd.f32 %v5563_v54, %v5352_v48  ;;  %v10385_v27 = vadd.f32 %v5604_v56, %v5360_v46  ;;  %v5565_v13 = vpop.f32.mrb[85].mxu0  ;;  %v5606_v26 = vpop.f32.mrb[85].mxu1  ;;  %v4127_v46 = vld [vmem:[%s10995_s6] sm:$0xf]  ;;  %v5665_v54 = vrot.slane %v5652_v52, %v11248_v53 }
 0xa29   :  { %v10393_v11 = vadd.f32 %v5565_v13, %v5356_v51  ;;  %v10395_v39 = vadd.f32 %v5606_v26, %v5364_v7  ;;  %v5567_v49 = vpop.f32.mrb[86].mxu0  ;;  %v5608_v4 = vpop.f32.mrb[86].mxu1  ;;  %v4132_v50 = vrot.slane %v4127_v46, %v11247_v42  ;;  %v4140_v51 = vrot.slane %v4127_v46, %v11248_v53 }
 0xa2a   :  { %v5568_v43 = vpop.f32.mrb[87].mxu0  ;;  %v5609_v60 = vpop.f32.mrb[87].mxu1  ;;  %v10399_v9 = vsel %vm127_vm1, %v4649_v37, %v5564_v30  ;;  %v10407_v14 = vsel %vm127_vm1, %v5564_v30, %v4649_v37  ;;  %v5657_v7 = vrot.slane %v5652_v52, %v11247_v42  ;;  %v4136_v56 = vrot.slane %v4127_v46, %v11249_v1 }
 0xa2b   :  { %11260 = vst [vmem:[#allocation42_spill] sm:$0xff] %v10395_v39  ;;  %11261 = vst [vmem:[#allocation52_spill] sm:$0xff] %v10407_v14  ;;  %v4144_v37 = vrot.slane %v4127_v46, %v11250_v61  ;;  %v5661_v4 = vrot.slane %v5652_v52, %v11249_v1  ;;  %v5669_v43 = vrot.slane %v5652_v52, %v11250_v61 }
 0xa2c   :  { %v4344_v30 = vadd.f32 %v10233_v33, %v4132_v50  ;;  %v10445_v49 = vadd.f32 %v10235_v34, %v4140_v51  ;;  %v10450_v38 = vadd.f32 %v10237_v35, %v4136_v56  ;;  %v3823_v51 = vld [vmem:[%s10995_s6] sm:$0xf] }
 0xa2d   :  { %v10453_v46 = vadd.f32 %v10239_v36, %v4144_v37  ;;  %v3836_v56 = vrot.slane %v3823_v51, %v11248_v53 }
 0xa2e   :  { %11262 = vst [vmem:[#allocation47_spill] sm:$0xff] %v10445_v49  ;;  %11264 = vst [vmem:[#allocation50_spill] sm:$0xff] %v10450_v38 }
 0xa2f   :  { %11265 = vst [vmem:[#allocation48_spill] sm:$0xff] %v10453_v46 }
 0xa47   :  { %v5868_v60 = vpop.f32.mrb[88].mxu0  ;;  %v5909_v48 = vpop.f32.mrb[88].mxu1 }
 0xa48   :  { %v5869_v26 = vadd.f32 %v5868_v60, %v5657_v7  ;;  %v10447_v13 = vadd.f32 %v5909_v48, %v5665_v54  ;;  %v5870_v45 = vpop.f32.mrb[89].mxu0  ;;  %v5911_v14 = vpop.f32.mrb[89].mxu1  ;;  %v5957_v7 = vld [vmem:[%s10995_s6] sm:$0xf]  ;;  %v3828_v54 = vrot.slane %v3823_v51, %v11247_v42  ;;  %v3840_v60 = vrot.slane %v3823_v51, %v11250_v61 }
 0xa49   :  { %v10455_v10 = vadd.f32 %v5870_v45, %v5661_v4  ;;  %v10457_v52 = vadd.f32 %v5911_v14, %v5669_v43  ;;  %v5872_v28 = vpop.f32.mrb[90].mxu0  ;;  %v5913_v33 = vpop.f32.mrb[90].mxu1  ;;  %v5962_v37 = vrot.slane %v5957_v7, %v11247_v42  ;;  %v5970_v4 = vrot.slane %v5957_v7, %v11248_v53 }
 0xa4a   :  { %11263 = vst [vmem:[#allocation46_spill] sm:$0xff] %v10447_v13  ;;  %v5873_v50 = vpop.f32.mrb[91].mxu0  ;;  %v5914_v34 = vpop.f32.mrb[91].mxu1  ;;  %v10461_v48 = vsel %vm127_vm1, %v4344_v30, %v5869_v26  ;;  %v10469_v36 = vsel %vm127_vm1, %v5869_v26, %v4344_v30  ;;  %v3832_v43 = vrot.slane %v3823_v51, %v11249_v1  ;;  %v5966_v33 = vrot.slane %v5957_v7, %v11249_v1 }
 0xa4b   :  { %11266 = vst [vmem:[#allocation51_spill] sm:$0xff] %v10457_v52  ;;  %11267 = vst [vmem:[#allocation49_spill] sm:$0xff] %v10469_v36  ;;  %v5974_v50 = vrot.slane %v5957_v7, %v11250_v61  ;;  %v4040_v26 = vadd.f32 %v10145_v12, %v3828_v54  ;;  %v10507_v28 = vadd.f32 %v10147_v18, %v3836_v56 }
 0xa4c   :  { %v10512_v42 = vadd.f32 %v10149_v44, %v3832_v43  ;;  %v10515_v51 = vadd.f32 %v10151_v22, %v3840_v60  ;;  %v11294_v36 = vsel %vm9169_vm3, %v10450_v38, %v10455_v10  ;;  %v11295_v32 = vsel %vm9175_vm4, %v10453_v46, %v10457_v52 }
 0xa4d   :  { %11268 = vst [vmem:[#allocation53_spill] sm:$0xff] %v10507_v28 }
 0xa4e   :  { %11270 = vst [vmem:[#allocation12_spill] sm:$0xff] %v10512_v42  ;;  %11271 = vst [vmem:[#allocation13_spill] sm:$0xff] %v10515_v51 }
 0xa67   :  { %v6173_v34 = vpop.f32.mrb[92].mxu0  ;;  %v6214_v30 = vpop.f32.mrb[92].mxu1 }
 0xa68   :  { %v6174_v14 = vadd.f32 %v6173_v34, %v5962_v37  ;;  %v10509_v45 = vadd.f32 %v6214_v30, %v5970_v4  ;;  %v6175_v35 = vpop.f32.mrb[93].mxu0  ;;  %v6216_v53 = vpop.f32.mrb[93].mxu1 }
 0xa69   :  { %v10517_v1 = vadd.f32 %v6175_v35, %v5966_v33  ;;  %v10519_v61 = vadd.f32 %v6216_v53, %v5974_v50  ;;  %v6177_v7 = vpop.f32.mrb[94].mxu0  ;;  %v6218_v12 = vpop.f32.mrb[94].mxu1 }
 0xa6a   :  { %11269 = vst [vmem:[#allocation21_spill] sm:$0xff] %v10509_v45  ;;  %v6178_v54 = vpop.f32.mrb[95].mxu0  ;;  %v6219_v18 = vpop.f32.mrb[95].mxu1  ;;  %v6234_v30 = vsel %vm127_vm1, %v4040_v26, %v6174_v14  ;;  %v6236_v44 = vsel %vm9165_vm2, %v10507_v28, %v10509_v45  ;;  %v10529_v22 = vsel %vm127_vm1, %v6174_v14, %v4040_v26 }
 0xa6b   :  { %11272 = vst [vmem:[#allocation22_spill] sm:$0xff] %v10517_v1  ;;  %11273 = vst [vmem:[#allocation23_spill] sm:$0xff] %v10519_v61  ;;  %v6235_v56 = vsel %vm9169_vm3, %v10512_v42, %v10517_v1  ;;  %v6237_v37 = vsel %vm9175_vm4, %v10515_v51, %v10519_v61  ;;  %v11293_v51 = vsel %vm9165_vm2, %v10445_v49, %v10447_v13 }
 0xa6c   :  { %11274 = vst [vmem:[#allocation54_spill] sm:$0xff] %v10529_v22 }
 0xa87   :  { %v6464_v26 = vpop.f32.mrb[96].mxu0  ;;  %v6505_v4 = vpop.f32.mrb[96].mxu1 }
 0xa88   :  { %v6512_v43 = vadd.f32 %v6464_v26, %v6234_v30  ;;  %v6514_v60 = vadd.f32 %v6505_v4, %v6236_v44  ;;  %v6466_v33 = vpop.f32.mrb[97].mxu0  ;;  %v6507_v50 = vpop.f32.mrb[97].mxu1 }
 0xa89   :  { %v6513_v34 = vadd.f32 %v6466_v33, %v6235_v56  ;;  %v6515_v53 = vadd.f32 %v6507_v50, %v6237_v37  ;;  %v6468_v7 = vpop.f32.mrb[98].mxu0  ;;  %v6509_v12 = vpop.f32.mrb[98].mxu1 }
 0xa8a   :  { %v8064_v54 = vmul.f32 -1.442695, %v6512_v43  ;;  %v6469_v18 = vpop.f32.mrb[99].mxu0  ;;  %v6510_v35 = vpop.f32.mrb[99].mxu1  ;;  %v11281_v7 = vld [vmem:[#allocation32_spill] sm:$0xff]  ;;  %v11282_v12 = vld [vmem:[#allocation26_spill] sm:$0xff] }
 0xa8b   :  { %v8065_v28 = vmul.f32 -1.442695, %v6513_v34  ;;  %v8066_v8 = vmul.f32 -1.442695, %v6515_v53  ;;  %v11279_v34 = vld [vmem:[#allocation19_spill] sm:$0xff]  ;;  %v11280_v53 = vld [vmem:[#allocation20_spill] sm:$0xff] }
 0xa8c   :  { %8519 = vpow2.f32 %v8064_v54  ;;  %v11283_v54 = vld [vmem:[#allocation28_spill] sm:$0xff]  ;;  %v11284_v18 = vld [vmem:[#allocation29_spill] sm:$0xff] }
 0xa8d   :  { %8521 = vpow2.f32 %v8065_v28 }
 0xa8e   :  { %8523 = vpow2.f32 %v8066_v8  ;;  %v11276_v8 = vld [vmem:[#allocation16_spill] sm:$0xff] }
 0xa8f   :  { %8525 = vtanh.f32 %v6514_v60  ;;  %v11278_v60 = vld [vmem:[#allocation18_spill] sm:$0xff] }
 0xa96   :  { %v8520_v42 = vpop.eup %8519 }
 0xa97   :  { %v8522_v1 = vpop.eup %8521  ;;  %v6519_v14 = vadd.f32 1.0, %v8520_v42 }
 0xa98   :  { %v6525_v30 = vadd.f32 1.0, %v8522_v1  ;;  %v8524_v44 = vpop.eup %8523 }
 0xa99   :  { %8527 = vrcp.f32 %v6519_v14  ;;  %v8526_v56 = vpop.eup %8525  ;;  %v6532_v43 = vadd.f32 1.0, %v8524_v44  ;;  %v11277_v14 = vld [vmem:[#allocation17_spill] sm:$0xff]  ;;  %v11286_v44 = vld [vmem:[#allocation27_spill] sm:$0xff] }
 0xa9a   :  { %8529 = vrcp.f32 %v6525_v30  ;;  %v11285_v30 = vld [vmem:[#allocation30_spill] sm:$0xff] }
 0xa9b   :  { %8531 = vrcp.f32 %v6532_v43  ;;  %v11291_v43 = vld [vmem:[#allocation14_spill] sm:$0xff] }
 0xaa3   :  { %v8528_v37 = vpop.eup %8527 }
 0xaa4   :  { %v8530_v26 = vpop.eup %8529  ;;  %v6536_v4 = vmul.f32 %v8528_v37, %v8526_v56  ;;  %v11287_v56 = vld [vmem:[#allocation31_spill] sm:$0xff]  ;;  %v11288_v37 = vld [vmem:[#allocation33_spill] sm:$0xff] }
 0xaa5   :  { %v6535_v33 = vmul.f32 0.0, %v8530_v26  ;;  %v8532_v28 = vpop.eup %8531  ;;  %v11289_v26 = vld [vmem:[#allocation38_spill] sm:$0xff] }
 0xaa7   :  { %v10551_v35 = vadd.f32 %v6536_v4, %v6535_v33  ;;  %v11290_v4 = vld [vmem:[#allocation36_spill] sm:$0xff]  ;;  %v11292_v33 = vld [vmem:[#allocation15_spill] sm:$0xff] }
 0xaa9   :  { %8533 = vtanh.f32 %v10551_v35 }
 0xab3   :  { %v8534_v50 = vpop.eup %8533 }
 0xab4   :  { %v10554_v42 = vmul.f32 %v8534_v50, %v8532_v28 }
 0xab6   :  { %11275 = vst [vmem:[#allocation55_spill] sm:$0xff] %v10554_v42  ;;  %v6553_v1 = vpack.c.bf16 %v10554_v42, %v10554_v42 }
 0xab8   :  { %6587 = vmatmul.mubr.bf16.vlgmr.msra.gmra.mrb[100].mxu0 %v6553_v1  ;;  %6628 = vmatmul.mubr.bf16.vlgmr.msra.gmra.mrb[100].mxu1 %v6553_v1 }
 0xab9   :  { %6679 = vmatpush1.bf16.msra.mxu0 %v10161_v6  ;;  %6720 = vmatpush1.bf16.msra.mxu1 %v10163_v19 }
 0xaba   :  { %6680 = vmatprep.subr.bf16.mxu0 %v10167_v3  ;;  %6721 = vmatprep.subr.bf16.mxu1 %v10169_v55 }
 0xabb   :  { %6710 = vmatprep.mubr.bf16.mxu0 %v11166_v47  ;;  %6751 = vmatprep.mubr.bf16.mxu1 %v11166_v47 }
 0xabd   :  { %6681 = vmatpush1.bf16.msra.mxu0 %v10173_v63  ;;  %6722 = vmatpush1.bf16.msra.mxu1 %v10175_v2 }
 0xabe   :  { %6682 = vmatprep.subr.bf16.mxu0 %v10179_v24  ;;  %6723 = vmatprep.subr.bf16.mxu1 %v10181_v25 }
 0xac1   :  { %6683 = vmatpush1.bf16.msra.mxu0 %v10187_v0  ;;  %6724 = vmatpush1.bf16.msra.mxu1 %v10189_v23 }
 0xac2   :  { %6684 = vmatprep.subr.bf16.mxu0 %v10193_v21  ;;  %6725 = vmatprep.subr.bf16.mxu1 %v10195_v57 }
 0xac5   :  { %6685 = vmatpush1.bf16.msra.mxu0 %v10199_v62  ;;  %6726 = vmatpush1.bf16.msra.mxu1 %v10201_v16 }
 0xac6   :  { %6686 = vmatprep.subr.bf16.mxu0 %v10205_v15  ;;  %6727 = vmatprep.subr.bf16.mxu1 %v11276_v8 }
 0xac9   :  { %6687 = vmatpush1.bf16.msra.mxu0 %v11277_v14  ;;  %6728 = vmatpush1.bf16.msra.mxu1 %v11278_v60 }
 0xaca   :  { %6688 = vmatprep.subr.bf16.mxu0 %v11279_v34  ;;  %6729 = vmatprep.subr.bf16.mxu1 %v11280_v53 }
 0xacd   :  { %6689 = vmatpush1.bf16.msra.mxu0 %v11281_v7  ;;  %6730 = vmatpush1.bf16.msra.mxu1 %v11282_v12 }
 0xace   :  { %6690 = vmatprep.subr.bf16.mxu0 %v11283_v54  ;;  %6731 = vmatprep.subr.bf16.mxu1 %v11284_v18 }
 0xad1   :  { %6691 = vmatpush1.bf16.msra.mxu0 %v11285_v30  ;;  %6732 = vmatpush1.bf16.msra.mxu1 %v11286_v44 }
 0xad2   :  { %6692 = vmatprep.subr.bf16.mxu0 %v11287_v56  ;;  %6733 = vmatprep.subr.bf16.mxu1 %v11288_v37 }
 0xad5   :  { %6693 = vmatpush1.bf16.msra.mxu0 %v11289_v26  ;;  %6734 = vmatpush1.bf16.msra.mxu1 %v11290_v4 }
 0xad6   :  { %6802 = vmatprep.subr.bf16.mxu0 %v11291_v43  ;;  %6843 = vmatprep.subr.bf16.mxu1 %v11292_v33 }
 0xb8b   :  { %v6588_v28 = vpop.f32.mrb[100].mxu0  ;;  %v6629_v50 = vpop.f32.mrb[100].mxu1 }
 0xb8c   :  { %v6636_v1 = vadd.f32 %v6588_v28, %v10461_v48  ;;  %v6638_v61 = vadd.f32 %v6629_v50, %v11293_v51  ;;  %v6590_v45 = vpop.f32.mrb[101].mxu0  ;;  %v6631_v22 = vpop.f32.mrb[101].mxu1 }
 0xb8d   :  { %v6637_v29 = vadd.f32 %v6590_v45, %v11294_v36  ;;  %v6639_v48 = vadd.f32 %v6631_v22, %v11295_v32  ;;  %v6592_v28 = vpop.f32.mrb[102].mxu0  ;;  %v6633_v40 = vpop.f32.mrb[102].mxu1 }
 0xb8e   :  { %v8067_v5 = vmul.f32 -1.442695, %v6636_v1  ;;  %v6593_v42 = vpop.f32.mrb[103].mxu0  ;;  %v6634_v49 = vpop.f32.mrb[103].mxu1 }
 0xb8f   :  { %v8068_v51 = vmul.f32 -1.442695, %v6637_v29  ;;  %v8069_v50 = vmul.f32 -1.442695, %v6639_v48 }
 0xb90   :  { %8535 = vpow2.f32 %v8067_v5 }
 0xb91   :  { %8537 = vpow2.f32 %v8068_v51 }
 0xb92   :  { %8539 = vpow2.f32 %v8069_v50  ;;  %v11297_v50 = vsel %vm9169_vm3, %v10388_v17, %v10393_v11 }
 0xb93   :  { %8541 = vtanh.f32 %v6638_v61 }
 0xb9a   :  { %v8536_v13 = vpop.eup %8535 }
 0xb9b   :  { %v8538_v39 = vpop.eup %8537  ;;  %v6643_v31 = vadd.f32 1.0, %v8536_v13 }
 0xb9c   :  { %v6649_v36 = vadd.f32 1.0, %v8538_v39  ;;  %v8540_v45 = vpop.eup %8539 }
 0xb9d   :  { %8543 = vrcp.f32 %v6643_v31  ;;  %v8542_v46 = vpop.eup %8541  ;;  %v6656_v1 = vadd.f32 1.0, %v8540_v45  ;;  %v11298_v45 = vld [vmem:[#allocation44_spill] sm:$0xff] }
 0xb9e   :  { %8545 = vrcp.f32 %v6649_v36 }
 0xb9f   :  { %8547 = vrcp.f32 %v6656_v1 }
 0xba7   :  { %v8544_v32 = vpop.eup %8543 }
 0xba8   :  { %v8546_v22 = vpop.eup %8545  ;;  %v6660_v40 = vmul.f32 %v8544_v32, %v8542_v46  ;;  %v11299_v32 = vld [vmem:[#allocation42_spill] sm:$0xff] }
 0xba9   :  { %v6659_v49 = vmul.f32 %v8546_v22, %v10551_v35  ;;  %v8548_v5 = vpop.eup %8547  ;;  %v11296_v35 = vsel %vm9165_vm2, %v10383_v41, %v10385_v27  ;;  %v11300_v22 = vsel %vm9175_vm4, %v11298_v45, %v11299_v32 }
 0xbab   :  { %v10609_v29 = vadd.f32 %v6660_v40, %v6659_v49 }
 0xbad   :  { %8549 = vtanh.f32 %v10609_v29 }
 0xbb7   :  { %v8550_v13 = vpop.eup %8549 }
 0xbb8   :  { %v10612_v42 = vmul.f32 %v8550_v13, %v8548_v5 }
 0xbba   :  { %v6677_v31 = vpack.c.bf16 %v10612_v42, %v10612_v42 }
 0xbbc   :  { %6711 = vmatmul.mubr.bf16.vlgmr.msra.gmra.mrb[104].mxu0 %v6677_v31  ;;  %6752 = vmatmul.mubr.bf16.vlgmr.msra.gmra.mrb[104].mxu1 %v6677_v31 }
 0xbbd   :  { %6803 = vmatpush1.bf16.msra.mxu0 %v10161_v6  ;;  %6844 = vmatpush1.bf16.msra.mxu1 %v10163_v19 }
 0xbbe   :  { %6804 = vmatprep.subr.bf16.mxu0 %v10167_v3  ;;  %6845 = vmatprep.subr.bf16.mxu1 %v10169_v55 }
 0xbbf   :  { %6834 = vmatprep.mubr.bf16.mxu0 %v11166_v47  ;;  %6875 = vmatprep.mubr.bf16.mxu1 %v11166_v47 }
 0xbc1   :  { %6805 = vmatpush1.bf16.msra.mxu0 %v10173_v63  ;;  %6846 = vmatpush1.bf16.msra.mxu1 %v10175_v2 }
 0xbc2   :  { %6806 = vmatprep.subr.bf16.mxu0 %v10179_v24  ;;  %6847 = vmatprep.subr.bf16.mxu1 %v10181_v25 }
 0xbc5   :  { %6807 = vmatpush1.bf16.msra.mxu0 %v10187_v0  ;;  %6848 = vmatpush1.bf16.msra.mxu1 %v10189_v23 }
 0xbc6   :  { %6808 = vmatprep.subr.bf16.mxu0 %v10193_v21  ;;  %6849 = vmatprep.subr.bf16.mxu1 %v10195_v57 }
 0xbc9   :  { %6809 = vmatpush1.bf16.msra.mxu0 %v10199_v62  ;;  %6850 = vmatpush1.bf16.msra.mxu1 %v10201_v16 }
 0xbca   :  { %6810 = vmatprep.subr.bf16.mxu0 %v10205_v15  ;;  %6851 = vmatprep.subr.bf16.mxu1 %v11276_v8 }
 0xbcd   :  { %6811 = vmatpush1.bf16.msra.mxu0 %v11277_v14  ;;  %6852 = vmatpush1.bf16.msra.mxu1 %v11278_v60 }
 0xbce   :  { %6812 = vmatprep.subr.bf16.mxu0 %v11279_v34  ;;  %6853 = vmatprep.subr.bf16.mxu1 %v11280_v53 }
 0xbd1   :  { %6813 = vmatpush1.bf16.msra.mxu0 %v11281_v7  ;;  %6854 = vmatpush1.bf16.msra.mxu1 %v11282_v12 }
 0xbd2   :  { %6814 = vmatprep.subr.bf16.mxu0 %v11283_v54  ;;  %6855 = vmatprep.subr.bf16.mxu1 %v11284_v18 }
 0xbd5   :  { %6815 = vmatpush1.bf16.msra.mxu0 %v11285_v30  ;;  %6856 = vmatpush1.bf16.msra.mxu1 %v11286_v44 }
 0xbd6   :  { %6816 = vmatprep.subr.bf16.mxu0 %v11287_v56  ;;  %6857 = vmatprep.subr.bf16.mxu1 %v11288_v37 }
 0xbd9   :  { %6817 = vmatpush1.bf16.msra.mxu0 %v11289_v26  ;;  %6858 = vmatpush1.bf16.msra.mxu1 %v11290_v4 }
 0xbda   :  { %6918 = vmatprep.subr.bf16.mxu0 %v11291_v43  ;;  %6959 = vmatprep.subr.bf16.mxu1 %v11292_v33 }
 0xc8f   :  { %v6712_v39 = vpop.f32.mrb[104].mxu0  ;;  %v6753_v46 = vpop.f32.mrb[104].mxu1 }
 0xc90   :  { %v6760_v61 = vadd.f32 %v6712_v39, %v10399_v9  ;;  %v6762_v48 = vadd.f32 %v6753_v46, %v11296_v35  ;;  %v6714_v28 = vpop.f32.mrb[105].mxu0  ;;  %v6755_v51 = vpop.f32.mrb[105].mxu1 }
 0xc91   :  { %v6761_v36 = vadd.f32 %v6714_v28, %v11297_v50  ;;  %v6763_v9 = vadd.f32 %v6755_v51, %v11300_v22  ;;  %v6716_v40 = vpop.f32.mrb[106].mxu0  ;;  %v6757_v1 = vpop.f32.mrb[106].mxu1 }
 0xc92   :  { %v8070_v49 = vmul.f32 -1.442695, %v6760_v61  ;;  %v6717_v5 = vpop.f32.mrb[107].mxu0  ;;  %v6758_v13 = vpop.f32.mrb[107].mxu1 }
 0xc93   :  { %v8071_v31 = vmul.f32 -1.442695, %v6761_v36  ;;  %v8072_v39 = vmul.f32 -1.442695, %v6763_v9  ;;  %v11301_v5 = vld [vmem:[#allocation55_spill] sm:$0xff] }
 0xc94   :  { %8551 = vpow2.f32 %v8070_v49 }
 0xc95   :  { %8553 = vpow2.f32 %v8071_v31 }
 0xc96   :  { %8555 = vpow2.f32 %v8072_v39 }
 0xc97   :  { %8557 = vtanh.f32 %v6762_v48  ;;  %v6664_v48 = vadd.f32 %v10612_v42, %v11301_v5 }
 0xc9e   :  { %v8552_v46 = vpop.eup %8551 }
 0xc9f   :  { %v8554_v35 = vpop.eup %8553  ;;  %v6767_v52 = vadd.f32 1.0, %v8552_v46 }
 0xca0   :  { %v6773_v28 = vadd.f32 1.0, %v8554_v35  ;;  %v8556_v50 = vpop.eup %8555 }
 0xca1   :  { %8559 = vrcp.f32 %v6767_v52  ;;  %v8558_v38 = vpop.eup %8557  ;;  %v6780_v61 = vadd.f32 1.0, %v8556_v50 }
 0xca2   :  { %8561 = vrcp.f32 %v6773_v28 }
 0xca3   :  { %8563 = vrcp.f32 %v6780_v61 }
 0xcab   :  { %v8560_v51 = vpop.eup %8559 }
 0xcac   :  { %v8562_v22 = vpop.eup %8561  ;;  %v6784_v40 = vmul.f32 %v8560_v51, %v8558_v38  ;;  %v11310_v38 = vld [vmem:[#allocation39_spill] sm:$0xff] }
 0xcad   :  { %v6783_v1 = vmul.f32 %v8562_v22, %v10609_v29  ;;  %v8564_v9 = vpop.eup %8563 }
 0xcaf   :  { %v10667_v36 = vadd.f32 %v6784_v40, %v6783_v1 }
 0xcb1   :  { %8565 = vtanh.f32 %v10667_v36 }
 0xcbb   :  { %v8566_v49 = vpop.eup %8565 }
 0xcbc   :  { %v6787_v52 = vmul.f32 %v8566_v49, %v8564_v9 }
 0xcbe   :  { %v10672_v13 = vadd.f32 %v6787_v52, %v6664_v48  ;;  %v6801_v31 = vpack.c.bf16 %v6787_v52, %v6787_v52 }
 0xcc0   :  { %6835 = vmatmul.mubr.bf16.vlgmr.msra.gmra.mrb[108].mxu0 %v6801_v31  ;;  %6876 = vmatmul.mubr.bf16.vlgmr.msra.gmra.mrb[108].mxu1 %v6801_v31 }
 0xcc1   :  { %6919 = vmatpush1.bf16.msra.mxu0 %v10161_v6  ;;  %6960 = vmatpush1.bf16.msra.mxu1 %v10163_v19 }
 0xcc2   :  { %6920 = vmatprep.subr.bf16.mxu0 %v10167_v3  ;;  %6961 = vmatprep.subr.bf16.mxu1 %v10169_v55  ;;  %v11302_v3 = vld [vmem:[#allocation43_spill] sm:$0xff] }
 0xcc3   :  { %6950 = vmatprep.mubr.bf16.mxu0 %v11166_v47  ;;  %6991 = vmatprep.mubr.bf16.mxu1 %v11166_v47 }
 0xcc5   :  { %6921 = vmatpush1.bf16.msra.mxu0 %v10173_v63  ;;  %6962 = vmatpush1.bf16.msra.mxu1 %v10175_v2  ;;  %v11303_v63 = vld [vmem:[#allocation34_spill] sm:$0xff]  ;;  %v11304_v2 = vld [vmem:[#allocation37_spill] sm:$0xff] }
 0xcc6   :  { %6922 = vmatprep.subr.bf16.mxu0 %v10179_v24  ;;  %6963 = vmatprep.subr.bf16.mxu1 %v10181_v25  ;;  %v11305_v24 = vsel %vm9165_vm2, %v11303_v63, %v11304_v2 }
 0xcc9   :  { %6923 = vmatpush1.bf16.msra.mxu0 %v10187_v0  ;;  %6964 = vmatpush1.bf16.msra.mxu1 %v10189_v23 }
 0xcca   :  { %6924 = vmatprep.subr.bf16.mxu0 %v10193_v21  ;;  %6965 = vmatprep.subr.bf16.mxu1 %v10195_v57  ;;  %v11306_v21 = vld [vmem:[#allocation35_spill] sm:$0xff]  ;;  %v11307_v57 = vld [vmem:[#allocation40_spill] sm:$0xff] }
 0xccd   :  { %6925 = vmatpush1.bf16.msra.mxu0 %v10199_v62  ;;  %6966 = vmatpush1.bf16.msra.mxu1 %v10201_v16  ;;  %v11308_v62 = vsel %vm9169_vm3, %v11306_v21, %v11307_v57 }
 0xcce   :  { %6926 = vmatprep.subr.bf16.mxu0 %v10205_v15  ;;  %6967 = vmatprep.subr.bf16.mxu1 %v11276_v8  ;;  %v11309_v15 = vld [vmem:[#allocation45_spill] sm:$0xff] }
 0xccf   :  { %v11311_v8 = vsel %vm9175_vm4, %v11309_v15, %v11310_v38 }
 0xcd1   :  { %6927 = vmatpush1.bf16.msra.mxu0 %v11277_v14  ;;  %6968 = vmatpush1.bf16.msra.mxu1 %v11278_v60 }
 0xcd2   :  { %6928 = vmatprep.subr.bf16.mxu0 %v11279_v34  ;;  %6969 = vmatprep.subr.bf16.mxu1 %v11280_v53 }
 0xcd5   :  { %6929 = vmatpush1.bf16.msra.mxu0 %v11281_v7  ;;  %6970 = vmatpush1.bf16.msra.mxu1 %v11282_v12 }
 0xcd6   :  { %6930 = vmatprep.subr.bf16.mxu0 %v11283_v54  ;;  %6971 = vmatprep.subr.bf16.mxu1 %v11284_v18 }
 0xcd9   :  { %6931 = vmatpush1.bf16.msra.mxu0 %v11285_v30  ;;  %6972 = vmatpush1.bf16.msra.mxu1 %v11286_v44 }
 0xcda   :  { %6932 = vmatprep.subr.bf16.mxu0 %v11287_v56  ;;  %6973 = vmatprep.subr.bf16.mxu1 %v11288_v37 }
 0xcdd   :  { %6933 = vmatpush1.bf16.msra.mxu0 %v11289_v26  ;;  %6974 = vmatpush1.bf16.msra.mxu1 %v11290_v4 }
 0xcde   :  { %7034 = vmatprep.subr.bf16.mxu0 %v11291_v43  ;;  %7075 = vmatprep.subr.bf16.mxu1 %v11292_v33 }
 0xd93   :  { %v6836_v6 = vpop.f32.mrb[108].mxu0  ;;  %v6877_v19 = vpop.f32.mrb[108].mxu1 }
 0xd94   :  { %v6884_v55 = vadd.f32 %v6836_v6, %v11302_v3  ;;  %v6886_v25 = vadd.f32 %v6877_v19, %v11305_v24  ;;  %v6838_v0 = vpop.f32.mrb[109].mxu0  ;;  %v6879_v23 = vpop.f32.mrb[109].mxu1  ;;  %v10731_v19 = vld [vmem:[#allocation9] ss:$16 sps:$4 sm:$0xff]   ;;  %v10734_v3 = vld [vmem:[#allocation9 + $0x8] ss:$16 sps:$4 sm:$0xff]  }
 0xd95   :  { %v6885_v16 = vadd.f32 %v6838_v0, %v11308_v62  ;;  %v6887_v14 = vadd.f32 %v6879_v23, %v11311_v8  ;;  %v6840_v60 = vpop.f32.mrb[110].mxu0  ;;  %v6881_v34 = vpop.f32.mrb[110].mxu1  ;;  %v10748_v24 = vld [vmem:[#allocation9 + $0x28] ss:$16 sps:$4 sm:$0xff]   ;;  %v10754_v0 = vld [vmem:[#allocation9 + $0x4c] ss:$16 sps:$4 sm:$0xff]  }
 0xd96   :  { %v8073_v53 = vmul.f32 -1.442695, %v6884_v55  ;;  %v6841_v43 = vpop.f32.mrb[111].mxu0  ;;  %v6882_v33 = vpop.f32.mrb[111].mxu1  ;;  %v10740_v55 = vld [vmem:[#allocation9 + $0x2c] ss:$16 sps:$4 sm:$0xff]  }
 0xd97   :  { %v8074_v29 = vmul.f32 -1.442695, %v6885_v16  ;;  %v8075_v42 = vmul.f32 -1.442695, %v6887_v14  ;;  %v10757_v23 = vld [vmem:[#allocation9 + $0x40] ss:$16 sps:$4 sm:$0xff]  }
 0xd98   :  { %8567 = vpow2.f32 %v8073_v53  ;;  %v10760_v62 = vld [vmem:[#allocation9 + $0x48] ss:$16 sps:$4 sm:$0xff]   ;;  %v10763_v16 = vld [vmem:[#allocation9 + $0x64] ss:$16 sps:$4 sm:$0xff]   ;;  %v10766_v8 = vld [vmem:[#allocation9 + $0x6c] ss:$16 sps:$4 sm:$0xff]  }
 0xd99   :  { %8569 = vpow2.f32 %v8074_v29  ;;  %v10769_v14 = vld [vmem:[#allocation9 + $0x60] ss:$16 sps:$4 sm:$0xff]   ;;  %v10772_v60 = vld [vmem:[#allocation9 + $0x68] ss:$16 sps:$4 sm:$0xff]   ;;  %v10775_v34 = vld [vmem:[#allocation9 + $0x84] ss:$16 sps:$4 sm:$0xff]  }
 0xd9a   :  { %8571 = vpow2.f32 %v8075_v42  ;;  %v10778_v53 = vld [vmem:[#allocation9 + $0x8c] ss:$16 sps:$4 sm:$0xff]   ;;  %v10781_v43 = vld [vmem:[#allocation9 + $0x80] ss:$16 sps:$4 sm:$0xff]   ;;  %v10784_v33 = vld [vmem:[#allocation9 + $0x88] ss:$16 sps:$4 sm:$0xff]  }
 0xd9b   :  { %8573 = vtanh.f32 %v6886_v25  ;;  %v10751_v25 = vld [vmem:[#allocation9 + $0x44] ss:$16 sps:$4 sm:$0xff]   ;;  %v10790_v42 = vld [vmem:[#allocation9 + $0xac] ss:$16 sps:$4 sm:$0xff]  }
 0xd9c   :  { %v10787_v29 = vld [vmem:[#allocation9 + $0xa4] ss:$16 sps:$4 sm:$0xff]  }
 0xda2   :  { %v8568_v39 = vpop.eup %8567 }
 0xda3   :  { %v8570_v46 = vpop.eup %8569  ;;  %v6891_v35 = vadd.f32 1.0, %v8568_v39  ;;  %v10803_v39 = vld [vmem:[#allocation9 + $0x4] ss:$16 sps:$4 sm:$0xff]  }
 0xda4   :  { %v6897_v28 = vadd.f32 1.0, %v8570_v46  ;;  %v8572_v50 = vpop.eup %8571 }
 0xda5   :  { %8575 = vrcp.f32 %v6891_v35  ;;  %v8574_v51 = vpop.eup %8573  ;;  %v6904_v1 = vadd.f32 1.0, %v8572_v50  ;;  %v11315_v35 = vsel %vm9175_vm4, %v11310_v38, %v11309_v15 }
 0xda6   :  { %8577 = vrcp.f32 %v6897_v28 }
 0xda7   :  { %8579 = vrcp.f32 %v6904_v1 }
 0xdaf   :  { %v8576_v22 = vpop.eup %8575 }
 0xdb0   :  { %v8578_v40 = vpop.eup %8577  ;;  %v6908_v61 = vmul.f32 %v8576_v22, %v8574_v51 }
 0xdb1   :  { %v6907_v9 = vmul.f32 %v8578_v40, %v10667_v36  ;;  %v8580_v5 = vpop.eup %8579  ;;  %v10737_v36 = vld [vmem:[#allocation9 + $0x24] ss:$16 sps:$4 sm:$0xff]  }
 0xdb3   :  { %v10725_v49 = vadd.f32 %v6908_v61, %v6907_v9 }
 0xdb5   :  { %8581 = vtanh.f32 %v10725_v49 }
 0xdbf   :  { %v8582_v48 = vpop.eup %8581 }
 0xdc0   :  { %v6911_v52 = vmul.f32 %v8582_v48, %v8580_v5 }
 0xdc2   :  { %v6917_v31 = vpack.c.bf16 %v6911_v52, %v6911_v52  ;;  %v10729_v6 = vadd.f32 %v6911_v52, %v10672_v13  ;;  %v10745_v13 = vld [vmem:[#allocation9 + $0x20] ss:$16 sps:$4 sm:$0xff]  }
 0xdc4   :  { %6951 = vmatmul.mubr.bf16.vlgmr.msra.gmra.mrb[112].mxu0 %v6917_v31  ;;  %6992 = vmatmul.mubr.bf16.vlgmr.msra.gmra.mrb[112].mxu1 %v6917_v31 }
 0xdc5   :  { %7035 = vmatpush1.bf16.msra.mxu0 %v10731_v19  ;;  %7076 = vmatpush1.bf16.msra.mxu1 %v10734_v3 }
 0xdc6   :  { %7036 = vmatprep.subr.bf16.mxu0 %v10737_v36  ;;  %7077 = vmatprep.subr.bf16.mxu1 %v10740_v55 }
 0xdc7   :  { %7066 = vmatprep.mubr.bf16.mxu0 %v11166_v47  ;;  %7107 = vmatprep.mubr.bf16.mxu1 %v11166_v47 }
 0xdc9   :  { %7037 = vmatpush1.bf16.msra.mxu0 %v10745_v13  ;;  %7078 = vmatpush1.bf16.msra.mxu1 %v10748_v24 }
 0xdca   :  { %7038 = vmatprep.subr.bf16.mxu0 %v10751_v25  ;;  %7079 = vmatprep.subr.bf16.mxu1 %v10754_v0 }
 0xdcd   :  { %7039 = vmatpush1.bf16.msra.mxu0 %v10757_v23  ;;  %7080 = vmatpush1.bf16.msra.mxu1 %v10760_v62 }
 0xdce   :  { %7040 = vmatprep.subr.bf16.mxu0 %v10763_v16  ;;  %7081 = vmatprep.subr.bf16.mxu1 %v10766_v8 }
 0xdd1   :  { %7041 = vmatpush1.bf16.msra.mxu0 %v10769_v14  ;;  %7082 = vmatpush1.bf16.msra.mxu1 %v10772_v60 }
 0xdd2   :  { %7042 = vmatprep.subr.bf16.mxu0 %v10775_v34  ;;  %7083 = vmatprep.subr.bf16.mxu1 %v10778_v53 }
 0xdd5   :  { %7043 = vmatpush1.bf16.msra.mxu0 %v10781_v43  ;;  %7084 = vmatpush1.bf16.msra.mxu1 %v10784_v33 }
 0xdd6   :  { %7044 = vmatprep.subr.bf16.mxu0 %v10787_v29  ;;  %7085 = vmatprep.subr.bf16.mxu1 %v10790_v42 }
 0xdd9   :  { %7045 = vmatpush1.bf16.msra.mxu0 %v11281_v7  ;;  %7086 = vmatpush1.bf16.msra.mxu1 %v11282_v12  ;;  %v10806_v7 = vld [vmem:[#allocation9 + $0xc] ss:$16 sps:$4 sm:$0xff]  }
 0xdda   :  { %7046 = vmatprep.subr.bf16.mxu0 %v11283_v54  ;;  %7087 = vmatprep.subr.bf16.mxu1 %v11284_v18  ;;  %v11312_v18 = vld [vmem:[#allocation41_spill] sm:$0xff] }
 0xddd   :  { %7047 = vmatpush1.bf16.msra.mxu0 %v11285_v30  ;;  %7088 = vmatpush1.bf16.msra.mxu1 %v11286_v44  ;;  %v11313_v44 = vsel %vm9165_vm2, %v11304_v2, %v11303_v63 }
 0xdde   :  { %7048 = vmatprep.subr.bf16.mxu0 %v11287_v56  ;;  %7089 = vmatprep.subr.bf16.mxu1 %v11288_v37 }
 0xde1   :  { %7049 = vmatpush1.bf16.msra.mxu0 %v11289_v26  ;;  %7090 = vmatpush1.bf16.msra.mxu1 %v11290_v4  ;;  %v11314_v4 = vsel %vm9169_vm3, %v11307_v57, %v11306_v21 }
 0xde2   :  { %7150 = vmatprep.subr.bf16.mxu0 %v10803_v39  ;;  %7191 = vmatprep.subr.bf16.mxu1 %v10806_v7 }
 0xe97   :  { %v6952_v12 = vpop.f32.mrb[112].mxu0  ;;  %v6993_v54 = vpop.f32.mrb[112].mxu1 }
 0xe98   :  { %v7000_v30 = vadd.f32 %v6952_v12, %v11312_v18  ;;  %v7002_v56 = vadd.f32 %v6993_v54, %v11313_v44  ;;  %v6954_v37 = vpop.f32.mrb[113].mxu0  ;;  %v6995_v26 = vpop.f32.mrb[113].mxu1 }
 0xe99   :  { %v7001_v46 = vadd.f32 %v6954_v37, %v11314_v4  ;;  %v7003_v28 = vadd.f32 %v6995_v26, %v11315_v35  ;;  %v6956_v50 = vpop.f32.mrb[114].mxu0  ;;  %v6997_v51 = vpop.f32.mrb[114].mxu1  ;;  %v10860_v26 = vld [vmem:[#allocation9 + $0xc4] ss:$16 sps:$4 sm:$0xff]   ;;  %v10863_v4 = vld [vmem:[#allocation9 + $0xcc] ss:$16 sps:$4 sm:$0xff]  }
 0xe9a   :  { %v8076_v22 = vmul.f32 -1.442695, %v7000_v30  ;;  %v6957_v40 = vpop.f32.mrb[115].mxu0  ;;  %v6998_v63 = vpop.f32.mrb[115].mxu1  ;;  %v10869_v35 = vld [vmem:[#allocation9 + $0xc8] ss:$16 sps:$4 sm:$0xff]  }
 0xe9b   :  { %v8077_v2 = vmul.f32 -1.442695, %v7001_v46  ;;  %v8078_v61 = vmul.f32 -1.442695, %v7003_v28  ;;  %v10866_v46 = vld [vmem:[#allocation9 + $0xc0] ss:$16 sps:$4 sm:$0xff]  }
 0xe9c   :  { %8583 = vpow2.f32 %v8076_v22  ;;  %v10872_v28 = vld [vmem:[#allocation9 + $0xe4] ss:$16 sps:$4 sm:$0xff]   ;;  %v10875_v50 = vld [vmem:[#allocation9 + $0xec] ss:$16 sps:$4 sm:$0xff]   ;;  %v10878_v51 = vld [vmem:[#allocation9 + $0xe0] ss:$16 sps:$4 sm:$0xff]  }
 0xe9d   :  { %8585 = vpow2.f32 %v8077_v2  ;;  %v10881_v22 = vld [vmem:[#allocation9 + $0xe8] ss:$16 sps:$4 sm:$0xff]   ;;  %v11316_v2 = vld [vmem:[#allocation52_spill] sm:$0xff] }
 0xe9e   :  { %8587 = vpow2.f32 %v8078_v61 }
 0xe9f   :  { %8589 = vtanh.f32 %v7002_v56 }
 0xea6   :  { %v8584_v1 = vpop.eup %8583 }
 0xea7   :  { %v8586_v9 = vpop.eup %8585  ;;  %v7007_v5 = vadd.f32 1.0, %v8584_v1  ;;  %v11317_v1 = vsel %vm9165_vm2, %v10385_v27, %v10383_v41 }
 0xea8   :  { %v7013_v21 = vadd.f32 1.0, %v8586_v9  ;;  %v8588_v57 = vpop.eup %8587 }
 0xea9   :  { %8591 = vrcp.f32 %v7007_v5  ;;  %v8590_v15 = vpop.eup %8589  ;;  %v7020_v31 = vadd.f32 1.0, %v8588_v57  ;;  %v11318_v57 = vsel %vm9169_vm3, %v10393_v11, %v10388_v17 }
 0xeaa   :  { %8593 = vrcp.f32 %v7013_v21 }
 0xeab   :  { %8595 = vrcp.f32 %v7020_v31 }
 0xeb3   :  { %v8592_v38 = vpop.eup %8591 }
 0xeb4   :  { %v8594_v48 = vpop.eup %8593  ;;  %v7024_v52 = vmul.f32 %v8592_v38, %v8590_v15 }
 0xeb5   :  { %v7023_v12 = vmul.f32 %v8594_v48, %v10725_v49  ;;  %v8596_v18 = vpop.eup %8595  ;;  %v10854_v49 = vld [vmem:[#allocation9 + $0xa0] ss:$16 sps:$4 sm:$0xff]  }
 0xeb7   :  { %v10826_v54 = vadd.f32 %v7024_v52, %v7023_v12 }
 0xeb9   :  { %8597 = vtanh.f32 %v10826_v54 }
 0xec3   :  { %v8598_v30 = vpop.eup %8597 }
 0xec4   :  { %v7027_v44 = vmul.f32 %v8598_v30, %v8596_v18 }
 0xec6   :  { %v7033_v56 = vpack.c.bf16 %v7027_v44, %v7027_v44  ;;  %v10830_v37 = vadd.f32 %v7027_v44, %v10729_v6  ;;  %v10857_v6 = vld [vmem:[#allocation9 + $0xa8] ss:$16 sps:$4 sm:$0xff]  }
 0xec8   :  { %7067 = vmatmul.mubr.bf16.vlgmr.msra.gmra.mrb[116].mxu0 %v7033_v56  ;;  %7108 = vmatmul.mubr.bf16.vlgmr.msra.gmra.mrb[116].mxu1 %v7033_v56 }
 0xec9   :  { %7151 = vmatpush1.bf16.msra.mxu0 %v10731_v19  ;;  %7192 = vmatpush1.bf16.msra.mxu1 %v10734_v3 }
 0xeca   :  { %7152 = vmatprep.subr.bf16.mxu0 %v10737_v36  ;;  %7193 = vmatprep.subr.bf16.mxu1 %v10740_v55 }
 0xecb   :  { %7182 = vmatprep.mubr.bf16.mxu0 %v11166_v47  ;;  %7223 = vmatprep.mubr.bf16.mxu1 %v11166_v47 }
 0xecd   :  { %7153 = vmatpush1.bf16.msra.mxu0 %v10745_v13  ;;  %7194 = vmatpush1.bf16.msra.mxu1 %v10748_v24 }
 0xece   :  { %7154 = vmatprep.subr.bf16.mxu0 %v10751_v25  ;;  %7195 = vmatprep.subr.bf16.mxu1 %v10754_v0 }
 0xed1   :  { %7155 = vmatpush1.bf16.msra.mxu0 %v10757_v23  ;;  %7196 = vmatpush1.bf16.msra.mxu1 %v10760_v62 }
 0xed2   :  { %7156 = vmatprep.subr.bf16.mxu0 %v10763_v16  ;;  %7197 = vmatprep.subr.bf16.mxu1 %v10766_v8 }
 0xed5   :  { %7157 = vmatpush1.bf16.msra.mxu0 %v10769_v14  ;;  %7198 = vmatpush1.bf16.msra.mxu1 %v10772_v60 }
 0xed6   :  { %7158 = vmatprep.subr.bf16.mxu0 %v10775_v34  ;;  %7199 = vmatprep.subr.bf16.mxu1 %v10778_v53 }
 0xed9   :  { %7159 = vmatpush1.bf16.msra.mxu0 %v10781_v43  ;;  %7200 = vmatpush1.bf16.msra.mxu1 %v10784_v33 }
 0xeda   :  { %7160 = vmatprep.subr.bf16.mxu0 %v10787_v29  ;;  %7201 = vmatprep.subr.bf16.mxu1 %v10790_v42 }
 0xedd   :  { %7161 = vmatpush1.bf16.msra.mxu0 %v10854_v49  ;;  %7202 = vmatpush1.bf16.msra.mxu1 %v10857_v6 }
 0xede   :  { %7162 = vmatprep.subr.bf16.mxu0 %v10860_v26  ;;  %7203 = vmatprep.subr.bf16.mxu1 %v10863_v4 }
 0xee1   :  { %7163 = vmatpush1.bf16.msra.mxu0 %v10866_v46  ;;  %7204 = vmatpush1.bf16.msra.mxu1 %v10869_v35 }
 0xee2   :  { %7164 = vmatprep.subr.bf16.mxu0 %v10872_v28  ;;  %7205 = vmatprep.subr.bf16.mxu1 %v10875_v50 }
 0xee5   :  { %7165 = vmatpush1.bf16.msra.mxu0 %v10878_v51  ;;  %7206 = vmatpush1.bf16.msra.mxu1 %v10881_v22 }
 0xee6   :  { %7266 = vmatprep.subr.bf16.mxu0 %v10803_v39  ;;  %7307 = vmatprep.subr.bf16.mxu1 %v10806_v7  ;;  %v11319_v7 = vsel %vm9175_vm4, %v11299_v32, %v11298_v45 }
 0xf9b   :  { %v7068_v40 = vpop.f32.mrb[116].mxu0  ;;  %v7109_v63 = vpop.f32.mrb[116].mxu1 }
 0xf9c   :  { %v7116_v61 = vadd.f32 %v7068_v40, %v11316_v2  ;;  %v7118_v9 = vadd.f32 %v7109_v63, %v11317_v1  ;;  %v7070_v5 = vpop.f32.mrb[117].mxu0  ;;  %v7111_v21 = vpop.f32.mrb[117].mxu1 }
 0xf9d   :  { %v7117_v39 = vadd.f32 %v7070_v5, %v11318_v57  ;;  %v7119_v15 = vadd.f32 %v7111_v21, %v11319_v7  ;;  %v7072_v38 = vpop.f32.mrb[118].mxu0  ;;  %v7113_v48 = vpop.f32.mrb[118].mxu1 }
 0xf9e   :  { %v8079_v52 = vmul.f32 -1.442695, %v7116_v61  ;;  %v7073_v31 = vpop.f32.mrb[119].mxu0  ;;  %v7114_v27 = vpop.f32.mrb[119].mxu1 }
 0xf9f   :  { %v8080_v41 = vmul.f32 -1.442695, %v7117_v39  ;;  %v8081_v12 = vmul.f32 -1.442695, %v7119_v15 }
 0xfa0   :  { %8599 = vpow2.f32 %v8079_v52 }
 0xfa1   :  { %8601 = vpow2.f32 %v8080_v41 }
 0xfa2   :  { %8603 = vpow2.f32 %v8081_v12  ;;  %v11329_v12 = vld [vmem:[#allocation54_spill] sm:$0xff] }
 0xfa3   :  { %8605 = vtanh.f32 %v7118_v9 }
 0xfaa   :  { %v8600_v18 = vpop.eup %8599 }
 0xfab   :  { %v8602_v30 = vpop.eup %8601  ;;  %v7123_v44 = vadd.f32 1.0, %v8600_v18 }
 0xfac   :  { %v7129_v11 = vadd.f32 1.0, %v8602_v30  ;;  %v8604_v17 = vpop.eup %8603  ;;  %v11330_v30 = vld [vmem:[#allocation21_spill] sm:$0xff] }
 0xfad   :  { %8607 = vrcp.f32 %v7123_v44  ;;  %v8606_v45 = vpop.eup %8605  ;;  %v7136_v63 = vadd.f32 1.0, %v8604_v17  ;;  %v11331_v44 = vld [vmem:[#allocation53_spill] sm:$0xff] }
 0xfae   :  { %8609 = vrcp.f32 %v7129_v11  ;;  %v11332_v11 = vsel %vm9165_vm2, %v11330_v30, %v11331_v44 }
 0xfaf   :  { %8611 = vrcp.f32 %v7136_v63 }
 0xfb7   :  { %v8608_v32 = vpop.eup %8607 }
 0xfb8   :  { %v8610_v56 = vpop.eup %8609  ;;  %v7140_v40 = vmul.f32 %v8608_v32, %v8606_v45 }
 0xfb9   :  { %v7139_v2 = vmul.f32 %v8610_v56, %v10826_v54  ;;  %v8612_v1 = vpop.eup %8611  ;;  %v11333_v56 = vld [vmem:[#allocation22_spill] sm:$0xff] }
 0xfbb   :  { %v10903_v61 = vadd.f32 %v7140_v40, %v7139_v2  ;;  %v11334_v40 = vld [vmem:[#allocation12_spill] sm:$0xff] }
 0xfbc   :  { %v11335_v63 = vsel %vm9169_vm3, %v11333_v56, %v11334_v40 }
 0xfbd   :  { %8613 = vtanh.f32 %v10903_v61 }
 0xfc7   :  { %v8614_v5 = vpop.eup %8613 }
 0xfc8   :  { %v7143_v21 = vmul.f32 %v8614_v5, %v8612_v1  ;;  %v11337_v1 = vld [vmem:[#allocation13_spill] sm:$0xff] }
 0xfca   :  { %v7149_v9 = vpack.c.bf16 %v7143_v21, %v7143_v21  ;;  %v10907_v57 = vadd.f32 %v7143_v21, %v10830_v37 }
 0xfcc   :  { %7183 = vmatmul.mubr.bf16.vlgmr.msra.gmra.mrb[120].mxu0 %v7149_v9  ;;  %7224 = vmatmul.mubr.bf16.vlgmr.msra.gmra.mrb[120].mxu1 %v7149_v9 }
 0xfcd   :  { %7267 = vmatpush1.bf16.msra.mxu0 %v10731_v19  ;;  %7308 = vmatpush1.bf16.msra.mxu1 %v10734_v3  ;;  %v11320_v3 = vld [vmem:[#allocation49_spill] sm:$0xff] }
 0xfce   :  { %7268 = vmatprep.subr.bf16.mxu0 %v10737_v36  ;;  %7309 = vmatprep.subr.bf16.mxu1 %v10740_v55  ;;  %v11321_v55 = vld [vmem:[#allocation46_spill] sm:$0xff] }
 0xfcf   :  { %7298 = vmatprep.mubr.bf16.mxu0 %v11166_v47  ;;  %7339 = vmatprep.mubr.bf16.mxu1 %v11166_v47 }
 0xfd1   :  { %7269 = vmatpush1.bf16.msra.mxu0 %v10745_v13  ;;  %7310 = vmatpush1.bf16.msra.mxu1 %v10748_v24  ;;  %v11322_v13 = vld [vmem:[#allocation47_spill] sm:$0xff] }
 0xfd2   :  { %7270 = vmatprep.subr.bf16.mxu0 %v10751_v25  ;;  %7311 = vmatprep.subr.bf16.mxu1 %v10754_v0  ;;  %v11323_v24 = vsel %vm9165_vm2, %v11321_v55, %v11322_v13 }
 0xfd5   :  { %7271 = vmatpush1.bf16.msra.mxu0 %v10757_v23  ;;  %7312 = vmatpush1.bf16.msra.mxu1 %v10760_v62  ;;  %v11324_v62 = vld [vmem:[#allocation50_spill] sm:$0xff] }
 0xfd6   :  { %7272 = vmatprep.subr.bf16.mxu0 %v10763_v16  ;;  %7313 = vmatprep.subr.bf16.mxu1 %v10766_v8  ;;  %v11325_v16 = vsel %vm9169_vm3, %v10455_v10, %v11324_v62 }
 0xfd9   :  { %7273 = vmatpush1.bf16.msra.mxu0 %v10769_v14  ;;  %7314 = vmatpush1.bf16.msra.mxu1 %v10772_v60  ;;  %v11326_v14 = vld [vmem:[#allocation51_spill] sm:$0xff]  ;;  %v11327_v60 = vld [vmem:[#allocation48_spill] sm:$0xff] }
 0xfda   :  { %7274 = vmatprep.subr.bf16.mxu0 %v10775_v34  ;;  %7315 = vmatprep.subr.bf16.mxu1 %v10778_v53  ;;  %v11328_v34 = vsel %vm9175_vm4, %v11326_v14, %v11327_v60  ;;  %v7377_v60 = vld [vmem:[%s10996_s7] sm:$0x3]  ;;  %s8762_s7 = smov 1  }
 0xfdd   :  { %7275 = vmatpush1.bf16.msra.mxu0 %v10781_v43  ;;  %7316 = vmatpush1.bf16.msra.mxu1 %v10784_v33 }
 0xfde   :  { %7276 = vmatprep.subr.bf16.mxu0 %v10787_v29  ;;  %7317 = vmatprep.subr.bf16.mxu1 %v10790_v42 }
 0xfe1   :  { %7277 = vmatpush1.bf16.msra.mxu0 %v10854_v49  ;;  %7318 = vmatpush1.bf16.msra.mxu1 %v10857_v6 }
 0xfe2   :  { %7278 = vmatprep.subr.bf16.mxu0 %v10860_v26  ;;  %7319 = vmatprep.subr.bf16.mxu1 %v10863_v4 }
 0xfe5   :  { %7279 = vmatpush1.bf16.msra.mxu0 %v10866_v46  ;;  %7320 = vmatpush1.bf16.msra.mxu1 %v10869_v35 }
 0xfe6   :  { %7280 = vmatprep.subr.bf16.mxu0 %v10872_v28  ;;  %7321 = vmatprep.subr.bf16.mxu1 %v10875_v50 }
 0xfe9   :  { %7281 = vmatpush1.bf16.msra.mxu0 %v10878_v51  ;;  %7322 = vmatpush1.bf16.msra.mxu1 %v10881_v22 }
0x109f   :  { %v7184_v47 = vpop.f32.mrb[120].mxu0  ;;  %v7225_v19 = vpop.f32.mrb[120].mxu1 }
0x10a0   :  { %v7232_v36 = vadd.f32 %v7184_v47, %v11320_v3  ;;  %v7234_v25 = vadd.f32 %v7225_v19, %v11323_v24  ;;  %v7186_v0 = vpop.f32.mrb[121].mxu0  ;;  %v7227_v23 = vpop.f32.mrb[121].mxu1 }
0x10a1   :  { %v7233_v8 = vadd.f32 %v7186_v0, %v11325_v16  ;;  %v7235_v53 = vadd.f32 %v7227_v23, %v11328_v34  ;;  %v7188_v43 = vpop.f32.mrb[122].mxu0  ;;  %v7229_v33 = vpop.f32.mrb[122].mxu1 }
0x10a2   :  { %v8082_v29 = vmul.f32 -1.442695, %v7232_v36  ;;  %v7189_v42 = vpop.f32.mrb[123].mxu0  ;;  %v7230_v54 = vpop.f32.mrb[123].mxu1  ;;  %v11339_v33 = vld [vmem:[#allocation25_spill] sm:$0xff] }
0x10a3   :  { %v8083_v37 = vmul.f32 -1.442695, %v7233_v8  ;;  %v8084_v49 = vmul.f32 -1.442695, %v7235_v53 }
0x10a4   :  { %8615 = vpow2.f32 %v8082_v29  ;;  %v7396_v29 = vrot.slane %v7377_v60, %v11339_v33 }
0x10a5   :  { %8617 = vpow2.f32 %v8083_v37  ;;  %v11340_v37 = vld [vmem:[#allocation24_spill] sm:$0xff] }
0x10a6   :  { %8619 = vpow2.f32 %v8084_v49  ;;  %v7382_v49 = vrot.slane %v7377_v60, %v11340_v37 }
0x10a7   :  { %8621 = vtanh.f32 %v7234_v25 }
0x10ae   :  { %v8616_v6 = vpop.eup %8615 }
0x10af   :  { %v8618_v26 = vpop.eup %8617  ;;  %v7239_v4 = vadd.f32 1.0, %v8616_v6 }
0x10b0   :  { %v7245_v10 = vadd.f32 1.0, %v8618_v26  ;;  %v8620_v46 = vpop.eup %8619  ;;  %v8088_v26 = vld [vmem:[%s10997_s8] ss:$0 sm:$0xff] }
0x10b1   :  { %8623 = vrcp.f32 %v7239_v4  ;;  %v8622_v35 = vpop.eup %8621  ;;  %v7252_v22 = vadd.f32 1.0, %v8620_v46 }
0x10b2   :  { %8625 = vrcp.f32 %v7245_v10 }
0x10b3   :  { %8627 = vrcp.f32 %v7252_v22 }
0x10bb   :  { %v8624_v28 = vpop.eup %8623 }
0x10bc   :  { %v8626_v50 = vpop.eup %8625  ;;  %v7256_v51 = vmul.f32 %v8624_v28, %v8622_v35 }
0x10bd   :  { %v7255_v39 = vmul.f32 %v8626_v50, %v10903_v61  ;;  %v8628_v15 = vpop.eup %8627  ;;  %v11336_v61 = vld [vmem:[#allocation23_spill] sm:$0xff] }
0x10be   :  { %v11338_v5 = vsel %vm9175_vm4, %v11336_v61, %v11337_v1 }
0x10bf   :  { %v7257_v7 = vadd.f32 %v7256_v51, %v7255_v39 }
0x10c1   :  { %8629 = vtanh.f32 %v7257_v7 }
0x10cb   :  { %v8630_v38 = vpop.eup %8629 }
0x10cc   :  { %v7259_v48 = vmul.f32 %v8630_v38, %v8628_v15 }
0x10ce   :  { %v7265_v52 = vpack.c.bf16 %v7259_v48, %v7259_v48  ;;  %v7260_v31 = vadd.f32 %v7259_v48, %v10907_v57 }
0x10d0   :  { %7299 = vmatmul.mubr.bf16.vlgmr.msra.gmra.mrb[124].mxu0 %v7265_v52  ;;  %7340 = vmatmul.mubr.bf16.vlgmr.msra.gmra.mrb[124].mxu1 %v7265_v52 }
0x11a3   :  { %v7300_v27 = vpop.f32.mrb[124].mxu0  ;;  %v7341_v41 = vpop.f32.mrb[124].mxu1 }
0x11a4   :  { %v7348_v18 = vadd.f32 %v7300_v27, %v11329_v12  ;;  %v7350_v17 = vadd.f32 %v7341_v41, %v11332_v11  ;;  %v7302_v45 = vpop.f32.mrb[125].mxu0  ;;  %v7343_v32 = vpop.f32.mrb[125].mxu1 }
0x11a5   :  { %v7349_v2 = vadd.f32 %v7302_v45, %v11335_v63  ;;  %v7351_v21 = vadd.f32 %v7343_v32, %v11338_v5  ;;  %v7304_v9 = vpop.f32.mrb[126].mxu0  ;;  %v7345_v20 = vpop.f32.mrb[126].mxu1 }
0x11a6   :  { %v8085_v57 = vmul.f32 -1.442695, %v7348_v18  ;;  %v7305_v47 = vpop.f32.mrb[127].mxu0  ;;  %v7346_v19 = vpop.f32.mrb[127].mxu1 }
0x11a7   :  { %v8086_v3 = vmul.f32 -1.442695, %v7349_v2  ;;  %v8087_v36 = vmul.f32 -1.442695, %v7351_v21 }
0x11a8   :  { %8631 = vpow2.f32 %v8085_v57 }
0x11a9   :  { %8633 = vpow2.f32 %v8086_v3 }
0x11aa   :  { %8635 = vpow2.f32 %v8087_v36 }
0x11ab   :  { %8637 = vtanh.f32 %v7350_v17 }
0x11b2   :  { %v8632_v59 = vpop.eup %8631 }
0x11b3   :  { %v8634_v55 = vpop.eup %8633  ;;  %v7355_v13 = vadd.f32 1.0, %v8632_v59 }
0x11b4   :  { %v7361_v24 = vadd.f32 1.0, %v8634_v55  ;;  %v8636_v58 = vpop.eup %8635 }
0x11b5   :  { %8639 = vrcp.f32 %v7355_v13  ;;  %v8638_v25 = vpop.eup %8637  ;;  %v7368_v16 = vadd.f32 1.0, %v8636_v58 }
0x11b6   :  { %8641 = vrcp.f32 %v7361_v24 }
0x11b7   :  { %8643 = vrcp.f32 %v7368_v16 }
0x11bf   :  { %v8640_v0 = vpop.eup %8639 }
0x11c0   :  { %v8642_v23 = vpop.eup %8641  ;;  %v7372_v62 = vmul.f32 %v8640_v0, %v8638_v25 }
0x11c1   :  { %v7371_v8 = vmul.f32 %v8642_v23, %v7257_v7  ;;  %v8644_v34 = vpop.eup %8643 }
0x11c3   :  { %v7373_v14 = vadd.f32 %v7372_v62, %v7371_v8 }
0x11c5   :  { %8645 = vtanh.f32 %v7373_v14 }
0x11cf   :  { %v8646_v53 = vpop.eup %8645 }
0x11d0   :  { %v7375_v43 = vmul.f32 %v8646_v53, %v8644_v34 }
0x11d2   :  { %v7376_v42 = vadd.f32 %v7375_v43, %v7260_v31 }
0x11d4   :  { %v7397_v54 = vmul.f32 %v7396_v29, %v7376_v42  ;;  %v7383_v6 = vmul.f32 %v7382_v49, %v7376_v42 }
0x11d6   :  { %7398 = vadd.xlane.f32.xlu0 %v7397_v54 }
0x11da   :  { %7384 = vadd.xlane.f32.xlu0 %v7383_v6 }
0x1263   :  { %v7399_v4 = vpop.xlane.xlu0 %7398 }
0x1264   :  { %v7400_v10 = vadd.f32 %v8088_v26, %v7399_v4 }
0x1266   :  { %7402 = vrot.lane.b32.xlu1 %v7400_v10, %s8761_s22 }
0x1267   :  { %v7385_v46 = vpop.xlane.xlu0 %7384 }
0x1268   :  { %v7392_v35 = vadd.f32 %v8088_v26, %v7385_v46 }
0x12d8   :  { %v7403_v28 = vpop.permute.xlu1 %7402 }
0x12d9   :  { %v7405_v50 = vmax.f32 %v7392_v35, %v7403_v28 }
0x12db   :  { %7411 = vrot.lane.b32.xlu1 %v7405_v50, %s8762_s7  ;;  %v7406_v15 = vsub.f32 %v7392_v35, %v7405_v50 }
0x12dd   :  { %v7407_v38 = vmul.f32 1.442695, %v7406_v15 }
0x134d   :  { %v7412_v51 = vpop.permute.xlu1 %7411 }
0x134e   :  { %v7414_v22 = vsub.f32 %v7400_v10, %v7412_v51 }
0x1350   :  { %v7415_v39 = vmul.f32 1.442695, %v7414_v22 }
0x1352   :  { %8647 = vpow2.f32 %v7415_v39 }
0x1353   :  { %8649 = vpow2.f32 %v7407_v38 }
0x135c   :  { %v8648_v7 = vpop.eup %8647 }
0x135d   :  { %7418 = vrot.lane.b32.xlu0 %v8648_v7, %s8761_s22  ;;  %v8650_v48 = vpop.eup %8649 }
0x13cf   :  { %v7419_v52 = vpop.permute.xlu0 %7418 }
0x13d0   :  { %v7421_v31 = vadd.f32 %v8650_v48, %v7419_v52 }
0x13d2   :  { %8651 = vlog2.f32 %v7421_v31 }
0x13dc   :  { %v8652_v27 = vpop.eup %8651 }
0x13dd   :  { %v7423_v41 = vmul.f32 0.6931472, %v8652_v27 }
0x13df   :  { %v7424_v12 = vadd.f32 %v7423_v41, %v7405_v50 }
0x13e1   :  { %7429 = vrot.lane.b32.xlu1 %v7424_v12, %s8762_s7  ;;  %v7425_v18 = vsub.f32 %v7392_v35, %v7424_v12 }
0x13e3   :  { %7427 = vst.msk [vmem:[%s10998_s9] sm:$0xff] %vm7426_vm5, %v7425_v18 }
0x1453   :  { %v7430_v30 = vpop.permute.xlu1 %7429 }
0x1454   :  { %v7432_v44 = vsub.f32 %v7400_v10, %v7430_v30 }
0x1456   :  { %7434 = vst.msk [vmem:[%s10998_s9] sm:$0xff] %vm7433_vm6, %v7432_v44 }
0x1457   :  { %7439 = vsyncpa [#allocation6], 1 }
0x1458   :  { %7440 = vsyncpa [#allocation8], 1 }

</bundles_post_ra>
